<compile_context>
chip_gen: v6e
topology: v6e:2x2x1
jax: 0.10.0
libtpu: 0.0.40
codegen_flags: <defaults>
</compile_context>

<pallas_src>
import functools

import jax
import jax.numpy as jnp
from jax.experimental import pallas as pl
from jax.experimental.pallas import tpu as pltpu


# ----------------------------------------------------------------------------
# Kernel 1: Conv3d(3x3x3,pad=1) [BN scale folded into weight] + shift +
#           LeakyReLU(0.2) + q/k/v 1x1 convs.  Lane-dense over M = NB*P.
#   patches : (27*C, Mtile) bf16   im2col of the padded input
#   wc      : (C, 27*C)     bf16   conv weight, BN scale pre-folded
#   shift   : (C, 1)        f32    conv bias + BN shift
#   wqkv    : (3C, C)       bf16   [Wq; Wk; Wv]
#   bqkv    : (3C, 1)       f32    [bq; 0; 0]  (k/v biases added after padding)
#   out     : (3C, Mtile)   bf16   [q; k_nobias; v_nobias]
# ----------------------------------------------------------------------------
def _conv_qkv_kernel(p_ref, wc_ref, shift_ref, wqkv_ref, bqkv_ref, o_ref):
    y = jnp.dot(wc_ref[...], p_ref[...], preferred_element_type=jnp.float32)
    y = y + shift_ref[...]                         # conv bias + BN shift
    y = jnp.where(y >= 0.0, y, 0.2 * y)            # LeakyReLU(0.2)
    qkv = jnp.dot(wqkv_ref[...], y.astype(jnp.bfloat16),
                  preferred_element_type=jnp.float32)
    o_ref[...] = (qkv + bqkv_ref[...]).astype(jnp.bfloat16)


def conv_bn_lrelu_qkv(patches, wc, shift, wqkv, bqkv, *, tile):
    K, N = patches.shape
    C = wc.shape[0]
    assert N % tile == 0, (N, tile)
    return pl.pallas_call(
        _conv_qkv_kernel,
        out_shape=jax.ShapeDtypeStruct((3 * C, N), jnp.bfloat16),
        grid=(N // tile,),
        in_specs=[
            pl.BlockSpec((K, tile), lambda j: (0, j)),
            pl.BlockSpec((C, K), lambda j: (0, 0)),
            pl.BlockSpec((C, 1), lambda j: (0, 0)),
            pl.BlockSpec((3 * C, C), lambda j: (0, 0)),
            pl.BlockSpec((3 * C, 1), lambda j: (0, 0)),
        ],
        out_specs=pl.BlockSpec((3 * C, tile), lambda j: (0, j)),
        compiler_params=pltpu.CompilerParams(
            dimension_semantics=("parallel",)),
    )(patches, wc, shift, wqkv, bqkv)


# ----------------------------------------------------------------------------
# Kernel 2: SASA 2x2x2-window attention + residual, lane-dense over positions.
#   q   : (C, Mtile)      bf16   query (rel term pre-folded into K)
#   k,v : (W8, C, Mtile)  bf16   window slabs per offset m
#   res : (C, Mtile)      f32    residual (original input, same regrouping)
#   out : (C, Mtile)      f32
# ----------------------------------------------------------------------------
def _sasa_kernel(q_ref, k_ref, v_ref, res_ref, o_ref, *, w8):
    q = q_ref[...].astype(jnp.float32)                                # (C, T)
    logits = [jnp.sum(q * k_ref[m].astype(jnp.float32),
                      axis=0, keepdims=True) for m in range(w8)]      # w8x(1,T)
    mx = logits[0]
    for m in range(1, w8):
        mx = jnp.maximum(mx, logits[m])
    es = [jnp.exp(l - mx) for l in logits]
    denom = es[0]
    for m in range(1, w8):
        denom = denom + es[m]
    inv = pl.reciprocal(denom, approx=True)                           # (1, T)
    acc = res_ref[...]                                                # (C, T)
    for m in range(w8):
        acc = acc + (es[m] * inv) * v_ref[m].astype(jnp.float32)
    o_ref[...] = acc


def sasa_attention(q_cm, k_cm, v_cm, res_cm, *, tile):
    C, M = q_cm.shape
    w8 = k_cm.shape[0]
    assert M % tile == 0, (M, tile)
    kern = functools.partial(_sasa_kernel, w8=w8)
    return pl.pallas_call(
        kern,
        out_shape=jax.ShapeDtypeStruct((C, M), jnp.float32),
        grid=(M // tile,),
        in_specs=[
            pl.BlockSpec((C, tile), lambda i: (0, i)),
            pl.BlockSpec((w8, C, tile), lambda i: (0, 0, i)),
            pl.BlockSpec((w8, C, tile), lambda i: (0, 0, i)),
            pl.BlockSpec((C, tile), lambda i: (0, i)),
        ],
        out_specs=pl.BlockSpec((C, tile), lambda i: (0, i)),
        compiler_params=pltpu.CompilerParams(
            dimension_semantics=("parallel",)),
    )(q_cm, k_cm, v_cm, res_cm)


# ----------------------------------------------------------------------------
# Wrapper-side layout plumbing (pads / slices / row-major regroups only).
# ----------------------------------------------------------------------------
def pick_tile(m, cap=1024):
    """Largest multiple of 128 that divides m, capped (>=2 grid steps when
    possible so both v7x TensorCores get work); falls back to the full extent."""
    best = None
    t = 128
    while t <= min(m, cap):
        if m % t == 0:
            best = t
        t += 128
    return best if best is not None else m


def im2col_3x3x3(x):
    """(NB, C, H, W, D) -> (27*C, NB*H*W*D), rows ordered (tap, cin),
    columns ordered nb-major then p."""
    NB, C, H, W, D = x.shape
    xp = jnp.pad(x, ((0, 0), (0, 0), (1, 1), (1, 1), (1, 1)))
    taps = [xp[:, :, a:a + H, b:b + W, c:c + D].reshape(NB, C, H * W * D)
            for a in range(3) for b in range(3) for c in range(3)]
    pat = jnp.concatenate(taps, axis=1)                    # (NB, 27C, P)
    return pat.transpose(1, 0, 2).reshape(27 * C, NB * H * W * D)


def scramble_cm(t_ncp):
    """(NB, C, P) natural -> (C, NB*P): torch's contiguous reshape regroup
    (flat c*P+p -> (new_p, d')), transposed so positions land on lanes."""
    NB, C, P = t_ncp.shape
    return t_ncp.reshape(NB, P, C).transpose(2, 0, 1).reshape(C, NB * P)


def unscramble_cm(t_cm, NB, C, H, W, D):
    """Inverse of scramble_cm: (C, NB*P) -> (NB, C, H, W, D)."""
    P = H * W * D
    return t_cm.reshape(C, NB, P).transpose(1, 2, 0).reshape(NB, C, H, W, D)


def build_windows(t_nat, bias, rel_vec, H, W, D):
    """(NB, C, H, W, D) conv output WITHOUT bias -> (8, C, NB*P) bf16 window
    slabs (scrambled-transposed layout).  1x1-conv bias (valid at padding too,
    since conv of the zero pad == bias) and, for K, the per-offset relative
    encoding scalar are folded in, in f32, before the bf16 cast."""
    NB, C = t_nat.shape[:2]
    P = H * W * D
    tp = jnp.pad(t_nat.astype(jnp.float32),
                 ((0, 0), (0, 0), (0, 1), (0, 1), (0, 1)))
    tp = tp + bias.reshape(1, C, 1, 1, 1)
    slabs = []
    idx = 0
    for i in (0, 1):
        for j in (0, 1):
            for l in (0, 1):
                s = tp[:, :, i:i + H, j:j + W, l:l + D].reshape(NB, C * P)
                if rel_vec is not None:
                    s = s + rel_vec[idx]
                slabs.append(s)
                idx += 1
    sl = jnp.stack(slabs, axis=0)                          # (8, NB, C*P)
    sl = sl.reshape(8, NB, P, C)                           # flat regroup
    sl = sl.transpose(0, 3, 1, 2).reshape(8, C, NB * P)    # positions -> lanes
    return sl.astype(jnp.bfloat16)


# ----------------------------------------------------------------------------
# Parameters (deterministic synthetic init, internally consistent layouts)
# ----------------------------------------------------------------------------
def init_params(key, C):
    ks = jax.random.split(key, 13)
    eps = 1e-5
    fan = 27 * C
    wc = jax.random.normal(ks[0], (C, fan), jnp.float32) / jnp.sqrt(fan)
    bc = 0.01 * jax.random.normal(ks[1], (C,), jnp.float32)
    gamma = 1.0 + 0.1 * jax.random.normal(ks[2], (C,), jnp.float32)
    beta = 0.1 * jax.random.normal(ks[3], (C,), jnp.float32)
    bn_scale = gamma / jnp.sqrt(1.0 + eps)       # eval-mode BN (mean=0, var=1)
    wc_folded = (bn_scale[:, None] * wc).astype(jnp.bfloat16)   # fold in f32
    shift = (bc * bn_scale + beta).reshape(C, 1)                # bias + BN shift

    def lin(kw, kb):
        w = jax.random.normal(kw, (C, C), jnp.float32) / jnp.sqrt(C)
        b = 0.01 * jax.random.normal(kb, (C,), jnp.float32)
        return w, b

    wq, bq = lin(ks[4], ks[5])
    wk, bk = lin(ks[6], ks[7])
    wv, bv = lin(ks[8], ks[9])

    ksz = 2  # SASA: kernel_size = min(3, image_size=2)
    rel_h = jax.random.normal(ks[10], (C // 2, ksz, 1, 1), jnp.float32)
    rel_w = jax.random.normal(ks[11], (C // 2, 1, ksz, 1), jnp.float32)
    rel_d = jax.random.normal(ks[12], (C // 2, 1, 1, ksz), jnp.float32)
    # einsum('bhxytdz,cijk->bhxytijk', q, rel) contracts q's channel axis and
    # rel's channel axis independently -> rel term == qsum * (rh[i]+rw[j]+rd[l]).
    rh = rel_h.sum(axis=0).reshape(ksz)
    rw = rel_w.sum(axis=0).reshape(ksz)
    rd = rel_d.sum(axis=0).reshape(ksz)
    rel_vec = (rh[:, None, None] + rw[None, :, None]
               + rd[None, None, :]).reshape(ksz ** 3)

    return {
        "wc": wc_folded,                                           # (C, 27C) bf16
        "shift": shift,                                            # (C, 1) f32
        "wqkv": jnp.concatenate([wq, wk, wv], axis=0).astype(jnp.bfloat16),
        "bqkv": jnp.concatenate(
            [bq, jnp.zeros((C,), jnp.float32),
             jnp.zeros((C,), jnp.float32)]).reshape(3 * C, 1),
        "bk": bk,
        "bv": bv,
        "rel_vec": rel_vec,                                        # (8,) f32
    }


# ----------------------------------------------------------------------------
# Forward pass (matches Mixing_self_att_block.forward)
# ----------------------------------------------------------------------------
def mixing_self_att_forward(params, x1, x2):
    """x1, x2: (B, C, H, W, D) NCDHW, like the PyTorch module."""
    B, C, H, W, D = x1.shape
    P = H * W * D
    x = jnp.concatenate([x1, x2], axis=0)        # shared weights -> stack batch
    NB = 2 * B
    M = NB * P
    tile = pick_tile(M)

    # Kernel 1: conv + BN + LeakyReLU + q/k/v, one launch over all positions.
    patches = im2col_3x3x3(x).astype(jnp.bfloat16)            # (27C, M)
    qkv = conv_bn_lrelu_qkv(patches, params["wc"], params["shift"],
                            params["wqkv"], params["bqkv"], tile=tile)

    # Layout plumbing: reproduce torch's contiguous reshape chain, transposed
    # so the (scrambled) position axis is lane-dense for kernel 2.
    def to_ncp(slab):                                          # (C, M) -> (NB, C, P)
        return slab.reshape(C, NB, P).transpose(1, 0, 2)

    q_cm = scramble_cm(to_ncp(qkv[:C]))                        # (C, M) bf16
    k_nat = to_ncp(qkv[C:2 * C]).reshape(NB, C, H, W, D)
    v_nat = to_ncp(qkv[2 * C:]).reshape(NB, C, H, W, D)
    k_cm = build_windows(k_nat, params["bk"], params["rel_vec"], H, W, D)
    v_cm = build_windows(v_nat, params["bv"], None, H, W, D)
    res_cm = scramble_cm(x.reshape(NB, C, P))                  # (C, M) f32

    out_cm = sasa_attention(q_cm, k_cm, v_cm, res_cm, tile=tile)
    out = unscramble_cm(out_cm, NB, C, H, W, D)

    # torch.cat((x1_out, x2_out), dim=1)
    return jnp.concatenate([out[:B], out[B:]], axis=1)


if __name__ == "__main__":
    key = jax.random.PRNGKey(0)
    k1, k2, kp = jax.random.split(key, 3)
    B, C, S = 2, 8, 8                            # batch, in_ch, cubic spatial

    x1 = jax.random.normal(k1, (B, C, S, S, S), jnp.float32)
    x2 = jax.random.normal(k2, (B, C, S, S, S), jnp.float32)
    params = init_params(kp, C)

    fwd = jax.jit(mixing_self_att_forward)
    out = fwd(params, x1, x2)
    out = jax.block_until_ready(out)
    assert out.shape == (B, 2 * C, S, S, S), out.shape
    assert bool(jnp.all(jnp.isfinite(out)))
    print("KERNEL_OK")
</pallas_src>

<mosaic_0001>
module attributes {stable_mosaic.version = 11 : i64} {
  func.func @_conv_qkv_kernel(%arg0: i32, %arg1: memref<216x1024xbf16, #tpu.memory_space<vmem>>, %arg2: memref<8x216xbf16, #tpu.memory_space<vmem>>, %arg3: memref<8x1xf32, #tpu.memory_space<vmem>>, %arg4: memref<24x8xbf16, #tpu.memory_space<vmem>>, %arg5: memref<24x1xf32, #tpu.memory_space<vmem>>, %arg6: memref<24x1024xbf16, #tpu.memory_space<vmem>>) attributes {dimension_semantics = [#tpu.dimension_semantics<parallel>], iteration_bounds = array<i64: 2>, scalar_prefetch = 0 : i64, scratch_operands = 0 : i64, tpu.core_type = #tpu.core_type<tc>, window_params = [{transform_indices = @transform_0, window_bounds = array<i64: 216, 1024>}, {pipeline_mode = #tpu.pipeline_mode<synchronous>, transform_indices = @transform_1, window_bounds = array<i64: 8, 216>}, {pipeline_mode = #tpu.pipeline_mode<synchronous>, transform_indices = @transform_2, window_bounds = array<i64: 8, 1>}, {pipeline_mode = #tpu.pipeline_mode<synchronous>, transform_indices = @transform_3, window_bounds = array<i64: 24, 8>}, {pipeline_mode = #tpu.pipeline_mode<synchronous>, transform_indices = @transform_4, window_bounds = array<i64: 24, 1>}, {transform_indices = @transform_5, window_bounds = array<i64: 24, 1024>}]} {
    %c0 = arith.constant 0 : index
    %c0_0 = arith.constant 0 : index
    %0 = vector.load %arg2[%c0, %c0_0] : memref<8x216xbf16, #tpu.memory_space<vmem>>, vector<8x216xbf16>
    %c0_1 = arith.constant 0 : index
    %c0_2 = arith.constant 0 : index
    %1 = vector.load %arg1[%c0_1, %c0_2] : memref<216x1024xbf16, #tpu.memory_space<vmem>>, vector<216x1024xbf16>
    %cst = arith.constant dense<0.000000e+00> : vector<8x1024xf32>
    %2 = tpu.matmul %0, %1, %cst {dimension_numbers = #tpu.dot_dimension_numbers<[1], [0], [0], [1], [0, 0, 1, 1], [], []>} : vector<8x216xbf16>, vector<216x1024xbf16>, vector<8x1024xf32> -> vector<8x1024xf32>
    %c0_3 = arith.constant 0 : index
    %c0_4 = arith.constant 0 : index
    %3 = vector.load %arg3[%c0_3, %c0_4] : memref<8x1xf32, #tpu.memory_space<vmem>>, vector<8x1xf32>
    %4 = vector.broadcast %3 : vector<8x1xf32> to vector<8x1024xf32>
    %5 = arith.addf %2, %4 : vector<8x1024xf32>
    %cst_5 = arith.constant 0.000000e+00 : f32
    %6 = vector.broadcast %cst_5 : f32 to vector<8x1024xf32>
    %7 = arith.cmpf oge, %5, %6 : vector<8x1024xf32>
    %cst_6 = arith.constant 2.000000e-01 : f32
    %8 = vector.broadcast %cst_6 : f32 to vector<8x1024xf32>
    %9 = arith.mulf %8, %5 : vector<8x1024xf32>
    %10 = arith.select %7, %5, %9 : vector<8x1024xi1>, vector<8x1024xf32>
    %c0_7 = arith.constant 0 : index
    %c0_8 = arith.constant 0 : index
    %11 = vector.load %arg4[%c0_7, %c0_8] : memref<24x8xbf16, #tpu.memory_space<vmem>>, vector<24x8xbf16>
    %12 = arith.truncf %10 : vector<8x1024xf32> to vector<8x1024xbf16>
    %cst_9 = arith.constant dense<0.000000e+00> : vector<24x1024xf32>
    %13 = tpu.matmul %11, %12, %cst_9 {dimension_numbers = #tpu.dot_dimension_numbers<[1], [0], [0], [1], [0, 0, 1, 1], [], []>} : vector<24x8xbf16>, vector<8x1024xbf16>, vector<24x1024xf32> -> vector<24x1024xf32>
    %c0_10 = arith.constant 0 : index
    %c0_11 = arith.constant 0 : index
    %14 = vector.load %arg5[%c0_10, %c0_11] : memref<24x1xf32, #tpu.memory_space<vmem>>, vector<24x1xf32>
    %15 = vector.broadcast %14 : vector<24x1xf32> to vector<24x1024xf32>
    %16 = arith.addf %13, %15 : vector<24x1024xf32>
    %17 = arith.truncf %16 : vector<24x1024xf32> to vector<24x1024xbf16>
    %c0_12 = arith.constant 0 : index
    %c0_13 = arith.constant 0 : index
    %18 = vector.load %arg6[%c0_12, %c0_13] : memref<24x1024xbf16, #tpu.memory_space<vmem>>, vector<24x1024xbf16>
    tpu.vector_store %arg6[%c0_12, %c0_13], %17 {strides = array<i32>} : memref<24x1024xbf16, #tpu.memory_space<vmem>>, vector<24x1024xbf16>,
    return
  }
  func.func @transform_0(%arg0: i32) -> (i32, i32) {
    %c0_i32 = arith.constant 0 : i32
    %c0_i32_0 = arith.constant 0 : i32
    return %c0_i32, %arg0 : i32, i32
  }
  func.func @transform_1(%arg0: i32) -> (i32, i32) {
    %c0_i32 = arith.constant 0 : i32
    %c0_i32_0 = arith.constant 0 : i32
    %c0_i32_1 = arith.constant 0 : i32
    return %c0_i32, %c0_i32_0 : i32, i32
  }
  func.func @transform_2(%arg0: i32) -> (i32, i32) {
    %c0_i32 = arith.constant 0 : i32
    %c0_i32_0 = arith.constant 0 : i32
    %c0_i32_1 = arith.constant 0 : i32
    return %c0_i32, %c0_i32_0 : i32, i32
  }
  func.func @transform_3(%arg0: i32) -> (i32, i32) {
    %c0_i32 = arith.constant 0 : i32
    %c0_i32_0 = arith.constant 0 : i32
    %c0_i32_1 = arith.constant 0 : i32
    return %c0_i32, %c0_i32_0 : i32, i32
  }
  func.func @transform_4(%arg0: i32) -> (i32, i32) {
    %c0_i32 = arith.constant 0 : i32
    %c0_i32_0 = arith.constant 0 : i32
    %c0_i32_1 = arith.constant 0 : i32
    return %c0_i32, %c0_i32_0 : i32, i32
  }
  func.func @transform_5(%arg0: i32) -> (i32, i32) {
    %c0_i32 = arith.constant 0 : i32
    %c0_i32_0 = arith.constant 0 : i32
    return %c0_i32, %arg0 : i32, i32
  }
}

module attributes {stable_mosaic.version = 11 : i64} {
  func.func @_sasa_kernel(%arg0: i32, %arg1: memref<8x1024xbf16, #tpu.memory_space<vmem>>, %arg2: memref<8x8x1024xbf16, #tpu.memory_space<vmem>>, %arg3: memref<8x8x1024xbf16, #tpu.memory_space<vmem>>, %arg4: memref<8x1024xf32, #tpu.memory_space<vmem>>, %arg5: memref<8x1024xf32, #tpu.memory_space<vmem>>) attributes {dimension_semantics = [#tpu.dimension_semantics<parallel>], iteration_bounds = array<i64: 2>, scalar_prefetch = 0 : i64, scratch_operands = 0 : i64, tpu.core_type = #tpu.core_type<tc>, window_params = [{transform_indices = @transform_0, window_bounds = array<i64: 8, 1024>}, {transform_indices = @transform_1, window_bounds = array<i64: 8, 8, 1024>}, {transform_indices = @transform_2, window_bounds = array<i64: 8, 8, 1024>}, {transform_indices = @transform_3, window_bounds = array<i64: 8, 1024>}, {transform_indices = @transform_4, window_bounds = array<i64: 8, 1024>}]} {
    %c0 = arith.constant 0 : index
    %c0_0 = arith.constant 0 : index
    %0 = vector.load %arg1[%c0, %c0_0] : memref<8x1024xbf16, #tpu.memory_space<vmem>>, vector<8x1024xbf16>
    %1 = arith.extf %0 : vector<8x1024xbf16> to vector<8x1024xf32>
    %c0_1 = arith.constant 0 : index
    %c0_2 = arith.constant 0 : index
    %c0_3 = arith.constant 0 : index
    %2 = vector.load %arg2[%c0_1, %c0_2, %c0_3] : memref<8x8x1024xbf16, #tpu.memory_space<vmem>>, vector<1x8x1024xbf16>
    %3 = vector.shape_cast %2 : vector<1x8x1024xbf16> to vector<8x1024xbf16>
    %4 = arith.extf %3 : vector<8x1024xbf16> to vector<8x1024xf32>
    %5 = arith.mulf %1, %4 : vector<8x1024xf32>
    %cst = arith.constant dense<0.000000e+00> : vector<1024xf32>
    %6 = vector.multi_reduction <add>, %5, %cst [0] : vector<8x1024xf32> to vector<1024xf32>
    %7 = vector.shape_cast %6 : vector<1024xf32> to vector<1x1024xf32>
    %c1 = arith.constant 1 : index
    %c0_4 = arith.constant 0 : index
    %c0_5 = arith.constant 0 : index
    %8 = vector.load %arg2[%c1, %c0_4, %c0_5] : memref<8x8x1024xbf16, #tpu.memory_space<vmem>>, vector<1x8x1024xbf16>
    %9 = vector.shape_cast %8 : vector<1x8x1024xbf16> to vector<8x1024xbf16>
    %10 = arith.extf %9 : vector<8x1024xbf16> to vector<8x1024xf32>
    %11 = arith.mulf %1, %10 : vector<8x1024xf32>
    %cst_6 = arith.constant dense<0.000000e+00> : vector<1024xf32>
    %12 = vector.multi_reduction <add>, %11, %cst_6 [0] : vector<8x1024xf32> to vector<1024xf32>
    %13 = vector.shape_cast %12 : vector<1024xf32> to vector<1x1024xf32>
    %c2 = arith.constant 2 : index
    %c0_7 = arith.constant 0 : index
    %c0_8 = arith.constant 0 : index
    %14 = vector.load %arg2[%c2, %c0_7, %c0_8] : memref<8x8x1024xbf16, #tpu.memory_space<vmem>>, vector<1x8x1024xbf16>
    %15 = vector.shape_cast %14 : vector<1x8x1024xbf16> to vector<8x1024xbf16>
    %16 = arith.extf %15 : vector<8x1024xbf16> to vector<8x1024xf32>
    %17 = arith.mulf %1, %16 : vector<8x1024xf32>
    %cst_9 = arith.constant dense<0.000000e+00> : vector<1024xf32>
    %18 = vector.multi_reduction <add>, %17, %cst_9 [0] : vector<8x1024xf32> to vector<1024xf32>
    %19 = vector.shape_cast %18 : vector<1024xf32> to vector<1x1024xf32>
    %c3 = arith.constant 3 : index
    %c0_10 = arith.constant 0 : index
    %c0_11 = arith.constant 0 : index
    %20 = vector.load %arg2[%c3, %c0_10, %c0_11] : memref<8x8x1024xbf16, #tpu.memory_space<vmem>>, vector<1x8x1024xbf16>
    %21 = vector.shape_cast %20 : vector<1x8x1024xbf16> to vector<8x1024xbf16>
    %22 = arith.extf %21 : vector<8x1024xbf16> to vector<8x1024xf32>
    %23 = arith.mulf %1, %22 : vector<8x1024xf32>
    %cst_12 = arith.constant dense<0.000000e+00> : vector<1024xf32>
    %24 = vector.multi_reduction <add>, %23, %cst_12 [0] : vector<8x1024xf32> to vector<1024xf32>
    %25 = vector.shape_cast %24 : vector<1024xf32> to vector<1x1024xf32>
    %c4 = arith.constant 4 : index
    %c0_13 = arith.constant 0 : index
    %c0_14 = arith.constant 0 : index
    %26 = vector.load %arg2[%c4, %c0_13, %c0_14] : memref<8x8x1024xbf16, #tpu.memory_space<vmem>>, vector<1x8x1024xbf16>
    %27 = vector.shape_cast %26 : vector<1x8x1024xbf16> to vector<8x1024xbf16>
    %28 = arith.extf %27 : vector<8x1024xbf16> to vector<8x1024xf32>
    %29 = arith.mulf %1, %28 : vector<8x1024xf32>
    %cst_15 = arith.constant dense<0.000000e+00> : vector<1024xf32>
    %30 = vector.multi_reduction <add>, %29, %cst_15 [0] : vector<8x1024xf32> to vector<1024xf32>
    %31 = vector.shape_cast %30 : vector<1024xf32> to vector<1x1024xf32>
    %c5 = arith.constant 5 : index
    %c0_16 = arith.constant 0 : index
    %c0_17 = arith.constant 0 : index
    %32 = vector.load %arg2[%c5, %c0_16, %c0_17] : memref<8x8x1024xbf16, #tpu.memory_space<vmem>>, vector<1x8x1024xbf16>
    %33 = vector.shape_cast %32 : vector<1x8x1024xbf16> to vector<8x1024xbf16>
    %34 = arith.extf %33 : vector<8x1024xbf16> to vector<8x1024xf32>
    %35 = arith.mulf %1, %34 : vector<8x1024xf32>
    %cst_18 = arith.constant dense<0.000000e+00> : vector<1024xf32>
    %36 = vector.multi_reduction <add>, %35, %cst_18 [0] : vector<8x1024xf32> to vector<1024xf32>
    %37 = vector.shape_cast %36 : vector<1024xf32> to vector<1x1024xf32>
    %c6 = arith.constant 6 : index
    %c0_19 = arith.constant 0 : index
    %c0_20 = arith.constant 0 : index
    %38 = vector.load %arg2[%c6, %c0_19, %c0_20] : memref<8x8x1024xbf16, #tpu.memory_space<vmem>>, vector<1x8x1024xbf16>
    %39 = vector.shape_cast %38 : vector<1x8x1024xbf16> to vector<8x1024xbf16>
    %40 = arith.extf %39 : vector<8x1024xbf16> to vector<8x1024xf32>
    %41 = arith.mulf %1, %40 : vector<8x1024xf32>
    %cst_21 = arith.constant dense<0.000000e+00> : vector<1024xf32>
    %42 = vector.multi_reduction <add>, %41, %cst_21 [0] : vector<8x1024xf32> to vector<1024xf32>
    %43 = vector.shape_cast %42 : vector<1024xf32> to vector<1x1024xf32>
    %c7 = arith.constant 7 : index
    %c0_22 = arith.constant 0 : index
    %c0_23 = arith.constant 0 : index
    %44 = vector.load %arg2[%c7, %c0_22, %c0_23] : memref<8x8x1024xbf16, #tpu.memory_space<vmem>>, vector<1x8x1024xbf16>
    %45 = vector.shape_cast %44 : vector<1x8x1024xbf16> to vector<8x1024xbf16>
    %46 = arith.extf %45 : vector<8x1024xbf16> to vector<8x1024xf32>
    %47 = arith.mulf %1, %46 : vector<8x1024xf32>
    %cst_24 = arith.constant dense<0.000000e+00> : vector<1024xf32>
    %48 = vector.multi_reduction <add>, %47, %cst_24 [0] : vector<8x1024xf32> to vector<1024xf32>
    %49 = vector.shape_cast %48 : vector<1024xf32> to vector<1x1024xf32>
    %50 = arith.maximumf %7, %13 : vector<1x1024xf32>
    %51 = arith.maximumf %50, %19 : vector<1x1024xf32>
    %52 = arith.maximumf %51, %25 : vector<1x1024xf32>
    %53 = arith.maximumf %52, %31 : vector<1x1024xf32>
    %54 = arith.maximumf %53, %37 : vector<1x1024xf32>
    %55 = arith.maximumf %54, %43 : vector<1x1024xf32>
    %56 = arith.maximumf %55, %49 : vector<1x1024xf32>
    %57 = arith.subf %7, %56 : vector<1x1024xf32>
    %58 = math.exp %57 : vector<1x1024xf32>
    %59 = arith.subf %13, %56 : vector<1x1024xf32>
    %60 = math.exp %59 : vector<1x1024xf32>
    %61 = arith.subf %19, %56 : vector<1x1024xf32>
    %62 = math.exp %61 : vector<1x1024xf32>
    %63 = arith.subf %25, %56 : vector<1x1024xf32>
    %64 = math.exp %63 : vector<1x1024xf32>
    %65 = arith.subf %31, %56 : vector<1x1024xf32>
    %66 = math.exp %65 : vector<1x1024xf32>
    %67 = arith.subf %37, %56 : vector<1x1024xf32>
    %68 = math.exp %67 : vector<1x1024xf32>
    %69 = arith.subf %43, %56 : vector<1x1024xf32>
    %70 = math.exp %69 : vector<1x1024xf32>
    %71 = arith.subf %49, %56 : vector<1x1024xf32>
    %72 = math.exp %71 : vector<1x1024xf32>
    %73 = arith.addf %58, %60 : vector<1x1024xf32>
    %74 = arith.addf %73, %62 : vector<1x1024xf32>
    %75 = arith.addf %74, %64 : vector<1x1024xf32>
    %76 = arith.addf %75, %66 : vector<1x1024xf32>
    %77 = arith.addf %76, %68 : vector<1x1024xf32>
    %78 = arith.addf %77, %70 : vector<1x1024xf32>
    %79 = arith.addf %78, %72 : vector<1x1024xf32>
    %80 = tpu.reciprocal %79 {approx = true} : vector<1x1024xf32> -> vector<1x1024xf32>
    %c0_25 = arith.constant 0 : index
    %c0_26 = arith.constant 0 : index
    %81 = vector.load %arg4[%c0_25, %c0_26] : memref<8x1024xf32, #tpu.memory_space<vmem>>, vector<8x1024xf32>
    %82 = arith.mulf %58, %80 : vector<1x1024xf32>
    %c0_27 = arith.constant 0 : index
    %c0_28 = arith.constant 0 : index
    %c0_29 = arith.constant 0 : index
    %83 = vector.load %arg3[%c0_27, %c0_28, %c0_29] : memref<8x8x1024xbf16, #tpu.memory_space<vmem>>, vector<1x8x1024xbf16>
    %84 = vector.shape_cast %83 : vector<1x8x1024xbf16> to vector<8x1024xbf16>
    %85 = arith.extf %84 : vector<8x1024xbf16> to vector<8x1024xf32>
    %86 = vector.broadcast %82 : vector<1x1024xf32> to vector<8x1024xf32>
    %87 = arith.mulf %86, %85 : vector<8x1024xf32>
    %88 = arith.addf %81, %87 : vector<8x1024xf32>
    %89 = arith.mulf %60, %80 : vector<1x1024xf32>
    %c1_30 = arith.constant 1 : index
    %c0_31 = arith.constant 0 : index
    %c0_32 = arith.constant 0 : index
    %90 = vector.load %arg3[%c1_30, %c0_31, %c0_32] : memref<8x8x1024xbf16, #tpu.memory_space<vmem>>, vector<1x8x1024xbf16>
    %91 = vector.shape_cast %90 : vector<1x8x1024xbf16> to vector<8x1024xbf16>
    %92 = arith.extf %91 : vector<8x1024xbf16> to vector<8x1024xf32>
    %93 = vector.broadcast %89 : vector<1x1024xf32> to vector<8x1024xf32>
    %94 = arith.mulf %93, %92 : vector<8x1024xf32>
    %95 = arith.addf %88, %94 : vector<8x1024xf32>
    %96 = arith.mulf %62, %80 : vector<1x1024xf32>
    %c2_33 = arith.constant 2 : index
    %c0_34 = arith.constant 0 : index
    %c0_35 = arith.constant 0 : index
    %97 = vector.load %arg3[%c2_33, %c0_34, %c0_35] : memref<8x8x1024xbf16, #tpu.memory_space<vmem>>, vector<1x8x1024xbf16>
    %98 = vector.shape_cast %97 : vector<1x8x1024xbf16> to vector<8x1024xbf16>
    %99 = arith.extf %98 : vector<8x1024xbf16> to vector<8x1024xf32>
    %100 = vector.broadcast %96 : vector<1x1024xf32> to vector<8x1024xf32>
    %101 = arith.mulf %100, %99 : vector<8x1024xf32>
    %102 = arith.addf %95, %101 : vector<8x1024xf32>
    %103 = arith.mulf %64, %80 : vector<1x1024xf32>
    %c3_36 = arith.constant 3 : index
    %c0_37 = arith.constant 0 : index
    %c0_38 = arith.constant 0 : index
    %104 = vector.load %arg3[%c3_36, %c0_37, %c0_38] : memref<8x8x1024xbf16, #tpu.memory_space<vmem>>, vector<1x8x1024xbf16>
    %105 = vector.shape_cast %104 : vector<1x8x1024xbf16> to vector<8x1024xbf16>
    %106 = arith.extf %105 : vector<8x1024xbf16> to vector<8x1024xf32>
    %107 = vector.broadcast %103 : vector<1x1024xf32> to vector<8x1024xf32>
    %108 = arith.mulf %107, %106 : vector<8x1024xf32>
    %109 = arith.addf %102, %108 : vector<8x1024xf32>
    %110 = arith.mulf %66, %80 : vector<1x1024xf32>
    %c4_39 = arith.constant 4 : index
    %c0_40 = arith.constant 0 : index
    %c0_41 = arith.constant 0 : index
    %111 = vector.load %arg3[%c4_39, %c0_40, %c0_41] : memref<8x8x1024xbf16, #tpu.memory_space<vmem>>, vector<1x8x1024xbf16>
    %112 = vector.shape_cast %111 : vector<1x8x1024xbf16> to vector<8x1024xbf16>
    %113 = arith.extf %112 : vector<8x1024xbf16> to vector<8x1024xf32>
    %114 = vector.broadcast %110 : vector<1x1024xf32> to vector<8x1024xf32>
    %115 = arith.mulf %114, %113 : vector<8x1024xf32>
    %116 = arith.addf %109, %115 : vector<8x1024xf32>
    %117 = arith.mulf %68, %80 : vector<1x1024xf32>
    %c5_42 = arith.constant 5 : index
    %c0_43 = arith.constant 0 : index
    %c0_44 = arith.constant 0 : index
    %118 = vector.load %arg3[%c5_42, %c0_43, %c0_44] : memref<8x8x1024xbf16, #tpu.memory_space<vmem>>, vector<1x8x1024xbf16>
    %119 = vector.shape_cast %118 : vector<1x8x1024xbf16> to vector<8x1024xbf16>
    %120 = arith.extf %119 : vector<8x1024xbf16> to vector<8x1024xf32>
    %121 = vector.broadcast %117 : vector<1x1024xf32> to vector<8x1024xf32>
    %122 = arith.mulf %121, %120 : vector<8x1024xf32>
    %123 = arith.addf %116, %122 : vector<8x1024xf32>
    %124 = arith.mulf %70, %80 : vector<1x1024xf32>
    %c6_45 = arith.constant 6 : index
    %c0_46 = arith.constant 0 : index
    %c0_47 = arith.constant 0 : index
    %125 = vector.load %arg3[%c6_45, %c0_46, %c0_47] : memref<8x8x1024xbf16, #tpu.memory_space<vmem>>, vector<1x8x1024xbf16>
    %126 = vector.shape_cast %125 : vector<1x8x1024xbf16> to vector<8x1024xbf16>
    %127 = arith.extf %126 : vector<8x1024xbf16> to vector<8x1024xf32>
    %128 = vector.broadcast %124 : vector<1x1024xf32> to vector<8x1024xf32>
    %129 = arith.mulf %128, %127 : vector<8x1024xf32>
    %130 = arith.addf %123, %129 : vector<8x1024xf32>
    %131 = arith.mulf %72, %80 : vector<1x1024xf32>
    %c7_48 = arith.constant 7 : index
    %c0_49 = arith.constant 0 : index
    %c0_50 = arith.constant 0 : index
    %132 = vector.load %arg3[%c7_48, %c0_49, %c0_50] : memref<8x8x1024xbf16, #tpu.memory_space<vmem>>, vector<1x8x1024xbf16>
    %133 = vector.shape_cast %132 : vector<1x8x1024xbf16> to vector<8x1024xbf16>
    %134 = arith.extf %133 : vector<8x1024xbf16> to vector<8x1024xf32>
    %135 = vector.broadcast %131 : vector<1x1024xf32> to vector<8x1024xf32>
    %136 = arith.mulf %135, %134 : vector<8x1024xf32>
    %137 = arith.addf %130, %136 : vector<8x1024xf32>
    %c0_51 = arith.constant 0 : index
    %c0_52 = arith.constant 0 : index
    %138 = vector.load %arg5[%c0_51, %c0_52] : memref<8x1024xf32, #tpu.memory_space<vmem>>, vector<8x1024xf32>
    tpu.vector_store %arg5[%c0_51, %c0_52], %137 {strides = array<i32>} : memref<8x1024xf32, #tpu.memory_space<vmem>>, vector<8x1024xf32>,
    return
  }
  func.func @transform_0(%arg0: i32) -> (i32, i32) {
    %c0_i32 = arith.constant 0 : i32
    %c0_i32_0 = arith.constant 0 : i32
    return %c0_i32, %arg0 : i32, i32
  }
  func.func @transform_1(%arg0: i32) -> (i32, i32, i32) {
    %c0_i32 = arith.constant 0 : i32
    %c0_i32_0 = arith.constant 0 : i32
    %c0_i32_1 = arith.constant 0 : i32
    return %c0_i32, %c0_i32_0, %arg0 : i32, i32, i32
  }
  func.func @transform_2(%arg0: i32) -> (i32, i32, i32) {
    %c0_i32 = arith.constant 0 : i32
    %c0_i32_0 = arith.constant 0 : i32
    %c0_i32_1 = arith.constant 0 : i32
    return %c0_i32, %c0_i32_0, %arg0 : i32, i32, i32
  }
  func.func @transform_3(%arg0: i32) -> (i32, i32) {
    %c0_i32 = arith.constant 0 : i32
    %c0_i32_0 = arith.constant 0 : i32
    return %c0_i32, %arg0 : i32, i32
  }
  func.func @transform_4(%arg0: i32) -> (i32, i32) {
    %c0_i32 = arith.constant 0 : i32
    %c0_i32_0 = arith.constant 0 : i32
    return %c0_i32, %arg0 : i32, i32
  }
}

</mosaic_0001>

<bundles_post_ra>
// kernel: mixing_self_att_forward.2
= control target key start
LH: loop header
LB: loop body
LE: loop exit
PB: predicated region body
PF: predicated region fallthrough
CT: control target
= control target key end

     0   :  { %s2073_s18 = smov 0   ;;  %s2075_s19 = smov 0   ;;  %s2570_s0 = inlined_call_operand.vmem [shape: bf16[216,2048], index: 0, kind: input, shape index: {}]   ;;  %s2571_s1 = inlined_call_operand.vmem [shape: bf16[8,216], index: 1, kind: input, shape index: {}]   ;;  %s2572_s2 = inlined_call_operand.vmem [shape: f32[8,1], index: 2, kind: input, shape index: {}]   ;;  %s2573_s3 = inlined_call_operand.vmem [shape: bf16[24,8], index: 3, kind: input, shape index: {}]   ;;  %s2574_s4 = inlined_call_operand.vmem [shape: f32[24,1], index: 4, kind: input, shape index: {}]   ;;  %s2575_s5 = inlined_call_operand.vmem [shape: bf16[24,2048], index: 5, kind: output, shape index: {}]  }
   0x1   :  { %s2077_s20 = smov 0  }
   0x2 LB: > { %s1803_s21 = sadd.s32 4294967295, %s2040_s20   ;;  %s2090_s22 = sadd.s32 1, %s2040_s20   ;;  %s2040_s20 = sphi %s2077_s20, %s2579_s20   ;;  %s2036_s19 = sphi %s2075_s19, %s2578_s19   ;;  %s2032_s18 = sphi %s2073_s18, %s2577_s18  }
   0x3   : > { %s19_s23 = ssub.s32 %s2040_s20, %s2090_s22  ;;  %s22_s24 = sadd.s32 1, %s2036_s19 }
   0x4   : > { %p20_p0 = scmp.eq.s32.totalorder %s19_s23, 0  ;;  %p29_p1 = scmp.ne.s32.totalorder %s2036_s19, %s2032_s18 }
   0x5   : > { %p30_p2 = scmp.eq.s32.totalorder %s2040_s20, 0  ;;  %p143_p3 = scmp.eq.s32.totalorder %s1803_s21, 1 }
   0x6   : > { %s2101_s25 = scalar_select %p20_p0, %s2036_s19, %s22_s24  }
   0x7   : > { %p31_p4 = por %p30_p2, %p29_p1  ;;  %p2103_p5 = por %p143_p3, %p29_p1 }
   0x8   : > { %p1806_p6 = scmp.ge.s32.totalorder %s2040_s20, 2 }
   0xa   : > { %177 = sbr.rel (%p1806_p6) target bundleno = 74 (0x4a), region = 32 }
   0xf   : > { %180 = sbr.rel (!%p31_p4) target bundleno = 74 (0x4a), region = 36  ;;  %s182_s27 = sand.u32 (%p31_p4), 1, %s2036_s19  }
  0x10   : > { %s1962_s28 = sshll.u32 (%p31_p4), %s2040_s20, 5  ;;  %s1976_s29 = smul.u32 (%p31_p4), 864, %s182_s27 }
  0x11   : > { %s2113_s7 = scalar_lea.vmem (%p31_p4), %s2570_s0, %s1962_s28 }
  0x12   : > { %v200_v0 = vld [vmem:[%s2113_s7] sm:$0xff] (%p31_p4)  ;;  %v202_v1 = vld [vmem:[%s2113_s7 + $0x8] sm:$0xff] (%p31_p4)  ;;  %v204_v2 = vld [vmem:[%s2113_s7 + $0x10] sm:$0xff] (%p31_p4)  ;;  %s2121_s8 = scalar_lea.vmem (%p31_p4), [#allocation2], %s1976_s29 }
  0x13   : > { %v206_v3 = vld [vmem:[%s2113_s7 + $0x18] sm:$0xff] (%p31_p4)  ;;  %v208_v4 = vld [vmem:[%s2113_s7 + $0x40] sm:$0xff] (%p31_p4)  ;;  %v210_v5 = vld [vmem:[%s2113_s7 + $0x48] sm:$0xff] (%p31_p4)  ;;  %201 = vst [vmem:[%s2121_s8] sm:$0xff] (%p31_p4), %v200_v0 }
  0x14   : > { %203 = vst [vmem:[%s2121_s8 + $0x8] sm:$0xff] %v202_v1  ;;  %205 = vst [vmem:[%s2121_s8 + $0x10] sm:$0xff] %v204_v2  ;;  %v212_v6 = vld [vmem:[%s2113_s7 + $0x50] sm:$0xff]  ;;  %v214_v7 = vld [vmem:[%s2113_s7 + $0x58] sm:$0xff] }
  0x15   : > { %207 = vst [vmem:[%s2121_s8 + $0x18] sm:$0xff] %v206_v3  ;;  %209 = vst [vmem:[%s2121_s8 + $0x20] sm:$0xff] %v208_v4  ;;  %v216_v8 = vld [vmem:[%s2113_s7 + $0x80] sm:$0xff]  ;;  %v218_v9 = vld [vmem:[%s2113_s7 + $0x88] sm:$0xff] }
  0x16   : > { %211 = vst [vmem:[%s2121_s8 + $0x28] sm:$0xff] %v210_v5  ;;  %213 = vst [vmem:[%s2121_s8 + $0x30] sm:$0xff] %v212_v6  ;;  %v220_v10 = vld [vmem:[%s2113_s7 + $0x90] sm:$0xff]  ;;  %v222_v11 = vld [vmem:[%s2113_s7 + $0x98] sm:$0xff] }
  0x17   : > { %215 = vst [vmem:[%s2121_s8 + $0x38] sm:$0xff] %v214_v7  ;;  %217 = vst [vmem:[%s2121_s8 + $0x40] sm:$0xff] %v216_v8  ;;  %v224_v12 = vld [vmem:[%s2113_s7 + $0xc0] sm:$0xff]  ;;  %v226_v13 = vld [vmem:[%s2113_s7 + $0xc8] sm:$0xff] }
  0x18   : > { %219 = vst [vmem:[%s2121_s8 + $0x48] sm:$0xff] %v218_v9  ;;  %221 = vst [vmem:[%s2121_s8 + $0x50] sm:$0xff] %v220_v10  ;;  %v228_v14 = vld [vmem:[%s2113_s7 + $0xd0] sm:$0xff]  ;;  %v230_v15 = vld [vmem:[%s2113_s7 + $0xd8] sm:$0xff] }
  0x19   : > { %223 = vst [vmem:[%s2121_s8 + $0x58] sm:$0xff] %v222_v11  ;;  %225 = vst [vmem:[%s2121_s8 + $0x60] sm:$0xff] %v224_v12  ;;  %v232_v16 = vld [vmem:[%s2113_s7 + $0x100] sm:$0xff]  ;;  %v234_v17 = vld [vmem:[%s2113_s7 + $0x108] sm:$0xff] }
  0x1a   : > { %227 = vst [vmem:[%s2121_s8 + $0x68] sm:$0xff] %v226_v13  ;;  %229 = vst [vmem:[%s2121_s8 + $0x70] sm:$0xff] %v228_v14  ;;  %v236_v18 = vld [vmem:[%s2113_s7 + $0x110] sm:$0xff]  ;;  %v238_v19 = vld [vmem:[%s2113_s7 + $0x118] sm:$0xff] }
  0x1b   : > { %231 = vst [vmem:[%s2121_s8 + $0x78] sm:$0xff] %v230_v15  ;;  %233 = vst [vmem:[%s2121_s8 + $0x80] sm:$0xff] %v232_v16  ;;  %v240_v20 = vld [vmem:[%s2113_s7 + $0x140] sm:$0xff]  ;;  %v242_v21 = vld [vmem:[%s2113_s7 + $0x148] sm:$0xff] }
  0x1c   : > { %235 = vst [vmem:[%s2121_s8 + $0x88] sm:$0xff] %v234_v17  ;;  %237 = vst [vmem:[%s2121_s8 + $0x90] sm:$0xff] %v236_v18  ;;  %v244_v22 = vld [vmem:[%s2113_s7 + $0x150] sm:$0xff]  ;;  %v246_v23 = vld [vmem:[%s2113_s7 + $0x158] sm:$0xff] }
  0x1d   : > { %239 = vst [vmem:[%s2121_s8 + $0x98] sm:$0xff] %v238_v19  ;;  %241 = vst [vmem:[%s2121_s8 + $0xa0] sm:$0xff] %v240_v20  ;;  %v248_v24 = vld [vmem:[%s2113_s7 + $0x180] sm:$0xff]  ;;  %v250_v25 = vld [vmem:[%s2113_s7 + $0x188] sm:$0xff] }
  0x1e   : > { %243 = vst [vmem:[%s2121_s8 + $0xa8] sm:$0xff] %v242_v21  ;;  %245 = vst [vmem:[%s2121_s8 + $0xb0] sm:$0xff] %v244_v22  ;;  %v252_v26 = vld [vmem:[%s2113_s7 + $0x190] sm:$0xff]  ;;  %v254_v27 = vld [vmem:[%s2113_s7 + $0x198] sm:$0xff] }
  0x1f   : > { %247 = vst [vmem:[%s2121_s8 + $0xb8] sm:$0xff] %v246_v23  ;;  %249 = vst [vmem:[%s2121_s8 + $0xc0] sm:$0xff] %v248_v24  ;;  %v256_v28 = vld [vmem:[%s2113_s7 + $0x1c0] sm:$0xff]  ;;  %v258_v29 = vld [vmem:[%s2113_s7 + $0x1c8] sm:$0xff] }
  0x20   : > { %251 = vst [vmem:[%s2121_s8 + $0xc8] sm:$0xff] %v250_v25  ;;  %253 = vst [vmem:[%s2121_s8 + $0xd0] sm:$0xff] %v252_v26  ;;  %v260_v30 = vld [vmem:[%s2113_s7 + $0x1d0] sm:$0xff]  ;;  %v262_v31 = vld [vmem:[%s2113_s7 + $0x1d8] sm:$0xff] }
  0x21   : > { %255 = vst [vmem:[%s2121_s8 + $0xd8] sm:$0xff] %v254_v27  ;;  %257 = vst [vmem:[%s2121_s8 + $0xe0] sm:$0xff] %v256_v28  ;;  %v264_v32 = vld [vmem:[%s2113_s7 + $0x200] sm:$0xff]  ;;  %v266_v33 = vld [vmem:[%s2113_s7 + $0x208] sm:$0xff] }
  0x22   : > { %259 = vst [vmem:[%s2121_s8 + $0xe8] sm:$0xff] %v258_v29  ;;  %261 = vst [vmem:[%s2121_s8 + $0xf0] sm:$0xff] %v260_v30  ;;  %v268_v34 = vld [vmem:[%s2113_s7 + $0x210] sm:$0xff]  ;;  %v270_v35 = vld [vmem:[%s2113_s7 + $0x218] sm:$0xff] }
  0x23   : > { %263 = vst [vmem:[%s2121_s8 + $0xf8] sm:$0xff] %v262_v31  ;;  %265 = vst [vmem:[%s2121_s8 + $0x100] sm:$0xff] %v264_v32  ;;  %v272_v36 = vld [vmem:[%s2113_s7 + $0x240] sm:$0xff]  ;;  %v274_v37 = vld [vmem:[%s2113_s7 + $0x248] sm:$0xff] }
  0x24   : > { %267 = vst [vmem:[%s2121_s8 + $0x108] sm:$0xff] %v266_v33  ;;  %269 = vst [vmem:[%s2121_s8 + $0x110] sm:$0xff] %v268_v34  ;;  %v276_v38 = vld [vmem:[%s2113_s7 + $0x250] sm:$0xff]  ;;  %v278_v39 = vld [vmem:[%s2113_s7 + $0x258] sm:$0xff] }
  0x25   : > { %271 = vst [vmem:[%s2121_s8 + $0x118] sm:$0xff] %v270_v35  ;;  %273 = vst [vmem:[%s2121_s8 + $0x120] sm:$0xff] %v272_v36  ;;  %v280_v40 = vld [vmem:[%s2113_s7 + $0x280] sm:$0xff]  ;;  %v282_v41 = vld [vmem:[%s2113_s7 + $0x288] sm:$0xff] }
  0x26   : > { %275 = vst [vmem:[%s2121_s8 + $0x128] sm:$0xff] %v274_v37  ;;  %277 = vst [vmem:[%s2121_s8 + $0x130] sm:$0xff] %v276_v38  ;;  %v284_v42 = vld [vmem:[%s2113_s7 + $0x290] sm:$0xff]  ;;  %v286_v43 = vld [vmem:[%s2113_s7 + $0x298] sm:$0xff] }
  0x27   : > { %279 = vst [vmem:[%s2121_s8 + $0x138] sm:$0xff] %v278_v39  ;;  %281 = vst [vmem:[%s2121_s8 + $0x140] sm:$0xff] %v280_v40  ;;  %v288_v44 = vld [vmem:[%s2113_s7 + $0x2c0] sm:$0xff]  ;;  %v290_v45 = vld [vmem:[%s2113_s7 + $0x2c8] sm:$0xff] }
  0x28   : > { %283 = vst [vmem:[%s2121_s8 + $0x148] sm:$0xff] %v282_v41  ;;  %285 = vst [vmem:[%s2121_s8 + $0x150] sm:$0xff] %v284_v42  ;;  %v292_v46 = vld [vmem:[%s2113_s7 + $0x2d0] sm:$0xff]  ;;  %v294_v47 = vld [vmem:[%s2113_s7 + $0x2d8] sm:$0xff] }
  0x29   : > { %287 = vst [vmem:[%s2121_s8 + $0x158] sm:$0xff] %v286_v43  ;;  %289 = vst [vmem:[%s2121_s8 + $0x160] sm:$0xff] %v288_v44  ;;  %v296_v48 = vld [vmem:[%s2113_s7 + $0x300] sm:$0xff]  ;;  %v298_v49 = vld [vmem:[%s2113_s7 + $0x308] sm:$0xff] }
  0x2a   : > { %291 = vst [vmem:[%s2121_s8 + $0x168] sm:$0xff] %v290_v45  ;;  %293 = vst [vmem:[%s2121_s8 + $0x170] sm:$0xff] %v292_v46  ;;  %v300_v50 = vld [vmem:[%s2113_s7 + $0x310] sm:$0xff]  ;;  %v302_v51 = vld [vmem:[%s2113_s7 + $0x318] sm:$0xff] }
  0x2b   : > { %295 = vst [vmem:[%s2121_s8 + $0x178] sm:$0xff] %v294_v47  ;;  %297 = vst [vmem:[%s2121_s8 + $0x180] sm:$0xff] %v296_v48  ;;  %v304_v52 = vld [vmem:[%s2113_s7 + $0x340] sm:$0xff]  ;;  %v306_v53 = vld [vmem:[%s2113_s7 + $0x348] sm:$0xff] }
  0x2c   : > { %299 = vst [vmem:[%s2121_s8 + $0x188] sm:$0xff] %v298_v49  ;;  %301 = vst [vmem:[%s2121_s8 + $0x190] sm:$0xff] %v300_v50  ;;  %v308_v54 = vld [vmem:[%s2113_s7 + $0x350] sm:$0xff]  ;;  %v310_v55 = vld [vmem:[%s2113_s7 + $0x358] sm:$0xff] }
  0x2d   : > { %303 = vst [vmem:[%s2121_s8 + $0x198] sm:$0xff] %v302_v51  ;;  %305 = vst [vmem:[%s2121_s8 + $0x1a0] sm:$0xff] %v304_v52  ;;  %v312_v56 = vld [vmem:[%s2113_s7 + $0x380] sm:$0xff]  ;;  %v314_v57 = vld [vmem:[%s2113_s7 + $0x388] sm:$0xff] }
  0x2e   : > { %307 = vst [vmem:[%s2121_s8 + $0x1a8] sm:$0xff] %v306_v53  ;;  %309 = vst [vmem:[%s2121_s8 + $0x1b0] sm:$0xff] %v308_v54  ;;  %v316_v58 = vld [vmem:[%s2113_s7 + $0x390] sm:$0xff]  ;;  %v318_v59 = vld [vmem:[%s2113_s7 + $0x398] sm:$0xff] }
  0x2f   : > { %311 = vst [vmem:[%s2121_s8 + $0x1b8] sm:$0xff] %v310_v55  ;;  %313 = vst [vmem:[%s2121_s8 + $0x1c0] sm:$0xff] %v312_v56  ;;  %v320_v60 = vld [vmem:[%s2113_s7 + $0x3c0] sm:$0xff]  ;;  %v322_v61 = vld [vmem:[%s2113_s7 + $0x3c8] sm:$0xff] }
  0x30   : > { %315 = vst [vmem:[%s2121_s8 + $0x1c8] sm:$0xff] %v314_v57  ;;  %317 = vst [vmem:[%s2121_s8 + $0x1d0] sm:$0xff] %v316_v58  ;;  %v324_v62 = vld [vmem:[%s2113_s7 + $0x3d0] sm:$0xff]  ;;  %v326_v63 = vld [vmem:[%s2113_s7 + $0x3d8] sm:$0xff] }
  0x31   : > { %319 = vst [vmem:[%s2121_s8 + $0x1d8] sm:$0xff] %v318_v59  ;;  %321 = vst [vmem:[%s2121_s8 + $0x1e0] sm:$0xff] %v320_v60  ;;  %v328_v0 = vld [vmem:[%s2113_s7 + $0x400] sm:$0xff]  ;;  %v330_v1 = vld [vmem:[%s2113_s7 + $0x408] sm:$0xff] }
  0x32   : > { %323 = vst [vmem:[%s2121_s8 + $0x1e8] sm:$0xff] %v322_v61  ;;  %325 = vst [vmem:[%s2121_s8 + $0x1f0] sm:$0xff] %v324_v62  ;;  %v332_v2 = vld [vmem:[%s2113_s7 + $0x410] sm:$0xff]  ;;  %v334_v3 = vld [vmem:[%s2113_s7 + $0x418] sm:$0xff] }
  0x33   : > { %327 = vst [vmem:[%s2121_s8 + $0x1f8] sm:$0xff] %v326_v63  ;;  %329 = vst [vmem:[%s2121_s8 + $0x200] sm:$0xff] %v328_v0  ;;  %v336_v4 = vld [vmem:[%s2113_s7 + $0x440] sm:$0xff]  ;;  %v338_v5 = vld [vmem:[%s2113_s7 + $0x448] sm:$0xff] }
  0x34   : > { %331 = vst [vmem:[%s2121_s8 + $0x208] sm:$0xff] %v330_v1  ;;  %333 = vst [vmem:[%s2121_s8 + $0x210] sm:$0xff] %v332_v2  ;;  %v340_v6 = vld [vmem:[%s2113_s7 + $0x450] sm:$0xff]  ;;  %v342_v7 = vld [vmem:[%s2113_s7 + $0x458] sm:$0xff] }
  0x35   : > { %335 = vst [vmem:[%s2121_s8 + $0x218] sm:$0xff] %v334_v3  ;;  %337 = vst [vmem:[%s2121_s8 + $0x220] sm:$0xff] %v336_v4  ;;  %v344_v8 = vld [vmem:[%s2113_s7 + $0x480] sm:$0xff]  ;;  %v346_v9 = vld [vmem:[%s2113_s7 + $0x488] sm:$0xff] }
  0x36   : > { %339 = vst [vmem:[%s2121_s8 + $0x228] sm:$0xff] %v338_v5  ;;  %341 = vst [vmem:[%s2121_s8 + $0x230] sm:$0xff] %v340_v6  ;;  %v348_v10 = vld [vmem:[%s2113_s7 + $0x490] sm:$0xff]  ;;  %v350_v11 = vld [vmem:[%s2113_s7 + $0x498] sm:$0xff] }
  0x37   : > { %343 = vst [vmem:[%s2121_s8 + $0x238] sm:$0xff] %v342_v7  ;;  %345 = vst [vmem:[%s2121_s8 + $0x240] sm:$0xff] %v344_v8  ;;  %v352_v12 = vld [vmem:[%s2113_s7 + $0x4c0] sm:$0xff]  ;;  %v354_v13 = vld [vmem:[%s2113_s7 + $0x4c8] sm:$0xff] }
  0x38   : > { %347 = vst [vmem:[%s2121_s8 + $0x248] sm:$0xff] %v346_v9  ;;  %349 = vst [vmem:[%s2121_s8 + $0x250] sm:$0xff] %v348_v10  ;;  %v356_v14 = vld [vmem:[%s2113_s7 + $0x4d0] sm:$0xff]  ;;  %v358_v15 = vld [vmem:[%s2113_s7 + $0x4d8] sm:$0xff] }
  0x39   : > { %351 = vst [vmem:[%s2121_s8 + $0x258] sm:$0xff] %v350_v11  ;;  %353 = vst [vmem:[%s2121_s8 + $0x260] sm:$0xff] %v352_v12  ;;  %v360_v16 = vld [vmem:[%s2113_s7 + $0x500] sm:$0xff]  ;;  %v362_v17 = vld [vmem:[%s2113_s7 + $0x508] sm:$0xff] }
  0x3a   : > { %355 = vst [vmem:[%s2121_s8 + $0x268] sm:$0xff] %v354_v13  ;;  %357 = vst [vmem:[%s2121_s8 + $0x270] sm:$0xff] %v356_v14  ;;  %v364_v18 = vld [vmem:[%s2113_s7 + $0x510] sm:$0xff]  ;;  %v366_v19 = vld [vmem:[%s2113_s7 + $0x518] sm:$0xff] }
  0x3b   : > { %359 = vst [vmem:[%s2121_s8 + $0x278] sm:$0xff] %v358_v15  ;;  %361 = vst [vmem:[%s2121_s8 + $0x280] sm:$0xff] %v360_v16  ;;  %v368_v20 = vld [vmem:[%s2113_s7 + $0x540] sm:$0xff]  ;;  %v370_v21 = vld [vmem:[%s2113_s7 + $0x548] sm:$0xff] }
  0x3c   : > { %363 = vst [vmem:[%s2121_s8 + $0x288] sm:$0xff] %v362_v17  ;;  %365 = vst [vmem:[%s2121_s8 + $0x290] sm:$0xff] %v364_v18  ;;  %v372_v22 = vld [vmem:[%s2113_s7 + $0x550] sm:$0xff]  ;;  %v374_v23 = vld [vmem:[%s2113_s7 + $0x558] sm:$0xff] }
  0x3d   : > { %367 = vst [vmem:[%s2121_s8 + $0x298] sm:$0xff] %v366_v19  ;;  %369 = vst [vmem:[%s2121_s8 + $0x2a0] sm:$0xff] %v368_v20  ;;  %v376_v24 = vld [vmem:[%s2113_s7 + $0x580] sm:$0xff]  ;;  %v378_v25 = vld [vmem:[%s2113_s7 + $0x588] sm:$0xff] }
  0x3e   : > { %371 = vst [vmem:[%s2121_s8 + $0x2a8] sm:$0xff] %v370_v21  ;;  %373 = vst [vmem:[%s2121_s8 + $0x2b0] sm:$0xff] %v372_v22  ;;  %v380_v26 = vld [vmem:[%s2113_s7 + $0x590] sm:$0xff]  ;;  %v382_v27 = vld [vmem:[%s2113_s7 + $0x598] sm:$0xff] }
  0x3f   : > { %375 = vst [vmem:[%s2121_s8 + $0x2b8] sm:$0xff] %v374_v23  ;;  %377 = vst [vmem:[%s2121_s8 + $0x2c0] sm:$0xff] %v376_v24  ;;  %v384_v28 = vld [vmem:[%s2113_s7 + $0x5c0] sm:$0xff]  ;;  %v386_v29 = vld [vmem:[%s2113_s7 + $0x5c8] sm:$0xff] }
  0x40   : > { %379 = vst [vmem:[%s2121_s8 + $0x2c8] sm:$0xff] %v378_v25  ;;  %381 = vst [vmem:[%s2121_s8 + $0x2d0] sm:$0xff] %v380_v26  ;;  %v388_v30 = vld [vmem:[%s2113_s7 + $0x5d0] sm:$0xff]  ;;  %v390_v31 = vld [vmem:[%s2113_s7 + $0x5d8] sm:$0xff] }
  0x41   : > { %383 = vst [vmem:[%s2121_s8 + $0x2d8] sm:$0xff] %v382_v27  ;;  %385 = vst [vmem:[%s2121_s8 + $0x2e0] sm:$0xff] %v384_v28  ;;  %v392_v32 = vld [vmem:[%s2113_s7 + $0x600] sm:$0xff]  ;;  %v394_v33 = vld [vmem:[%s2113_s7 + $0x608] sm:$0xff] }
  0x42   : > { %387 = vst [vmem:[%s2121_s8 + $0x2e8] sm:$0xff] %v386_v29  ;;  %389 = vst [vmem:[%s2121_s8 + $0x2f0] sm:$0xff] %v388_v30  ;;  %v396_v34 = vld [vmem:[%s2113_s7 + $0x610] sm:$0xff]  ;;  %v398_v35 = vld [vmem:[%s2113_s7 + $0x618] sm:$0xff] }
  0x43   : > { %391 = vst [vmem:[%s2121_s8 + $0x2f8] sm:$0xff] %v390_v31  ;;  %393 = vst [vmem:[%s2121_s8 + $0x300] sm:$0xff] %v392_v32  ;;  %v400_v36 = vld [vmem:[%s2113_s7 + $0x640] sm:$0xff]  ;;  %v402_v37 = vld [vmem:[%s2113_s7 + $0x648] sm:$0xff] }
  0x44   : > { %395 = vst [vmem:[%s2121_s8 + $0x308] sm:$0xff] %v394_v33  ;;  %397 = vst [vmem:[%s2121_s8 + $0x310] sm:$0xff] %v396_v34  ;;  %v404_v38 = vld [vmem:[%s2113_s7 + $0x650] sm:$0xff]  ;;  %v406_v39 = vld [vmem:[%s2113_s7 + $0x658] sm:$0xff] }
  0x45   : > { %399 = vst [vmem:[%s2121_s8 + $0x318] sm:$0xff] %v398_v35  ;;  %401 = vst [vmem:[%s2121_s8 + $0x320] sm:$0xff] %v400_v36  ;;  %v408_v40 = vld [vmem:[%s2113_s7 + $0x680] sm:$0xff]  ;;  %v410_v41 = vld [vmem:[%s2113_s7 + $0x688] sm:$0xff] }
  0x46   : > { %403 = vst [vmem:[%s2121_s8 + $0x328] sm:$0xff] %v402_v37  ;;  %405 = vst [vmem:[%s2121_s8 + $0x330] sm:$0xff] %v404_v38  ;;  %v412_v42 = vld [vmem:[%s2113_s7 + $0x690] sm:$0xff]  ;;  %v414_v43 = vld [vmem:[%s2113_s7 + $0x698] sm:$0xff] }
  0x47   : > { %407 = vst [vmem:[%s2121_s8 + $0x338] sm:$0xff] %v406_v39  ;;  %409 = vst [vmem:[%s2121_s8 + $0x340] sm:$0xff] %v408_v40 }
  0x48   : > { %411 = vst [vmem:[%s2121_s8 + $0x348] sm:$0xff] %v410_v41  ;;  %413 = vst [vmem:[%s2121_s8 + $0x350] sm:$0xff] %v412_v42 }
  0x49   : > { %415 = vst [vmem:[%s2121_s8 + $0x358] sm:$0xff] %v414_v43 }
  0x4a PF: > { %p1809_p7 = scmp.ge.s32.totalorder %s2040_s20, 1  ;;  %p420_p8 = scmp.lt.s32.totalorder %s2040_s20, 3 }
  0x4c   : > { %p421_p9 = pnand %p1809_p7, %p420_p8 }
  0x4d   : > { %s427_s9 = sand.u32 (!%p421_p9), 1, %s2032_s18  }
  0x4e   : > { %424 = sbr.rel (%p421_p9) target bundleno = 624 (0x270), region = 59 }
  0x4f   : > { %s1977_s14 = smul.u32 (!%p421_p9), 864, %s427_s9 }
  0x50   : > { %s1978_s8 = smul.u32 (!%p421_p9), 96, %s427_s9 }
  0x51   : > { %s2359_s17 = scalar_lea.vmem (!%p421_p9), [#allocation2], %s1977_s14 }
  0x52   : > { %s2527_s10 = scalar_lea.vmem (!%p421_p9), [#allocation3], %s1978_s8 }
  0x53   : > { %v2339_v44 = vld [vmem:[%s2571_s1] sm:$0xff]  ;;  %vm1117_vm0 = vcmask 719872   ;;  %v2042_v47 = vmov 0   ;;  %v514_v51 = vld [vmem:[%s2359_s17 + $0x1c8] sm:$0xff]  ;;  %vm1121_vm1 = vcmask 1043456   ;;  %vm1371_vm6 = vcmask 64512  }
  0x54   : > { %v565_v45 = vld [vmem:[%s2572_s2] sm:$0xff]  ;;  %v2348_v46 = vcombine.high %v2339_v44, %v2339_v44  ;;  %2004 = vset.pattern.permute.xlu0 %v2042_v47  ;;  %2005 = vset.pattern.permute.xlu1 %v2042_v47  ;;  %v518_v53 = vld [vmem:[%s2359_s17 + $0x1e8] sm:$0xff]  ;;  %s1975_s18 = sshll.u32 (%p2103_p5), %s1803_s21, 5 }
  0x55   : > { %568 = vperm.xlu0 %2004, %v565_v45   ;;  %v1345_v48 = vld [vmem:[%s2574_s4] sm:$0xff]  ;;  %v1871_v57 = vcombine.high %v514_v51, %v518_v53  ;;  %v1870_v58 = vcombine.low %v514_v51, %v518_v53  ;;  %v506_v60 = vld [vmem:[%s2359_s17 + $0x188] sm:$0xff]  ;;  %s1707_s26 = scalar_lea.vmem (%p2103_p5), %s2575_s5, %s1975_s18 }
  0x56   : > { %1925 = vmatprep.mubr.msk.bf16.mxu0 %vm1117_vm0, %v2348_v46  ;;  %1927 = vmatprep.mubr.msk.bf16.mxu1 %vm1117_vm0, %v2348_v46  ;;  %v513_v49 = vld [vmem:[%s2359_s17 + $0x1c0] sm:$0xff]  ;;  %v510_v61 = vld [vmem:[%s2359_s17 + $0x1a8] sm:$0xff] }
  0x57   : > { %v517_v50 = vld [vmem:[%s2359_s17 + $0x1e0] sm:$0xff]  ;;  %v1863_v63 = vcombine.high %v506_v60, %v510_v61  ;;  %v498_v1 = vld [vmem:[%s2359_s17 + $0x148] sm:$0xff]  ;;  %1187 = vmatprep.subr.bf16.mxu1 %v1871_v57  ;;  %v1862_v4 = vcombine.low %v506_v60, %v510_v61 }
  0x58   : > { %v1869_v52 = vcombine.high %v513_v49, %v517_v50  ;;  %v1868_v54 = vcombine.low %v513_v49, %v517_v50  ;;  %v505_v55 = vld [vmem:[%s2359_s17 + $0x180] sm:$0xff]  ;;  %v502_v2 = vld [vmem:[%s2359_s17 + $0x168] sm:$0xff]  ;;  %1188 = vmatpush1.bf16.msra.mxu1 %v1870_v58 }
  0x59   : > { %v509_v56 = vld [vmem:[%s2359_s17 + $0x1a0] sm:$0xff]  ;;  %1350 = vperm.xlu0 %2004, %v1345_v48   ;;  %1189 = vmatprep.subr.bf16.mxu1 %v1863_v63  ;;  %v1855_v6 = vcombine.high %v498_v1, %v502_v2  ;;  %v490_v9 = vld [vmem:[%s2359_s17 + $0x108] sm:$0xff]  ;;  %v1854_v12 = vcombine.low %v498_v1, %v502_v2 }
  0x5a   : > { %v1861_v59 = vcombine.high %v505_v55, %v509_v56  ;;  %v497_v62 = vld [vmem:[%s2359_s17 + $0x140] sm:$0xff]  ;;  %1146 = vmatprep.subr.bf16.mxu0 %v1869_v52  ;;  %v1860_v3 = vcombine.low %v505_v55, %v509_v56  ;;  %v494_v10 = vld [vmem:[%s2359_s17 + $0x128] sm:$0xff] }
  0x5b   : > { %v501_v0 = vld [vmem:[%s2359_s17 + $0x160] sm:$0xff]  ;;  %1147 = vmatpush1.bf16.msra.mxu0 %v1868_v54  ;;  %v1847_v14 = vcombine.high %v490_v9, %v494_v10  ;;  %v482_v17 = vld [vmem:[%s2359_s17 + $0xc8] sm:$0xff]  ;;  %v1846_v20 = vcombine.low %v490_v9, %v494_v10 }
  0x5c   : > { %1148 = vmatprep.subr.bf16.mxu0 %v1861_v59  ;;  %v1853_v5 = vcombine.high %v497_v62, %v501_v0  ;;  %v489_v7 = vld [vmem:[%s2359_s17 + $0x100] sm:$0xff]  ;;  %v1852_v11 = vcombine.low %v497_v62, %v501_v0  ;;  %1190 = vmatpush1.bf16.msra.mxu1 %v1862_v4  ;;  %v486_v18 = vld [vmem:[%s2359_s17 + $0xe8] sm:$0xff] }
  0x5d   : > { %v493_v8 = vld [vmem:[%s2359_s17 + $0x120] sm:$0xff]  ;;  %1191 = vmatprep.subr.bf16.mxu1 %v1855_v6  ;;  %v1839_v22 = vcombine.high %v482_v17, %v486_v18  ;;  %v474_v25 = vld [vmem:[%s2359_s17 + $0x88] sm:$0xff]  ;;  %v1838_v28 = vcombine.low %v482_v17, %v486_v18 }
  0x5e   : > { %v1845_v13 = vcombine.high %v489_v7, %v493_v8  ;;  %v481_v15 = vld [vmem:[%s2359_s17 + $0xc0] sm:$0xff]  ;;  %v1844_v19 = vcombine.low %v489_v7, %v493_v8  ;;  %v478_v26 = vld [vmem:[%s2359_s17 + $0xa8] sm:$0xff] }
  0x5f   : > { %1149 = vmatpush1.bf16.msra.mxu0 %v1860_v3  ;;  %v485_v16 = vld [vmem:[%s2359_s17 + $0xe0] sm:$0xff]  ;;  %v1831_v30 = vcombine.high %v474_v25, %v478_v26  ;;  %v466_v33 = vld [vmem:[%s2359_s17 + $0x48] sm:$0xff]  ;;  %v1830_v36 = vcombine.low %v474_v25, %v478_v26 }
  0x60   : > { %1150 = vmatprep.subr.bf16.mxu0 %v1853_v5  ;;  %1192 = vmatpush1.bf16.msra.mxu1 %v1854_v12  ;;  %v1837_v21 = vcombine.high %v481_v15, %v485_v16  ;;  %v473_v23 = vld [vmem:[%s2359_s17 + $0x80] sm:$0xff]  ;;  %v1836_v27 = vcombine.low %v481_v15, %v485_v16  ;;  %v470_v34 = vld [vmem:[%s2359_s17 + $0x68] sm:$0xff] }
  0x61   : > { %1193 = vmatprep.subr.bf16.mxu1 %v1847_v14  ;;  %v477_v24 = vld [vmem:[%s2359_s17 + $0xa0] sm:$0xff]  ;;  %v1823_v38 = vcombine.high %v466_v33, %v470_v34  ;;  %v458_v41 = vld [vmem:[%s2359_s17 + $0x8] sm:$0xff]  ;;  %v1822_v45 = vcombine.low %v466_v33, %v470_v34  ;;  %v515_v34 = vld [vmem:[%s2359_s17 + $0x1d0] sm:$0xff] }
  0x62   : > { %v1829_v29 = vcombine.high %v473_v23, %v477_v24  ;;  %v465_v31 = vld [vmem:[%s2359_s17 + $0x40] sm:$0xff]  ;;  %v1828_v35 = vcombine.low %v473_v23, %v477_v24  ;;  %v462_v42 = vld [vmem:[%s2359_s17 + $0x28] sm:$0xff] }
  0x63   : > { %1151 = vmatpush1.bf16.msra.mxu0 %v1852_v11  ;;  %v469_v32 = vld [vmem:[%s2359_s17 + $0x60] sm:$0xff]  ;;  %v1815_v49 = vcombine.high %v458_v41, %v462_v42  ;;  %v562_v51 = vld [vmem:[%s2359_s17 + $0x348] sm:$0xff]  ;;  %v1814_v53 = vcombine.low %v458_v41, %v462_v42  ;;  %v507_v42 = vld [vmem:[%s2359_s17 + $0x190] sm:$0xff] }
  0x64   : > { %1152 = vmatprep.subr.bf16.mxu0 %v1845_v13  ;;  %1194 = vmatpush1.bf16.msra.mxu1 %v1846_v20  ;;  %v1821_v37 = vcombine.high %v465_v31, %v469_v32  ;;  %v457_v39 = vld [vmem:[%s2359_s17] sm:$0xff]  ;;  %v1820_v43 = vcombine.low %v465_v31, %v469_v32  ;;  %v1919_v56 = vcombine.high %v562_v51, %v562_v51  ;;  %v554_v60 = vld [vmem:[%s2359_s17 + $0x308] sm:$0xff] }
  0x65   : > { %1195 = vmatprep.subr.bf16.mxu1 %v1839_v22  ;;  %v461_v40 = vld [vmem:[%s2359_s17 + $0x20] sm:$0xff]  ;;  %v1918_v57 = vcombine.low %v562_v51, %v562_v51  ;;  %v558_v61 = vld [vmem:[%s2359_s17 + $0x328] sm:$0xff] }
  0x66   : > { %v1813_v48 = vcombine.high %v457_v39, %v461_v40  ;;  %v561_v50 = vld [vmem:[%s2359_s17 + $0x340] sm:$0xff]  ;;  %v1812_v52 = vcombine.low %v457_v39, %v461_v40  ;;  %v1911_v1 = vcombine.high %v554_v60, %v558_v61  ;;  %v546_v4 = vld [vmem:[%s2359_s17 + $0x2c8] sm:$0xff]  ;;  %v1910_v7 = vcombine.low %v554_v60, %v558_v61  ;;  %v491_v61 = vld [vmem:[%s2359_s17 + $0x110] sm:$0xff] }
  0x67   : > { %1153 = vmatpush1.bf16.msra.mxu0 %v1844_v19  ;;  %v1917_v54 = vcombine.high %v561_v50, %v561_v50  ;;  %v1916_v55 = vcombine.low %v561_v50, %v561_v50  ;;  %v553_v58 = vld [vmem:[%s2359_s17 + $0x300] sm:$0xff]  ;;  %v1129_v0 = vsel %vm1121_vm1, %v1918_v57, 0  ;;  %v550_v5 = vld [vmem:[%s2359_s17 + $0x2e8] sm:$0xff] }
  0x68   : > { %1154 = vmatprep.subr.bf16.mxu0 %v1837_v21  ;;  %1196 = vmatpush1.bf16.msra.mxu1 %v1838_v28  ;;  %v557_v59 = vld [vmem:[%s2359_s17 + $0x320] sm:$0xff]  ;;  %v1903_v9 = vcombine.high %v546_v4, %v550_v5  ;;  %v538_v12 = vld [vmem:[%s2359_s17 + $0x288] sm:$0xff]  ;;  %v1902_v15 = vcombine.low %v546_v4, %v550_v5  ;;  %v483_v5 = vld [vmem:[%s2359_s17 + $0xd0] sm:$0xff] }
  0x69   : > { %1197 = vmatprep.subr.bf16.mxu1 %v1831_v30  ;;  %v1123_v62 = vsel %vm1121_vm1, %v1916_v55, 0  ;;  %v1909_v63 = vcombine.high %v553_v58, %v557_v59  ;;  %v545_v2 = vld [vmem:[%s2359_s17 + $0x2c0] sm:$0xff]  ;;  %v1908_v6 = vcombine.low %v553_v58, %v557_v59  ;;  %v542_v13 = vld [vmem:[%s2359_s17 + $0x2a8] sm:$0xff]  ;;  %v503_v55 = vld [vmem:[%s2359_s17 + $0x170] sm:$0xff] }
  0x6a   : > { %v549_v3 = vld [vmem:[%s2359_s17 + $0x2e0] sm:$0xff]  ;;  %v1895_v17 = vcombine.high %v538_v12, %v542_v13  ;;  %v530_v20 = vld [vmem:[%s2359_s17 + $0x248] sm:$0xff]  ;;  %v1894_v23 = vcombine.low %v538_v12, %v542_v13  ;;  %v475_v12 = vld [vmem:[%s2359_s17 + $0x90] sm:$0xff] }
  0x6b   : > { %1155 = vmatpush1.bf16.msra.mxu0 %v1836_v27  ;;  %v1901_v8 = vcombine.high %v545_v2, %v549_v3  ;;  %v537_v10 = vld [vmem:[%s2359_s17 + $0x280] sm:$0xff]  ;;  %v1900_v14 = vcombine.low %v545_v2, %v549_v3  ;;  %v534_v21 = vld [vmem:[%s2359_s17 + $0x268] sm:$0xff]  ;;  %v479_v13 = vld [vmem:[%s2359_s17 + $0xb0] sm:$0xff] }
  0x6c   : > { %1156 = vmatprep.subr.bf16.mxu0 %v1829_v29  ;;  %1198 = vmatpush1.bf16.msra.mxu1 %v1830_v36  ;;  %v541_v11 = vld [vmem:[%s2359_s17 + $0x2a0] sm:$0xff]  ;;  %v1887_v25 = vcombine.high %v530_v20, %v534_v21  ;;  %v522_v28 = vld [vmem:[%s2359_s17 + $0x208] sm:$0xff]  ;;  %v1886_v31 = vcombine.low %v530_v20, %v534_v21  ;;  %v516_v36 = vld [vmem:[%s2359_s17 + $0x1d8] sm:$0xff] }
  0x6d   : > { %1199 = vmatprep.subr.bf16.mxu1 %v1823_v38  ;;  %v1893_v16 = vcombine.high %v537_v10, %v541_v11  ;;  %v529_v18 = vld [vmem:[%s2359_s17 + $0x240] sm:$0xff]  ;;  %v1892_v22 = vcombine.low %v537_v10, %v541_v11  ;;  %v526_v29 = vld [vmem:[%s2359_s17 + $0x228] sm:$0xff]  ;;  %v467_v20 = vld [vmem:[%s2359_s17 + $0x50] sm:$0xff] }
  0x6e   : > { %v533_v19 = vld [vmem:[%s2359_s17 + $0x260] sm:$0xff]  ;;  %v1879_v33 = vcombine.high %v522_v28, %v526_v29  ;;  %v1878_v39 = vcombine.low %v522_v28, %v526_v29  ;;  %v471_v21 = vld [vmem:[%s2359_s17 + $0x70] sm:$0xff] }
  0x6f   : > { %1157 = vmatpush1.bf16.msra.mxu0 %v1828_v35  ;;  %v1885_v24 = vcombine.high %v529_v18, %v533_v19  ;;  %v521_v26 = vld [vmem:[%s2359_s17 + $0x200] sm:$0xff]  ;;  %v1884_v30 = vcombine.low %v529_v18, %v533_v19  ;;  %v519_v35 = vld [vmem:[%s2359_s17 + $0x1f0] sm:$0xff]  ;;  %v1833_v18 = vcombine.high %v475_v12, %v479_v13 }
  0x70   : > { %1158 = vmatprep.subr.bf16.mxu0 %v1821_v37  ;;  %1200 = vmatpush1.bf16.msra.mxu1 %v1822_v45  ;;  %v525_v27 = vld [vmem:[%s2359_s17 + $0x220] sm:$0xff]  ;;  %v520_v37 = vld [vmem:[%s2359_s17 + $0x1f8] sm:$0xff]  ;;  %v1873_v40 = vcombine.high %v515_v34, %v519_v35  ;;  %v2427_v45 = vcombine.low %v2339_v44, %v2339_v44  ;;  %v1872_v50 = vcombine.low %v515_v34, %v519_v35  ;;  %v459_v28 = vld [vmem:[%s2359_s17 + $0x10] sm:$0xff] }
  0x71   : > { %1201 = vmatprep.subr.bf16.mxu1 %v1815_v49  ;;  %v1877_v32 = vcombine.high %v521_v26, %v525_v27  ;;  %v1876_v38 = vcombine.low %v521_v26, %v525_v27  ;;  %v1875_v41 = vcombine.high %v516_v36, %v520_v37  ;;  %v512_v49 = vld [vmem:[%s2359_s17 + $0x1b8] sm:$0xff]  ;;  %v1874_v51 = vcombine.low %v516_v36, %v520_v37  ;;  %v463_v29 = vld [vmem:[%s2359_s17 + $0x30] sm:$0xff] }
  0x72   : > { %v500_v44 = vld [vmem:[%s2359_s17 + $0x158] sm:$0xff]  ;;  %v1825_v26 = vcombine.high %v467_v20, %v471_v21  ;;  %v1817_v34 = vcombine.high %v459_v28, %v463_v29  ;;  %v563_v36 = vld [vmem:[%s2359_s17 + $0x350] sm:$0xff] }
  0x73   : > { %1159 = vmatpush1.bf16.msra.mxu0 %v1820_v43  ;;  %v511_v43 = vld [vmem:[%s2359_s17 + $0x1b0] sm:$0xff]  ;;  %v564_v37 = vld [vmem:[%s2359_s17 + $0x358] sm:$0xff] }
  0x74   : > { %1160 = vmatprep.subr.bf16.mxu0 %v1813_v48  ;;  %1202 = vmatpush1.bf16.msra.mxu1 %v1814_v53  ;;  %v508_v48 = vld [vmem:[%s2359_s17 + $0x198] sm:$0xff]  ;;  %v1864_v57 = vcombine.low %v507_v42, %v511_v43 }
  0x75   : > { %1926 = vmatprep.subr.msk.bf16.mxu1 %vm1121_vm1, %v1919_v56  ;;  %v1867_v53 = vcombine.high %v508_v48, %v512_v49  ;;  %v504_v56 = vld [vmem:[%s2359_s17 + $0x178] sm:$0xff]  ;;  %v1866_v58 = vcombine.low %v508_v48, %v512_v49  ;;  %v555_v48 = vld [vmem:[%s2359_s17 + $0x310] sm:$0xff] }
  0x76   : > { %v1859_v60 = vcombine.high %v500_v44, %v504_v56  ;;  %v1858_v2 = vcombine.low %v500_v44, %v504_v56  ;;  %v559_v49 = vld [vmem:[%s2359_s17 + $0x330] sm:$0xff] }
  0x77   : > { %1161 = vmatpush1.bf16.msra.mxu0 %v1812_v52  ;;  %v1865_v52 = vcombine.high %v507_v42, %v511_v43  ;;  %v1923_v42 = vcombine.high %v564_v37, %v564_v37  ;;  %v1922_v43 = vcombine.low %v564_v37, %v564_v37  ;;  %v547_v44 = vld [vmem:[%s2359_s17 + $0x2d0] sm:$0xff] }
  0x78   : > { %1924 = vmatprep.subr.msk.bf16.mxu0 %vm1121_vm1, %v1917_v54  ;;  %1208 = vmatpush2.bf16.msra.mxu1 %v1129_v0  ;;  %v499_v54 = vld [vmem:[%s2359_s17 + $0x150] sm:$0xff]  ;;  %v496_v0 = vld [vmem:[%s2359_s17 + $0x138] sm:$0xff] }
  0x79   : > { %1209 = vmatprep.subr.bf16.mxu1 %v1911_v1  ;;  %v1857_v59 = vcombine.high %v499_v54, %v503_v55  ;;  %v1856_v1 = vcombine.low %v499_v54, %v503_v55  ;;  %v1141_v54 = vsel %vm1121_vm1, %v1922_v43, 0  ;;  %v551_v56 = vld [vmem:[%s2359_s17 + $0x2f0] sm:$0xff] }
  0x7b   : > { %1167 = vmatpush2.bf16.msra.mxu0 %v1123_v62  ;;  %v495_v62 = vld [vmem:[%s2359_s17 + $0x130] sm:$0xff] }
  0x7c   : > { %1168 = vmatprep.subr.bf16.mxu0 %v1909_v63  ;;  %1210 = vmatpush2.bf16.msra.mxu1 %v1910_v7  ;;  %v492_v63 = vld [vmem:[%s2359_s17 + $0x118] sm:$0xff]  ;;  %v1849_v3 = vcombine.high %v491_v61, %v495_v62 }
  0x7d   : > { %1211 = vmatprep.subr.bf16.mxu1 %v1903_v9  ;;  %v1851_v4 = vcombine.high %v492_v63, %v496_v0  ;;  %v484_v7 = vld [vmem:[%s2359_s17 + $0xd8] sm:$0xff]  ;;  %v1848_v9 = vcombine.low %v491_v61, %v495_v62  ;;  %v1905_v61 = vcombine.high %v547_v44, %v551_v56 }
  0x7f   : > { %1169 = vmatpush2.bf16.msra.mxu0 %v1908_v6  ;;  %v487_v6 = vld [vmem:[%s2359_s17 + $0xf0] sm:$0xff] }
  0x80   : > { %1170 = vmatprep.subr.bf16.mxu0 %v1901_v8  ;;  %1212 = vmatpush2.bf16.msra.mxu1 %v1902_v15  ;;  %v488_v8 = vld [vmem:[%s2359_s17 + $0xf8] sm:$0xff]  ;;  %v1841_v10 = vcombine.high %v483_v5, %v487_v6 }
  0x81   : > { %1213 = vmatprep.subr.bf16.mxu1 %v1895_v17  ;;  %v1843_v11 = vcombine.high %v484_v7, %v488_v8  ;;  %v480_v15 = vld [vmem:[%s2359_s17 + $0xb8] sm:$0xff]  ;;  %v1842_v17 = vcombine.low %v484_v7, %v488_v8  ;;  %v531_v7 = vld [vmem:[%s2359_s17 + $0x250] sm:$0xff] }
  0x82   : > { %v535_v8 = vld [vmem:[%s2359_s17 + $0x270] sm:$0xff] }
  0x83   : > { %1171 = vmatpush2.bf16.msra.mxu0 %v1900_v14  ;;  %v476_v14 = vld [vmem:[%s2359_s17 + $0x98] sm:$0xff] }
  0x84   : > { %1172 = vmatprep.subr.bf16.mxu0 %v1893_v16  ;;  %1214 = vmatpush2.bf16.msra.mxu1 %v1894_v23  ;;  %v1840_v16 = vcombine.low %v483_v5, %v487_v6  ;;  %v1835_v19 = vcombine.high %v476_v14, %v480_v15  ;;  %v472_v23 = vld [vmem:[%s2359_s17 + $0x78] sm:$0xff] }
  0x85   : > { %1215 = vmatprep.subr.bf16.mxu1 %v1887_v25  ;;  %v1834_v25 = vcombine.low %v476_v14, %v480_v15  ;;  %v523_v14 = vld [vmem:[%s2359_s17 + $0x210] sm:$0xff] }
  0x86   : > { %v527_v15 = vld [vmem:[%s2359_s17 + $0x230] sm:$0xff] }
  0x87   : > { %1173 = vmatpush2.bf16.msra.mxu0 %v1892_v22  ;;  %v468_v22 = vld [vmem:[%s2359_s17 + $0x58] sm:$0xff] }
  0x88   : > { %1174 = vmatprep.subr.bf16.mxu0 %v1885_v24  ;;  %1216 = vmatpush2.bf16.msra.mxu1 %v1886_v31  ;;  %v1832_v24 = vcombine.low %v475_v12, %v479_v13  ;;  %v1827_v27 = vcombine.high %v468_v22, %v472_v23  ;;  %v464_v31 = vld [vmem:[%s2359_s17 + $0x38] sm:$0xff]  ;;  %v1889_v12 = vcombine.high %v531_v7, %v535_v8 }
  0x89   : > { %1217 = vmatprep.subr.bf16.mxu1 %v1879_v33  ;;  %v1826_v33 = vcombine.low %v468_v22, %v472_v23  ;;  %v1880_v22 = vcombine.low %v523_v14, %v527_v15 }
  0x8b   : > { %1175 = vmatpush2.bf16.msra.mxu0 %v1884_v30  ;;  %v460_v30 = vld [vmem:[%s2359_s17 + $0x18] sm:$0xff] }
  0x8c   : > { %1176 = vmatprep.subr.bf16.mxu0 %v1877_v32  ;;  %1218 = vmatpush2.bf16.msra.mxu1 %v1878_v39  ;;  %v1824_v32 = vcombine.low %v467_v20, %v471_v21  ;;  %v1819_v35 = vcombine.high %v460_v30, %v464_v31  ;;  %v1818_v39 = vcombine.low %v460_v30, %v464_v31 }
  0x8d   : > { %1269 = vmatprep.subr.bf16.mxu1 %v1875_v41  ;;  %v1920_v41 = vcombine.low %v563_v36, %v563_v36  ;;  %v1881_v20 = vcombine.high %v523_v14, %v527_v15 }
  0x8f   : > { %1177 = vmatpush2.bf16.msra.mxu0 %v1876_v38  ;;  %1220 = vmatmul.mubr.bf16.vlgmr.msra.gmra.mxu1 %v2427_v45  ;;  %v1816_v38 = vcombine.low %v459_v28, %v463_v29 }
  0x90   : > { %1228 = vmatprep.subr.bf16.mxu0 %v1873_v40  ;;  %1270 = vmatpush1.bf16.msra.mxu1 %v1874_v51  ;;  %v1921_v40 = vcombine.high %v563_v36, %v563_v36  ;;  %v560_v51 = vld [vmem:[%s2359_s17 + $0x338] sm:$0xff] }
  0x91   : > { %1271 = vmatprep.subr.bf16.mxu1 %v1867_v53  ;;  %1931 = vmatprep.mubr.msk.bf16.mxu1 %vm1117_vm0, %v2348_v46  ;;  %v1913_v53 = vcombine.high %v555_v48, %v559_v49 }
  0x92   : > { %1179 = vmatmul.mubr.bf16.vlgmr.msra.gmra.mxu0 %v2427_v45 }
  0x93   : > { %1229 = vmatpush1.bf16.msra.mxu0 %v1872_v50  ;;  %1929 = vmatprep.mubr.msk.bf16.mxu0 %vm1117_vm0, %v2348_v46  ;;  %v1850_v46 = vcombine.low %v492_v63, %v496_v0  ;;  %v556_v50 = vld [vmem:[%s2359_s17 + $0x318] sm:$0xff]  ;;  %v539_v63 = vld [vmem:[%s2359_s17 + $0x290] sm:$0xff] }
  0x94   : > { %1230 = vmatprep.subr.bf16.mxu0 %v1865_v52  ;;  %1272 = vmatpush1.bf16.msra.mxu1 %v1866_v58  ;;  %v1135_v52 = vsel %vm1121_vm1, %v1920_v41, 0  ;;  %v1915_v55 = vcombine.high %v556_v50, %v560_v51  ;;  %v552_v58 = vld [vmem:[%s2359_s17 + $0x2f8] sm:$0xff]  ;;  %v543_v0 = vld [vmem:[%s2359_s17 + $0x2b0] sm:$0xff] }
  0x95   : > { %1273 = vmatprep.subr.bf16.mxu1 %v1859_v60  ;;  %v1914_v60 = vcombine.low %v556_v50, %v560_v51  ;;  %v1897_v5 = vcombine.high %v539_v63, %v543_v0 }
  0x97   : > { %1231 = vmatpush1.bf16.msra.mxu0 %v1864_v57  ;;  %v548_v57 = vld [vmem:[%s2359_s17 + $0x2d8] sm:$0xff] }
  0x98   : > { %1232 = vmatprep.subr.bf16.mxu0 %v1857_v59  ;;  %1274 = vmatpush1.bf16.msra.mxu1 %v1858_v2  ;;  %v1912_v59 = vcombine.low %v555_v48, %v559_v49  ;;  %v1907_v62 = vcombine.high %v548_v57, %v552_v58  ;;  %v544_v2 = vld [vmem:[%s2359_s17 + $0x2b8] sm:$0xff] }
  0x99   : > { %1275 = vmatprep.subr.bf16.mxu1 %v1851_v4  ;;  %v1906_v4 = vcombine.low %v548_v57, %v552_v58 }
  0x9b   : > { %1233 = vmatpush1.bf16.msra.mxu0 %v1856_v1  ;;  %v540_v1 = vld [vmem:[%s2359_s17 + $0x298] sm:$0xff] }
  0x9c   : > { %1234 = vmatprep.subr.bf16.mxu0 %v1849_v3  ;;  %1276 = vmatpush1.bf16.msra.mxu1 %v1850_v46  ;;  %v1904_v3 = vcombine.low %v547_v44, %v551_v56  ;;  %v1899_v6 = vcombine.high %v540_v1, %v544_v2  ;;  %v536_v46 = vld [vmem:[%s2359_s17 + $0x278] sm:$0xff]  ;;  %v2017_v56 = vld [vmem:[%s2573_s3 + $0x8] ss:$0 sps:$4 sm:$0xff]  }
  0x9d   : > { %1277 = vmatprep.subr.bf16.mxu1 %v1843_v11  ;;  %v1898_v11 = vcombine.low %v540_v1, %v544_v2 }
  0x9f   : > { %1235 = vmatpush1.bf16.msra.mxu0 %v1848_v9  ;;  %v532_v9 = vld [vmem:[%s2359_s17 + $0x258] sm:$0xff] }
  0xa0   : > { %1236 = vmatprep.subr.bf16.mxu0 %v1841_v10  ;;  %1278 = vmatpush1.bf16.msra.mxu1 %v1842_v17  ;;  %v1896_v10 = vcombine.low %v539_v63, %v543_v0  ;;  %v1891_v13 = vcombine.high %v532_v9, %v536_v46  ;;  %v528_v17 = vld [vmem:[%s2359_s17 + $0x238] sm:$0xff] }
  0xa1   : > { %1279 = vmatprep.subr.bf16.mxu1 %v1835_v19  ;;  %v1890_v19 = vcombine.low %v532_v9, %v536_v46 }
  0xa3   : > { %1237 = vmatpush1.bf16.msra.mxu0 %v1840_v16  ;;  %v524_v16 = vld [vmem:[%s2359_s17 + $0x218] sm:$0xff] }
  0xa4   : > { %1238 = vmatprep.subr.bf16.mxu0 %v1833_v18  ;;  %1280 = vmatpush1.bf16.msra.mxu1 %v1834_v25  ;;  %v1888_v18 = vcombine.low %v531_v7, %v535_v8  ;;  %v1883_v21 = vcombine.high %v524_v16, %v528_v17  ;;  %v1882_v23 = vcombine.low %v524_v16, %v528_v17  ;;  %v1347_v25 = vld [vmem:[%s2574_s4 + $0x10] sm:$0xff] }
  0xa5   : > { %1281 = vmatprep.subr.bf16.mxu1 %v1827_v27 }
  0xa7   : > { %1239 = vmatpush1.bf16.msra.mxu0 %v1832_v24  ;;  %v1346_v24 = vld [vmem:[%s2574_s4 + $0x8] sm:$0xff] }
  0xa8   : > { %1240 = vmatprep.subr.bf16.mxu0 %v1825_v26  ;;  %1282 = vmatpush1.bf16.msra.mxu1 %v1826_v33 }
  0xa9   : > { %1283 = vmatprep.subr.bf16.mxu1 %v1819_v35  ;;  %1355 = vperm.xlu1 %2005, %v1346_v24  }
  0xab   : > { %1241 = vmatpush1.bf16.msra.mxu0 %v1824_v32 }
  0xac   : > { %1242 = vmatprep.subr.bf16.mxu0 %v1817_v34  ;;  %1284 = vmatpush1.bf16.msra.mxu1 %v1818_v39 }
  0xad   : > { %1930 = vmatprep.subr.msk.bf16.mxu1 %vm1121_vm1, %v1923_v42  ;;  %1360 = vperm.xlu1 %2005, %v1347_v25  }
  0xaf   : > { %1243 = vmatpush1.bf16.msra.mxu0 %v1816_v38 }
  0xb0   : > { %1928 = vmatprep.subr.msk.bf16.mxu0 %vm1121_vm1, %v1921_v40  ;;  %1290 = vmatpush2.bf16.msra.mxu1 %v1141_v54 }
  0xb1   : > { %1291 = vmatprep.subr.bf16.mxu1 %v1915_v55  ;;  %v2016_v55 = vld [vmem:[%s2573_s3] sm:$0xff]  }
  0xb3   : > { %1249 = vmatpush2.bf16.msra.mxu0 %v1135_v52 }
  0xb4   : > { %1250 = vmatprep.subr.bf16.mxu0 %v1913_v53  ;;  %1292 = vmatpush2.bf16.msra.mxu1 %v1914_v60 }
  0xb5   : > { %1293 = vmatprep.subr.bf16.mxu1 %v1907_v62 }
  0xb7   : > { %1251 = vmatpush2.bf16.msra.mxu0 %v1912_v59 }
  0xb8   : > { %1252 = vmatprep.subr.bf16.mxu0 %v1905_v61  ;;  %1294 = vmatpush2.bf16.msra.mxu1 %v1906_v4 }
  0xb9   : > { %1295 = vmatprep.subr.bf16.mxu1 %v1899_v6 }
  0xbb   : > { %1253 = vmatpush2.bf16.msra.mxu0 %v1904_v3 }
  0xbc   : > { %1254 = vmatprep.subr.bf16.mxu0 %v1897_v5  ;;  %1296 = vmatpush2.bf16.msra.mxu1 %v1898_v11 }
  0xbd   : > { %1297 = vmatprep.subr.bf16.mxu1 %v1891_v13 }
  0xbf   : > { %1255 = vmatpush2.bf16.msra.mxu0 %v1896_v10 }
  0xc0   : > { %1256 = vmatprep.subr.bf16.mxu0 %v1889_v12  ;;  %1298 = vmatpush2.bf16.msra.mxu1 %v1890_v19 }
  0xc1   : > { %1299 = vmatprep.subr.bf16.mxu1 %v1883_v21 }
  0xc3   : > { %1257 = vmatpush2.bf16.msra.mxu0 %v1888_v18 }
  0xc4   : > { %1258 = vmatprep.subr.bf16.mxu0 %v1881_v20  ;;  %1300 = vmatpush2.bf16.msra.mxu1 %v1882_v23 }
  0xc7   : > { %1259 = vmatpush2.bf16.msra.mxu0 %v1880_v22  ;;  %1302 = vmatmul.mubr.bf16.vlgmr.msra.gmra.mxu1 %v2427_v45 }
  0xc8   : > { %1485 = vmatprep.mubr.bf16.mxu1 %v2042_v47 }
  0xca   : > { %1261 = vmatmul.mubr.bf16.vlgmr.msra.gmra.mxu0 %v2427_v45 }
  0xcb   : > { %1434 = vmatprep.mubr.bf16.mxu0 %v2042_v47 }
  0xd0   : > { %v569_v26 = vpop.permute.xlu0 %568 }
  0xd4   : > { %v1351_v19 = vpop.permute.xlu0 %1350 }
 0x124   : > { %v1356_v22 = vpop.permute.xlu1 %1355 }
 0x14f   : > { %v1221_v29 = vpop.f32.mrf.mxu1 }
 0x150   : > { %v1222_v30 = vadd.f32 %v1221_v29, %v569_v26 }
 0x151   : > { %v1223_v33 = vpop.f32.mrf.mxu1 }
 0x152   : > { %v1180_v27 = vpop.f32.mrf.mxu0  ;;  %vm1312_vm3 = vcmp.ge.f32.partialorder %v1222_v30, 0.0  ;;  %v1320_v34 = vmul.f32 0.2, %v1222_v30  ;;  %v1224_v35 = vadd.f32 %v1223_v33, %v569_v26  ;;  %v1361_v33 = vpop.permute.xlu1 %1360 }
 0x153   : > { %v1181_v28 = vadd.f32 %v1180_v27, %v569_v26  ;;  %v1225_v39 = vpop.f32.mrf.mxu1 }
 0x154   : > { %v1182_v45 = vpop.f32.mrf.mxu0  ;;  %v1328_v41 = vsel %vm1312_vm3, %v1222_v30, %v1320_v34  ;;  %vm1313_vm5 = vcmp.ge.f32.partialorder %v1224_v35, 0.0  ;;  %v1321_v42 = vmul.f32 0.2, %v1224_v35 }
 0x155   : > { %vm1310_vm2 = vcmp.ge.f32.partialorder %v1181_v28, 0.0  ;;  %v1318_v31 = vmul.f32 0.2, %v1181_v28  ;;  %v1183_v32 = vadd.f32 %v1182_v45, %v569_v26  ;;  %v1339_v48 = vpack.c.bf16 %v1328_v41, %v1328_v41  ;;  %v1226_v50 = vpop.f32.mrf.mxu1 }
 0x156   : > { %v1184_v36 = vpop.f32.mrf.mxu0  ;;  %v1329_v52 = vsel %vm1313_vm5, %v1224_v35, %v1321_v42 }
 0x157   : > { %v1326_v37 = vsel %vm1310_vm2, %v1181_v28, %v1318_v31  ;;  %vm1311_vm4 = vcmp.ge.f32.partialorder %v1183_v32, 0.0  ;;  %v1319_v38 = vmul.f32 0.2, %v1183_v32  ;;  %v1340_v53 = vpack.c.bf16 %v1329_v52, %v1329_v52 }
 0x158   : > { %v1337_v40 = vpack.c.bf16 %v1326_v37, %v1326_v37  ;;  %v1185_v43 = vpop.f32.mrf.mxu0  ;;  %v1385_v44 = vsel %vm1121_vm1, %v1339_v48, 0 }
 0x159   : > { %v1327_v49 = vsel %vm1311_vm4, %v1183_v32, %v1319_v38  ;;  %1937 = vmatprep.subr.msk.bf16.mxu1 %vm1121_vm1, %v1340_v53 }
 0x15a   : > { %v1338_v51 = vpack.c.bf16 %v1327_v49, %v1327_v49  ;;  %v1379_v54 = vsel %vm1121_vm1, %v1337_v40, 0  ;;  %1468 = vmatpush1.bf16.msra.mxu1 %v1385_v44 }
 0x15c   : > { %1934 = vmatprep.subr.msk.bf16.mxu0 %vm1121_vm1, %v1338_v51 }
 0x15d   : > { %1417 = vmatpush1.bf16.msra.mxu0 %v1379_v54  ;;  %1938 = vmatmul.mubr.msk.bf16.vlgmr.msra.gmra.mxu1 %vm1371_vm6, %v2016_v55 }
 0x15e   : > { %1495 = vmatprep.mubr.bf16.mxu1 %v2042_v47 }
 0x160   : > { %1935 = vmatmul.mubr.msk.bf16.vlgmr.msra.gmra.mxu0 %vm1371_vm6, %v2016_v55 }
 0x161   : > { %1444 = vmatprep.mubr.bf16.mxu0 %v2042_v47 }
 0x165   : > { %1939 = vmatmul.mubr.msk.bf16.gmra.mxu1 %vm1371_vm6, %v2017_v56 }
 0x166   : > { %1587 = vmatprep.mubr.bf16.mxu1 %v2042_v47 }
 0x168   : > { %1936 = vmatmul.mubr.msk.bf16.gmra.mxu0 %vm1371_vm6, %v2017_v56 }
 0x169   : > { %1536 = vmatprep.mubr.bf16.mxu0 %v2042_v47 }
 0x187   : > { %v1303_v59 = vpop.f32.mrf.mxu1 }
 0x188   : > { %v1304_v60 = vadd.f32 %v1303_v59, %v569_v26 }
 0x189   : > { %v1305_v0 = vpop.f32.mrf.mxu1 }
 0x18a   : > { %v1262_v57 = vpop.f32.mrf.mxu0  ;;  %vm1316_vm8 = vcmp.ge.f32.partialorder %v1304_v60, 0.0  ;;  %v1324_v1 = vmul.f32 0.2, %v1304_v60  ;;  %v1306_v2 = vadd.f32 %v1305_v0, %v569_v26 }
 0x18b   : > { %v1263_v58 = vadd.f32 %v1262_v57, %v569_v26  ;;  %v1307_v6 = vpop.f32.mrf.mxu1 }
 0x18c   : > { %v1264_v61 = vpop.f32.mrf.mxu0  ;;  %v1332_v8 = vsel %vm1316_vm8, %v1304_v60, %v1324_v1  ;;  %vm1317_vm10 = vcmp.ge.f32.partialorder %v1306_v2, 0.0  ;;  %v1325_v9 = vmul.f32 0.2, %v1306_v2 }
 0x18d   : > { %vm1314_vm7 = vcmp.ge.f32.partialorder %v1263_v58, 0.0  ;;  %v1322_v62 = vmul.f32 0.2, %v1263_v58  ;;  %v1265_v63 = vadd.f32 %v1264_v61, %v569_v26  ;;  %v1343_v10 = vpack.c.bf16 %v1332_v8, %v1332_v8  ;;  %v1308_v12 = vpop.f32.mrf.mxu1 }
 0x18e   : > { %v1266_v3 = vpop.f32.mrf.mxu0  ;;  %v1333_v14 = vsel %vm1317_vm10, %v1306_v2, %v1325_v9 }
 0x18f   : > { %v1330_v4 = vsel %vm1314_vm7, %v1263_v58, %v1322_v62  ;;  %vm1315_vm9 = vcmp.ge.f32.partialorder %v1265_v63, 0.0  ;;  %v1323_v5 = vmul.f32 0.2, %v1265_v63  ;;  %v1344_v15 = vpack.c.bf16 %v1333_v14, %v1333_v14 }
 0x190   : > { %v1341_v7 = vpack.c.bf16 %v1330_v4, %v1330_v4  ;;  %v1267_v46 = vpop.f32.mrf.mxu0  ;;  %v1397_v17 = vsel %vm1121_vm1, %v1343_v10, 0 }
 0x191   : > { %v1331_v11 = vsel %vm1315_vm9, %v1265_v63, %v1323_v5  ;;  %1943 = vmatprep.subr.msk.bf16.mxu1 %vm1121_vm1, %v1344_v15 }
 0x192   : > { %v1342_v13 = vpack.c.bf16 %v1331_v11, %v1331_v11  ;;  %v1391_v16 = vsel %vm1121_vm1, %v1341_v7, 0  ;;  %1570 = vmatpush1.bf16.msra.mxu1 %v1397_v17 }
 0x194   : > { %1940 = vmatprep.subr.msk.bf16.mxu0 %vm1121_vm1, %v1342_v13 }
 0x195   : > { %1519 = vmatpush1.bf16.msra.mxu0 %v1391_v16  ;;  %1944 = vmatmul.mubr.msk.bf16.vlgmr.msra.gmra.mxu1 %vm1371_vm6, %v2016_v55 }
 0x196   : > { %1597 = vmatprep.mubr.bf16.mxu1 %v2042_v47 }
 0x198   : > { %1941 = vmatmul.mubr.msk.bf16.vlgmr.msra.gmra.mxu0 %vm1371_vm6, %v2016_v55 }
 0x199   : > { %1546 = vmatprep.mubr.bf16.mxu0 %v2042_v47 }
 0x19d   : > { %1945 = vmatmul.mubr.msk.bf16.gmra.mxu1 %vm1371_vm6, %v2017_v56 }
 0x1a0   : > { %1942 = vmatmul.mubr.msk.bf16.gmra.mxu0 %vm1371_vm6, %v2017_v56 }
 0x21d   : > { %v1487_v20 = vpop.f32.mrf.mxu1 }
 0x21e   : > { %v1488_v26 = vadd.f32 %v1487_v20, %v1351_v19 }
 0x21f   : > { %v1489_v25 = vpop.f32.mrf.mxu1 }
 0x220   : > { %v1436_v18 = vpop.f32.mrf.mxu0  ;;  %v1490_v27 = vadd.f32 %v1489_v25, %v1351_v19 }
 0x221   : > { %v1437_v23 = vadd.f32 %v1436_v18, %v1351_v19  ;;  %v1491_v30 = vpop.f32.mrf.mxu1 }
 0x222   : > { %v1438_v21 = vpop.f32.mrf.mxu0  ;;  %v1964_v45 = vpack.c.bf16 %v1490_v27, %v1488_v26  ;;  %v1492_v32 = vadd.f32 %v1491_v30, %v1356_v22 }
 0x223   : > { %v1439_v24 = vadd.f32 %v1438_v21, %v1351_v19  ;;  %v1493_v34 = vpop.f32.mrf.mxu1 }
 0x224   : > { %v1440_v28 = vpop.f32.mrf.mxu0  ;;  %1687 = vst [vmem:[%s2527_s10 + $0x8] sm:$0xff] %v1964_v45  ;;  %v1494_v37 = vadd.f32 %v1493_v34, %v1356_v22 }
 0x225   : > { %v1963_v29 = vpack.c.bf16 %v1439_v24, %v1437_v23  ;;  %v1441_v47 = vadd.f32 %v1440_v28, %v1356_v22  ;;  %v1497_v38 = vpop.f32.mrf.mxu1 }
 0x226   : > { %v1442_v31 = vpop.f32.mrf.mxu0  ;;  %v1968_v42 = vpack.c.bf16 %v1494_v37, %v1492_v32  ;;  %v1498_v43 = vadd.f32 %v1497_v38, %v1361_v33 }
 0x227   : > { %1686 = vst [vmem:[%s2527_s10] sm:$0xff] %v1963_v29  ;;  %v1443_v35 = vadd.f32 %v1442_v31, %v1356_v22  ;;  %v1499_v48 = vpop.f32.mrf.mxu1 }
 0x228   : > { %v1446_v36 = vpop.f32.mrf.mxu0  ;;  %1691 = vst [vmem:[%s2527_s10 + $0x28] sm:$0xff] %v1968_v42  ;;  %v1500_v51 = vadd.f32 %v1499_v48, %v1361_v33 }
 0x229   : > { %v1967_v39 = vpack.c.bf16 %v1443_v35, %v1441_v47  ;;  %v1447_v40 = vadd.f32 %v1446_v36, %v1361_v33  ;;  %v1501_v52 = vpop.f32.mrf.mxu1 }
 0x22a   : > { %v1448_v41 = vpop.f32.mrf.mxu0  ;;  %v1972_v55 = vpack.c.bf16 %v1500_v51, %v1498_v43 }
 0x22b   : > { %1690 = vst [vmem:[%s2527_s10 + $0x20] sm:$0xff] %v1967_v39  ;;  %v1449_v49 = vadd.f32 %v1448_v41, %v1361_v33  ;;  %v1502_v44 = vpop.f32.mrf.mxu1  ;;  %v1722_v26 = vld [vmem:[%s2527_s10 + $0x8] sm:$0xff] (%p2103_p5) }
 0x22c   : > { %v1450_v50 = vpop.f32.mrf.mxu0  ;;  %1695 = vst [vmem:[%s2527_s10 + $0x48] sm:$0xff] %v1972_v55  ;;  %1723 = vst [vmem:[%s1707_s26 + $0x8] sm:$0xff] (%p2103_p5), %v1722_v26 }
 0x22d   : > { %v1971_v53 = vpack.c.bf16 %v1449_v49, %v1447_v40 }
 0x22e   : > { %v1451_v54 = vpop.f32.mrf.mxu0  ;;  %v1720_v25 = vld [vmem:[%s2527_s10] sm:$0xff] (%p2103_p5) }
 0x22f   : > { %1694 = vst [vmem:[%s2527_s10 + $0x40] sm:$0xff] %v1971_v53  ;;  %v1730_v30 = vld [vmem:[%s2527_s10 + $0x28] sm:$0xff] (%p2103_p5)  ;;  %1721 = vst [vmem:[%s1707_s26] sm:$0xff] (%p2103_p5), %v1720_v25 }
 0x230   : > { %1731 = vst [vmem:[%s1707_s26 + $0x48] sm:$0xff] (%p2103_p5), %v1730_v30 }
 0x232   : > { %v1728_v29 = vld [vmem:[%s2527_s10 + $0x20] sm:$0xff] (%p2103_p5) }
 0x233   : > { %1729 = vst [vmem:[%s1707_s26 + $0x40] sm:$0xff] (%p2103_p5), %v1728_v29  ;;  %v1738_v32 = vld [vmem:[%s2527_s10 + $0x48] sm:$0xff] (%p2103_p5) }
 0x234   : > { %1739 = vst [vmem:[%s1707_s26 + $0x88] sm:$0xff] (%p2103_p5), %v1738_v32 }
 0x236   : > { %v1736_v31 = vld [vmem:[%s2527_s10 + $0x40] sm:$0xff] (%p2103_p5) }
 0x237   : > { %1737 = vst [vmem:[%s1707_s26 + $0x80] sm:$0xff] (%p2103_p5), %v1736_v31 }
 0x255   : > { %v1589_v57 = vpop.f32.mrf.mxu1 }
 0x256   : > { %v1590_v62 = vadd.f32 %v1589_v57, %v1351_v19 }
 0x257   : > { %v1591_v61 = vpop.f32.mrf.mxu1 }
 0x258   : > { %v1538_v56 = vpop.f32.mrf.mxu0  ;;  %v1592_v63 = vadd.f32 %v1591_v61, %v1351_v19 }
 0x259   : > { %v1539_v59 = vadd.f32 %v1538_v56, %v1351_v19  ;;  %v1593_v2 = vpop.f32.mrf.mxu1 }
 0x25a   : > { %v1540_v58 = vpop.f32.mrf.mxu0  ;;  %v1966_v3 = vpack.c.bf16 %v1592_v63, %v1590_v62  ;;  %v1594_v8 = vadd.f32 %v1593_v2, %v1356_v22 }
 0x25b   : > { %v1541_v60 = vadd.f32 %v1540_v58, %v1351_v19  ;;  %v1595_v7 = vpop.f32.mrf.mxu1 }
 0x25c   : > { %v1542_v0 = vpop.f32.mrf.mxu0  ;;  %1689 = vst [vmem:[%s2527_s10 + $0x18] sm:$0xff] %v1966_v3  ;;  %v1596_v9 = vadd.f32 %v1595_v7, %v1356_v22 }
 0x25d   : > { %v1965_v1 = vpack.c.bf16 %v1541_v60, %v1539_v59  ;;  %v1543_v5 = vadd.f32 %v1542_v0, %v1356_v22  ;;  %v1599_v11 = vpop.f32.mrf.mxu1 }
 0x25e   : > { %v1544_v4 = vpop.f32.mrf.mxu0  ;;  %v1970_v12 = vpack.c.bf16 %v1596_v9, %v1594_v8  ;;  %v1600_v17 = vadd.f32 %v1599_v11, %v1361_v33 }
 0x25f   : > { %1688 = vst [vmem:[%s2527_s10 + $0x10] sm:$0xff] %v1965_v1  ;;  %v1545_v6 = vadd.f32 %v1544_v4, %v1356_v22  ;;  %v1601_v16 = vpop.f32.mrf.mxu1 }
 0x260   : > { %v1548_v46 = vpop.f32.mrf.mxu0  ;;  %1693 = vst [vmem:[%s2527_s10 + $0x38] sm:$0xff] %v1970_v12  ;;  %v1602_v18 = vadd.f32 %v1601_v16, %v1361_v33 }
 0x261   : > { %v1969_v10 = vpack.c.bf16 %v1545_v6, %v1543_v5  ;;  %v1549_v14 = vadd.f32 %v1548_v46, %v1361_v33  ;;  %v1603_v21 = vpop.f32.mrf.mxu1 }
 0x262   : > { %v1550_v13 = vpop.f32.mrf.mxu0  ;;  %v1974_v23 = vpack.c.bf16 %v1602_v18, %v1600_v17 }
 0x263   : > { %1692 = vst [vmem:[%s2527_s10 + $0x30] sm:$0xff] %v1969_v10  ;;  %v1551_v15 = vadd.f32 %v1550_v13, %v1361_v33  ;;  %v1604_v22 = vpop.f32.mrf.mxu1  ;;  %1704 = sbr.rel (!%p2103_p5) target bundleno = 624 (0x270), region = 67  ;;  %v1726_v28 = vld [vmem:[%s2527_s10 + $0x18] sm:$0xff] (%p2103_p5) }
 0x264   : > { %v1552_v19 = vpop.f32.mrf.mxu0  ;;  %1697 = vst [vmem:[%s2527_s10 + $0x58] sm:$0xff] %v1974_v23  ;;  %1727 = vst [vmem:[%s1707_s26 + $0x18] sm:$0xff] (%p2103_p5), %v1726_v28 }
 0x265   : > { %v1973_v20 = vpack.c.bf16 %v1551_v15, %v1549_v14 }
 0x266   : > { %v1553_v24 = vpop.f32.mrf.mxu0  ;;  %v1724_v27 = vld [vmem:[%s2527_s10 + $0x10] sm:$0xff] (%p2103_p5) }
 0x267   : > { %1696 = vst [vmem:[%s2527_s10 + $0x50] sm:$0xff] %v1973_v20  ;;  %1725 = vst [vmem:[%s1707_s26 + $0x10] sm:$0xff] (%p2103_p5), %v1724_v27  ;;  %v1734_v45 = vld [vmem:[%s2527_s10 + $0x38] sm:$0xff] (%p2103_p5) }
 0x268   : > { %1735 = vst [vmem:[%s1707_s26 + $0x58] sm:$0xff] %v1734_v45 }
 0x26a   : > { %v1732_v47 = vld [vmem:[%s2527_s10 + $0x30] sm:$0xff] }
 0x26b   : > { %1733 = vst [vmem:[%s1707_s26 + $0x50] sm:$0xff] %v1732_v47  ;;  %v1742_v34 = vld [vmem:[%s2527_s10 + $0x58] sm:$0xff] }
 0x26c   : > { %1743 = vst [vmem:[%s1707_s26 + $0x98] sm:$0xff] %v1742_v34 }
 0x26e   : > { %v1740_v33 = vld [vmem:[%s2527_s10 + $0x50] sm:$0xff] }
 0x26f   : > { %1741 = vst [vmem:[%s1707_s26 + $0x90] sm:$0xff] %v1740_v33 }
 0x270 PF: > { %p12_p10 = scmp.ge.s32.totalorder %s2090_s22, 4   ;;  %s2577_s18 = smov %s2036_s19 }
 0x271   : > { %s2578_s19 = smov %s2101_s25  ;;  %s2579_s20 = smov %s2090_s22 }
 0x272   :  { %14 = sbr.rel (!%p12_p10) target bundleno = 2 (0x2), region = 121 }

// kernel: mixing_self_att_forward.3
= control target key start
LH: loop header
LB: loop body
LE: loop exit
PB: predicated region body
PF: predicated region fallthrough
CT: control target
= control target key end

     0   :  { %s2015_s15 = smov 0   ;;  %s2017_s16 = smov 0   ;;  %s3364_s0 = inlined_call_operand.vmem [shape: bf16[8,2048], index: 0, kind: input, shape index: {}]   ;;  %s3365_s1 = inlined_call_operand.vmem [shape: bf16[8,8,2048], index: 1, kind: input, shape index: {}]   ;;  %s3366_s2 = inlined_call_operand.vmem [shape: bf16[8,8,2048], index: 2, kind: input, shape index: {}]   ;;  %s3367_s3 = inlined_call_operand.vmem [shape: f32[8,2048], index: 3, kind: input, shape index: {}]   ;;  %s3368_s4 = inlined_call_operand.vmem [shape: f32[8,2048], index: 4, kind: output, shape index: {}]  }
   0x1   :  { %s2019_s17 = smov 0  }
   0x2 LB: > { %s1719_s18 = sadd.s32 4294967295, %s1988_s17   ;;  %s2032_s19 = sadd.s32 1, %s1988_s17   ;;  %s1988_s17 = sphi %s2019_s17, %s3748_s17   ;;  %s1984_s16 = sphi %s2017_s16, %s3747_s16   ;;  %s1980_s15 = sphi %s2015_s15, %s3746_s15  }
   0x3   : > { %s44_s20 = ssub.s32 %s1988_s17, %s2032_s19  ;;  %s47_s21 = sadd.s32 1, %s1984_s16 }
   0x4   : > { %p45_p0 = scmp.eq.s32.totalorder %s44_s20, 0  ;;  %p54_p1 = scmp.ne.s32.totalorder %s1984_s16, %s1980_s15 }
   0x5   : > { %p55_p2 = scmp.eq.s32.totalorder %s1988_s17, 0  ;;  %p1722_p4 = scmp.ge.s32.totalorder %s1988_s17, 2 }
   0x6   : > { %s2041_s22 = scalar_select %p45_p0, %s1984_s16, %s47_s21  }
   0x7   : > { %p2043_p3 = por %p55_p2, %p54_p1  ;;  %158 = sbr.rel (%p1722_p4) target bundleno = 52 (0x34), region = 16 }
   0xc   : > { %170 = sbr.rel (!%p2043_p3) target bundleno = 32 (0x20), region = 24  ;;  %s172_s24 = sand.u32 (%p2043_p3), 1, %s1984_s16  }
   0xd   : > { %s1796_s25 = sshll.u32 (%p2043_p3), %s1988_s17, 5  ;;  %s1723_s26 = sshll.u32 (%p2043_p3), %s172_s24, 8 }
   0xe   : > { %s2055_s29 = scalar_lea.vmem (%p2043_p3), %s3365_s1, %s1796_s25  ;;  %s2060_s30 = scalar_lea.vmem (%p2043_p3), [#allocation2], %s1723_s26 }
   0xf   : > { %v190_v0 = vld [vmem:[%s2055_s29] sm:$0xff] (%p2043_p3)  ;;  %v192_v1 = vld [vmem:[%s2055_s29 + $0x8] sm:$0xff] (%p2043_p3)  ;;  %v194_v2 = vld [vmem:[%s2055_s29 + $0x10] sm:$0xff] (%p2043_p3) }
  0x10   : > { %191 = vst [vmem:[%s2060_s30] sm:$0xff] (%p2043_p3), %v190_v0  ;;  %193 = vst [vmem:[%s2060_s30 + $0x8] sm:$0xff] (%p2043_p3), %v192_v1  ;;  %v196_v3 = vld [vmem:[%s2055_s29 + $0x18] sm:$0xff] (%p2043_p3)  ;;  %v198_v4 = vld [vmem:[%s2055_s29 + $0x40] sm:$0xff] (%p2043_p3) }
  0x11   : > { %195 = vst [vmem:[%s2060_s30 + $0x10] sm:$0xff] %v194_v2  ;;  %v200_v5 = vld [vmem:[%s2055_s29 + $0x48] sm:$0xff]  ;;  %197 = vst [vmem:[%s2060_s30 + $0x18] sm:$0xff] %v196_v3  ;;  %v202_v6 = vld [vmem:[%s2055_s29 + $0x50] sm:$0xff] }
  0x12   : > { %199 = vst [vmem:[%s2060_s30 + $0x20] sm:$0xff] %v198_v4  ;;  %201 = vst [vmem:[%s2060_s30 + $0x28] sm:$0xff] %v200_v5  ;;  %v204_v7 = vld [vmem:[%s2055_s29 + $0x58] sm:$0xff]  ;;  %v206_v8 = vld [vmem:[%s2055_s29 + $0x80] sm:$0xff] }
  0x13   : > { %203 = vst [vmem:[%s2060_s30 + $0x30] sm:$0xff] %v202_v6  ;;  %205 = vst [vmem:[%s2060_s30 + $0x38] sm:$0xff] %v204_v7  ;;  %v208_v9 = vld [vmem:[%s2055_s29 + $0x88] sm:$0xff]  ;;  %v210_v10 = vld [vmem:[%s2055_s29 + $0x90] sm:$0xff] }
  0x14   : > { %207 = vst [vmem:[%s2060_s30 + $0x40] sm:$0xff] %v206_v8  ;;  %v212_v11 = vld [vmem:[%s2055_s29 + $0x98] sm:$0xff]  ;;  %209 = vst [vmem:[%s2060_s30 + $0x48] sm:$0xff] %v208_v9  ;;  %v214_v12 = vld [vmem:[%s2055_s29 + $0xc0] sm:$0xff] }
  0x15   : > { %211 = vst [vmem:[%s2060_s30 + $0x50] sm:$0xff] %v210_v10  ;;  %213 = vst [vmem:[%s2060_s30 + $0x58] sm:$0xff] %v212_v11  ;;  %v216_v13 = vld [vmem:[%s2055_s29 + $0xc8] sm:$0xff]  ;;  %v218_v14 = vld [vmem:[%s2055_s29 + $0xd0] sm:$0xff] }
  0x16   : > { %215 = vst [vmem:[%s2060_s30 + $0x60] sm:$0xff] %v214_v12  ;;  %217 = vst [vmem:[%s2060_s30 + $0x68] sm:$0xff] %v216_v13  ;;  %v220_v15 = vld [vmem:[%s2055_s29 + $0xd8] sm:$0xff]  ;;  %v222_v16 = vld [vmem:[%s2055_s29 + $0x100] sm:$0xff] }
  0x17   : > { %219 = vst [vmem:[%s2060_s30 + $0x70] sm:$0xff] %v218_v14  ;;  %v224_v17 = vld [vmem:[%s2055_s29 + $0x108] sm:$0xff]  ;;  %221 = vst [vmem:[%s2060_s30 + $0x78] sm:$0xff] %v220_v15  ;;  %v226_v18 = vld [vmem:[%s2055_s29 + $0x110] sm:$0xff] }
  0x18   : > { %223 = vst [vmem:[%s2060_s30 + $0x80] sm:$0xff] %v222_v16  ;;  %225 = vst [vmem:[%s2060_s30 + $0x88] sm:$0xff] %v224_v17  ;;  %v228_v19 = vld [vmem:[%s2055_s29 + $0x118] sm:$0xff]  ;;  %v230_v20 = vld [vmem:[%s2055_s29 + $0x140] sm:$0xff] }
  0x19   : > { %227 = vst [vmem:[%s2060_s30 + $0x90] sm:$0xff] %v226_v18  ;;  %229 = vst [vmem:[%s2060_s30 + $0x98] sm:$0xff] %v228_v19  ;;  %v232_v21 = vld [vmem:[%s2055_s29 + $0x148] sm:$0xff]  ;;  %v234_v22 = vld [vmem:[%s2055_s29 + $0x150] sm:$0xff] }
  0x1a   : > { %231 = vst [vmem:[%s2060_s30 + $0xa0] sm:$0xff] %v230_v20  ;;  %v236_v23 = vld [vmem:[%s2055_s29 + $0x158] sm:$0xff]  ;;  %233 = vst [vmem:[%s2060_s30 + $0xa8] sm:$0xff] %v232_v21  ;;  %v238_v24 = vld [vmem:[%s2055_s29 + $0x180] sm:$0xff] }
  0x1b   : > { %235 = vst [vmem:[%s2060_s30 + $0xb0] sm:$0xff] %v234_v22  ;;  %237 = vst [vmem:[%s2060_s30 + $0xb8] sm:$0xff] %v236_v23  ;;  %v240_v25 = vld [vmem:[%s2055_s29 + $0x188] sm:$0xff]  ;;  %v242_v26 = vld [vmem:[%s2055_s29 + $0x190] sm:$0xff] }
  0x1c   : > { %239 = vst [vmem:[%s2060_s30 + $0xc0] sm:$0xff] %v238_v24  ;;  %241 = vst [vmem:[%s2060_s30 + $0xc8] sm:$0xff] %v240_v25  ;;  %v244_v27 = vld [vmem:[%s2055_s29 + $0x198] sm:$0xff]  ;;  %v246_v28 = vld [vmem:[%s2055_s29 + $0x1c0] sm:$0xff] }
  0x1d   : > { %243 = vst [vmem:[%s2060_s30 + $0xd0] sm:$0xff] %v242_v26  ;;  %v248_v29 = vld [vmem:[%s2055_s29 + $0x1c8] sm:$0xff]  ;;  %245 = vst [vmem:[%s2060_s30 + $0xd8] sm:$0xff] %v244_v27  ;;  %v250_v30 = vld [vmem:[%s2055_s29 + $0x1d0] sm:$0xff] }
  0x1e   : > { %247 = vst [vmem:[%s2060_s30 + $0xe0] sm:$0xff] %v246_v28  ;;  %249 = vst [vmem:[%s2060_s30 + $0xe8] sm:$0xff] %v248_v29  ;;  %v252_v31 = vld [vmem:[%s2055_s29 + $0x1d8] sm:$0xff] }
  0x1f   : > { %251 = vst [vmem:[%s2060_s30 + $0xf0] sm:$0xff] %v250_v30  ;;  %253 = vst [vmem:[%s2060_s30 + $0xf8] sm:$0xff] %v252_v31 }
  0x20 PF: > { %259 = sbr.rel (!%p2043_p3) target bundleno = 52 (0x34), region = 47  ;;  %s261_s5 = sand.u32 (%p2043_p3), 1, %s1984_s16  }
  0x21   : > { %s1797_s6 = sshll.u32 (%p2043_p3), %s1988_s17, 5  ;;  %s1726_s7 = sshll.u32 (%p2043_p3), %s261_s5, 8 }
  0x22   : > { %s2130_s10 = scalar_lea.vmem (%p2043_p3), %s3366_s2, %s1797_s6  ;;  %s2135_s11 = scalar_lea.vmem (%p2043_p3), [#allocation3], %s1726_s7 }
  0x23   : > { %v279_v32 = vld [vmem:[%s2130_s10] sm:$0xff] (%p2043_p3)  ;;  %v281_v33 = vld [vmem:[%s2130_s10 + $0x8] sm:$0xff] (%p2043_p3)  ;;  %v283_v34 = vld [vmem:[%s2130_s10 + $0x10] sm:$0xff] (%p2043_p3) }
  0x24   : > { %280 = vst [vmem:[%s2135_s11] sm:$0xff] (%p2043_p3), %v279_v32  ;;  %282 = vst [vmem:[%s2135_s11 + $0x8] sm:$0xff] (%p2043_p3), %v281_v33  ;;  %v285_v35 = vld [vmem:[%s2130_s10 + $0x18] sm:$0xff] (%p2043_p3)  ;;  %v287_v36 = vld [vmem:[%s2130_s10 + $0x40] sm:$0xff] (%p2043_p3) }
  0x25   : > { %284 = vst [vmem:[%s2135_s11 + $0x10] sm:$0xff] %v283_v34  ;;  %v289_v37 = vld [vmem:[%s2130_s10 + $0x48] sm:$0xff]  ;;  %286 = vst [vmem:[%s2135_s11 + $0x18] sm:$0xff] %v285_v35  ;;  %v291_v38 = vld [vmem:[%s2130_s10 + $0x50] sm:$0xff] }
  0x26   : > { %288 = vst [vmem:[%s2135_s11 + $0x20] sm:$0xff] %v287_v36  ;;  %290 = vst [vmem:[%s2135_s11 + $0x28] sm:$0xff] %v289_v37  ;;  %v293_v39 = vld [vmem:[%s2130_s10 + $0x58] sm:$0xff]  ;;  %v295_v40 = vld [vmem:[%s2130_s10 + $0x80] sm:$0xff] }
  0x27   : > { %292 = vst [vmem:[%s2135_s11 + $0x30] sm:$0xff] %v291_v38  ;;  %294 = vst [vmem:[%s2135_s11 + $0x38] sm:$0xff] %v293_v39  ;;  %v297_v41 = vld [vmem:[%s2130_s10 + $0x88] sm:$0xff]  ;;  %v299_v42 = vld [vmem:[%s2130_s10 + $0x90] sm:$0xff] }
  0x28   : > { %296 = vst [vmem:[%s2135_s11 + $0x40] sm:$0xff] %v295_v40  ;;  %v301_v43 = vld [vmem:[%s2130_s10 + $0x98] sm:$0xff]  ;;  %298 = vst [vmem:[%s2135_s11 + $0x48] sm:$0xff] %v297_v41  ;;  %v303_v44 = vld [vmem:[%s2130_s10 + $0xc0] sm:$0xff] }
  0x29   : > { %300 = vst [vmem:[%s2135_s11 + $0x50] sm:$0xff] %v299_v42  ;;  %302 = vst [vmem:[%s2135_s11 + $0x58] sm:$0xff] %v301_v43  ;;  %v305_v45 = vld [vmem:[%s2130_s10 + $0xc8] sm:$0xff]  ;;  %v307_v46 = vld [vmem:[%s2130_s10 + $0xd0] sm:$0xff] }
  0x2a   : > { %304 = vst [vmem:[%s2135_s11 + $0x60] sm:$0xff] %v303_v44  ;;  %306 = vst [vmem:[%s2135_s11 + $0x68] sm:$0xff] %v305_v45  ;;  %v309_v47 = vld [vmem:[%s2130_s10 + $0xd8] sm:$0xff]  ;;  %v311_v48 = vld [vmem:[%s2130_s10 + $0x100] sm:$0xff] }
  0x2b   : > { %308 = vst [vmem:[%s2135_s11 + $0x70] sm:$0xff] %v307_v46  ;;  %v313_v49 = vld [vmem:[%s2130_s10 + $0x108] sm:$0xff]  ;;  %310 = vst [vmem:[%s2135_s11 + $0x78] sm:$0xff] %v309_v47  ;;  %v315_v50 = vld [vmem:[%s2130_s10 + $0x110] sm:$0xff] }
  0x2c   : > { %312 = vst [vmem:[%s2135_s11 + $0x80] sm:$0xff] %v311_v48  ;;  %314 = vst [vmem:[%s2135_s11 + $0x88] sm:$0xff] %v313_v49  ;;  %v317_v51 = vld [vmem:[%s2130_s10 + $0x118] sm:$0xff]  ;;  %v319_v52 = vld [vmem:[%s2130_s10 + $0x140] sm:$0xff] }
  0x2d   : > { %316 = vst [vmem:[%s2135_s11 + $0x90] sm:$0xff] %v315_v50  ;;  %318 = vst [vmem:[%s2135_s11 + $0x98] sm:$0xff] %v317_v51  ;;  %v321_v53 = vld [vmem:[%s2130_s10 + $0x148] sm:$0xff]  ;;  %v323_v54 = vld [vmem:[%s2130_s10 + $0x150] sm:$0xff] }
  0x2e   : > { %320 = vst [vmem:[%s2135_s11 + $0xa0] sm:$0xff] %v319_v52  ;;  %v325_v55 = vld [vmem:[%s2130_s10 + $0x158] sm:$0xff]  ;;  %322 = vst [vmem:[%s2135_s11 + $0xa8] sm:$0xff] %v321_v53  ;;  %v327_v56 = vld [vmem:[%s2130_s10 + $0x180] sm:$0xff] }
  0x2f   : > { %324 = vst [vmem:[%s2135_s11 + $0xb0] sm:$0xff] %v323_v54  ;;  %326 = vst [vmem:[%s2135_s11 + $0xb8] sm:$0xff] %v325_v55  ;;  %v329_v57 = vld [vmem:[%s2130_s10 + $0x188] sm:$0xff]  ;;  %v331_v58 = vld [vmem:[%s2130_s10 + $0x190] sm:$0xff] }
  0x30   : > { %328 = vst [vmem:[%s2135_s11 + $0xc0] sm:$0xff] %v327_v56  ;;  %330 = vst [vmem:[%s2135_s11 + $0xc8] sm:$0xff] %v329_v57  ;;  %v333_v59 = vld [vmem:[%s2130_s10 + $0x198] sm:$0xff]  ;;  %v335_v60 = vld [vmem:[%s2130_s10 + $0x1c0] sm:$0xff] }
  0x31   : > { %332 = vst [vmem:[%s2135_s11 + $0xd0] sm:$0xff] %v331_v58  ;;  %v337_v61 = vld [vmem:[%s2130_s10 + $0x1c8] sm:$0xff]  ;;  %334 = vst [vmem:[%s2135_s11 + $0xd8] sm:$0xff] %v333_v59  ;;  %v339_v62 = vld [vmem:[%s2130_s10 + $0x1d0] sm:$0xff] }
  0x32   : > { %336 = vst [vmem:[%s2135_s11 + $0xe0] sm:$0xff] %v335_v60  ;;  %338 = vst [vmem:[%s2135_s11 + $0xe8] sm:$0xff] %v337_v61  ;;  %v341_v63 = vld [vmem:[%s2130_s10 + $0x1d8] sm:$0xff] }
  0x33   : > { %340 = vst [vmem:[%s2135_s11 + $0xf0] sm:$0xff] %v339_v62  ;;  %342 = vst [vmem:[%s2135_s11 + $0xf8] sm:$0xff] %v341_v63 }
  0x34 PF: > { %p1729_p5 = scmp.ge.s32.totalorder %s1988_s17, 1  ;;  %p356_p6 = scmp.lt.s32.totalorder %s1988_s17, 3 }
  0x36   : > { %p357_p7 = pnand %p1729_p5, %p356_p6 }
  0x38   : > { %360 = sbr.rel (%p357_p7) target bundleno = 368 (0x170), region = 74 }
  0x3d   : > { %s363_s12 = sand.u32 1, %s1980_s15   ;;  %s1732_s13 = sshll.u32 %s1719_s18, 3 }
  0x3e   : > { %s2203_s14 = sshll.u32 %s363_s12, 8  ;;  %p410_p8 = scmp.lt.s32.totalorder %s1732_s13, 15 }
  0x3f   : > { %s2208_s20 = scalar_lea.vmem [#allocation2], %s2203_s14  ;;  %s2810_s23 = scalar_lea.vmem [#allocation3], %s2203_s14 }
  0x40   : > { %s3750_s13 = smov (!%p410_p8, %s1732_s13), 15  ;;  %v441_v0 = vld [vmem:[%s2208_s20] sm:$0xff]  ;;  %v442_v1 = vld [vmem:[%s2208_s20 + $0x8] sm:$0xff]  ;;  %v443_v2 = vld [vmem:[%s2208_s20 + $0x10] sm:$0xff] }
  0x41   : > { %v444_v3 = vld [vmem:[%s2208_s20 + $0x18] sm:$0xff]  ;;  %v445_v4 = vunpack.c.l.bf16 %v441_v0  ;;  %v446_v5 = vunpack.c.h.bf16 %v441_v0  ;;  %v447_v6 = vunpack.c.l.bf16 %v442_v1  ;;  %v448_v7 = vunpack.c.h.bf16 %v442_v1  ;;  %v2215_v8 = vld [vmem:[%s2208_s20 + $0x20] sm:$0xff]  ;;  %v2218_v9 = vld [vmem:[%s2208_s20 + $0x28] sm:$0xff]  ;;  %s1733_s15 = sshll.u32 %s3750_s13, 2  ;;  %s1735_s24 = sshll.u32 %s3750_s13, 3 }
  0x42   : > { %v449_v10 = vunpack.c.l.bf16 %v443_v2  ;;  %v450_v11 = vunpack.c.h.bf16 %v443_v2  ;;  %v451_v12 = vunpack.c.l.bf16 %v444_v3  ;;  %v452_v13 = vunpack.c.h.bf16 %v444_v3  ;;  %v2222_v14 = vld [vmem:[%s2208_s20 + $0x30] sm:$0xff]  ;;  %v2225_v15 = vld [vmem:[%s2208_s20 + $0x38] sm:$0xff]  ;;  %s413_s21 = scalar_lea.vmem %s3364_s0, %s1733_s15  ;;  %s3047_s27 = scalar_lea.vmem %s3367_s3, %s1735_s24 }
  0x43   : > { %v514_v16 = vunpack.c.l.bf16 %v2215_v8  ;;  %v515_v17 = vunpack.c.h.bf16 %v2215_v8  ;;  %v516_v18 = vunpack.c.l.bf16 %v2218_v9  ;;  %v517_v19 = vunpack.c.h.bf16 %v2218_v9  ;;  %v429_v20 = vld [vmem:[%s413_s21] sm:$0xff]  ;;  %v430_v21 = vld [vmem:[%s413_s21 + $0x8] sm:$0xff]  ;;  %v431_v22 = vld [vmem:[%s413_s21 + $0x10] sm:$0xff]  ;;  %s427_s30 = scalar_lea.vmem %s3368_s4, %s1735_s24 }
  0x44   : > { %v518_v23 = vunpack.c.l.bf16 %v2222_v14  ;;  %v519_v24 = vunpack.c.h.bf16 %v2222_v14  ;;  %v520_v25 = vunpack.c.l.bf16 %v2225_v15  ;;  %v521_v26 = vunpack.c.h.bf16 %v2225_v15  ;;  %v432_v27 = vld [vmem:[%s413_s21 + $0x18] sm:$0xff] }
  0x45   : > { %v2238_v28 = vunpack.c.l.bf16 %v429_v20  ;;  %v2240_v29 = vunpack.c.h.bf16 %v429_v20  ;;  %v2242_v30 = vunpack.c.l.bf16 %v430_v21  ;;  %v2244_v31 = vunpack.c.h.bf16 %v430_v21 }
  0x46   : > { %v2246_v32 = vunpack.c.l.bf16 %v431_v22  ;;  %v2248_v33 = vunpack.c.h.bf16 %v431_v22  ;;  %v2250_v34 = vunpack.c.l.bf16 %v432_v27  ;;  %v2252_v35 = vunpack.c.h.bf16 %v432_v27 }
  0x47   : > { %v453_v36 = vmul.f32 %v445_v4, %v2238_v28  ;;  %v454_v37 = vmul.f32 %v446_v5, %v2240_v29  ;;  %v455_v38 = vmul.f32 %v447_v6, %v2242_v30  ;;  %v456_v39 = vmul.f32 %v448_v7, %v2244_v31 }
  0x48   : > { %v457_v40 = vmul.f32 %v449_v10, %v2246_v32  ;;  %v458_v41 = vmul.f32 %v450_v11, %v2248_v33  ;;  %v459_v42 = vmul.f32 %v451_v12, %v2250_v34  ;;  %v460_v43 = vmul.f32 %v452_v13, %v2252_v35 }
  0x49   : > { %v461_v44 = vrot.slane %v453_v36, 4  ;;  %v467_v45 = vrot.slane %v454_v37, 4  ;;  %v473_v46 = vrot.slane %v455_v38, 4  ;;  %v479_v47 = vrot.slane %v456_v39, 4 }
  0x4a   : > { %v485_v48 = vrot.slane %v457_v40, 4  ;;  %v491_v49 = vrot.slane %v458_v41, 4  ;;  %v497_v50 = vrot.slane %v459_v42, 4  ;;  %v503_v51 = vrot.slane %v460_v43, 4 }
  0x4b   : > { %v462_v52 = vadd.f32 %v461_v44, %v453_v36  ;;  %v468_v53 = vadd.f32 %v467_v45, %v454_v37  ;;  %v474_v54 = vadd.f32 %v473_v46, %v455_v38  ;;  %v480_v55 = vadd.f32 %v479_v47, %v456_v39 }
  0x4c   : > { %v486_v56 = vadd.f32 %v485_v48, %v457_v40  ;;  %v492_v57 = vadd.f32 %v491_v49, %v458_v41  ;;  %v498_v58 = vadd.f32 %v497_v50, %v459_v42  ;;  %v504_v59 = vadd.f32 %v503_v51, %v460_v43 }
  0x4d   : > { %v463_v60 = vrot.slane %v462_v52, 2  ;;  %v469_v61 = vrot.slane %v468_v53, 2  ;;  %v475_v62 = vrot.slane %v474_v54, 2  ;;  %v481_v63 = vrot.slane %v480_v55, 2 }
  0x4e   : > { %v487_v0 = vrot.slane %v486_v56, 2  ;;  %v493_v1 = vrot.slane %v492_v57, 2  ;;  %v499_v2 = vrot.slane %v498_v58, 2  ;;  %v505_v3 = vrot.slane %v504_v59, 2 }
  0x4f   : > { %v464_v4 = vadd.f32 %v463_v60, %v462_v52  ;;  %v470_v5 = vadd.f32 %v469_v61, %v468_v53  ;;  %v476_v6 = vadd.f32 %v475_v62, %v474_v54  ;;  %v482_v7 = vadd.f32 %v481_v63, %v480_v55 }
  0x50   : > { %v488_v10 = vadd.f32 %v487_v0, %v486_v56  ;;  %v494_v11 = vadd.f32 %v493_v1, %v492_v57  ;;  %v500_v12 = vadd.f32 %v499_v2, %v498_v58  ;;  %v506_v13 = vadd.f32 %v505_v3, %v504_v59 }
  0x51   : > { %v465_v20 = vrot.slane %v464_v4, 1  ;;  %v471_v21 = vrot.slane %v470_v5, 1  ;;  %v477_v22 = vrot.slane %v476_v6, 1  ;;  %v483_v27 = vrot.slane %v482_v7, 1 }
  0x52   : > { %v489_v36 = vrot.slane %v488_v10, 1  ;;  %v495_v37 = vrot.slane %v494_v11, 1  ;;  %v501_v38 = vrot.slane %v500_v12, 1  ;;  %v507_v39 = vrot.slane %v506_v13, 1 }
  0x53   : > { %v2262_v40 = vadd.f32 %v465_v20, %v464_v4  ;;  %v2264_v41 = vadd.f32 %v471_v21, %v470_v5  ;;  %v2266_v42 = vadd.f32 %v477_v22, %v476_v6  ;;  %v2268_v43 = vadd.f32 %v483_v27, %v482_v7 }
  0x54   : > { %v2270_v44 = vadd.f32 %v489_v36, %v488_v10  ;;  %v2272_v45 = vadd.f32 %v495_v37, %v494_v11  ;;  %v2274_v46 = vadd.f32 %v501_v38, %v500_v12  ;;  %v2276_v47 = vadd.f32 %v507_v39, %v506_v13 }
  0x55   : > { %v522_v48 = vmul.f32 %v514_v16, %v2238_v28  ;;  %v523_v49 = vmul.f32 %v515_v17, %v2240_v29  ;;  %v524_v50 = vmul.f32 %v516_v18, %v2242_v30  ;;  %v525_v51 = vmul.f32 %v517_v19, %v2244_v31 }
  0x56   : > { %v526_v52 = vmul.f32 %v518_v23, %v2246_v32  ;;  %v527_v16 = vmul.f32 %v519_v24, %v2248_v33  ;;  %v528_v8 = vmul.f32 %v520_v25, %v2250_v34  ;;  %v529_v17 = vmul.f32 %v521_v26, %v2252_v35 }
  0x57   : > { %v530_v18 = vrot.slane %v522_v48, 4  ;;  %v536_v53 = vrot.slane %v523_v49, 4  ;;  %v542_v9 = vrot.slane %v524_v50, 4  ;;  %v548_v19 = vrot.slane %v525_v51, 4 }
  0x58   : > { %v554_v54 = vrot.slane %v526_v52, 4  ;;  %v560_v55 = vrot.slane %v527_v16, 4  ;;  %v566_v56 = vrot.slane %v528_v8, 4  ;;  %v572_v23 = vrot.slane %v529_v17, 4 }
  0x59   : > { %v531_v57 = vadd.f32 %v530_v18, %v522_v48  ;;  %v537_v58 = vadd.f32 %v536_v53, %v523_v49  ;;  %v543_v14 = vadd.f32 %v542_v9, %v524_v50  ;;  %v549_v24 = vadd.f32 %v548_v19, %v525_v51  ;;  %v1742_v48 = vld [vmem:[%s2208_s20 + $0x40] sm:$0xff]  ;;  %v1743_v49 = vld [vmem:[%s2208_s20 + $0x48] sm:$0xff] }
  0x5a   : > { %v555_v59 = vadd.f32 %v554_v54, %v526_v52  ;;  %v561_v60 = vadd.f32 %v560_v55, %v527_v16  ;;  %v567_v61 = vadd.f32 %v566_v56, %v528_v8  ;;  %v573_v25 = vadd.f32 %v572_v23, %v529_v17  ;;  %v1744_v8 = vld [vmem:[%s2208_s20 + $0x50] sm:$0xff]  ;;  %v1745_v17 = vld [vmem:[%s2208_s20 + $0x58] sm:$0xff] }
  0x5b   : > { %v532_v62 = vrot.slane %v531_v57, 2  ;;  %v538_v63 = vrot.slane %v537_v58, 2  ;;  %v544_v15 = vrot.slane %v543_v14, 2  ;;  %v550_v26 = vrot.slane %v549_v24, 2 }
  0x5c   : > { %v556_v0 = vrot.slane %v555_v59, 2  ;;  %v562_v1 = vrot.slane %v561_v60, 2  ;;  %v568_v2 = vrot.slane %v567_v61, 2  ;;  %v574_v3 = vrot.slane %v573_v25, 2 }
  0x5d   : > { %v533_v4 = vadd.f32 %v532_v62, %v531_v57  ;;  %v539_v5 = vadd.f32 %v538_v63, %v537_v58  ;;  %v545_v6 = vadd.f32 %v544_v15, %v543_v14  ;;  %v551_v7 = vadd.f32 %v550_v26, %v549_v24 }
  0x5e   : > { %v557_v10 = vadd.f32 %v556_v0, %v555_v59  ;;  %v563_v11 = vadd.f32 %v562_v1, %v561_v60  ;;  %v569_v12 = vadd.f32 %v568_v2, %v567_v61  ;;  %v575_v13 = vadd.f32 %v574_v3, %v573_v25 }
  0x5f   : > { %v534_v20 = vrot.slane %v533_v4, 1  ;;  %v540_v21 = vrot.slane %v539_v5, 1  ;;  %v546_v22 = vrot.slane %v545_v6, 1  ;;  %v552_v27 = vrot.slane %v551_v7, 1 }
  0x60   : > { %v558_v36 = vrot.slane %v557_v10, 1  ;;  %v564_v37 = vrot.slane %v563_v11, 1  ;;  %v570_v38 = vrot.slane %v569_v12, 1  ;;  %v576_v39 = vrot.slane %v575_v13, 1 }
  0x61   : > { %v2304_v50 = vadd.f32 %v534_v20, %v533_v4  ;;  %v2306_v51 = vadd.f32 %v540_v21, %v539_v5  ;;  %v2308_v52 = vadd.f32 %v546_v22, %v545_v6  ;;  %v2310_v16 = vadd.f32 %v552_v27, %v551_v7 }
  0x62   : > { %v2314_v18 = vadd.f32 %v558_v36, %v557_v10  ;;  %v2316_v53 = vadd.f32 %v564_v37, %v563_v11  ;;  %v2318_v9 = vadd.f32 %v570_v38, %v569_v12  ;;  %v2320_v19 = vadd.f32 %v576_v39, %v575_v13 }
  0x63   : > { %v583_v54 = vunpack.c.l.bf16 %v1742_v48  ;;  %v584_v55 = vunpack.c.h.bf16 %v1742_v48  ;;  %v585_v56 = vunpack.c.l.bf16 %v1743_v49  ;;  %v586_v23 = vunpack.c.h.bf16 %v1743_v49 }
  0x64   : > { %v587_v57 = vunpack.c.l.bf16 %v1744_v8  ;;  %v588_v58 = vunpack.c.h.bf16 %v1744_v8  ;;  %v589_v14 = vunpack.c.l.bf16 %v1745_v17  ;;  %v590_v24 = vunpack.c.h.bf16 %v1745_v17 }
  0x65   : > { %v591_v59 = vmul.f32 %v583_v54, %v2238_v28  ;;  %v592_v60 = vmul.f32 %v584_v55, %v2240_v29  ;;  %v593_v61 = vmul.f32 %v585_v56, %v2242_v30  ;;  %v594_v25 = vmul.f32 %v586_v23, %v2244_v31 }
  0x66   : > { %v595_v62 = vmul.f32 %v587_v57, %v2246_v32  ;;  %v596_v63 = vmul.f32 %v588_v58, %v2248_v33  ;;  %v597_v15 = vmul.f32 %v589_v14, %v2250_v34  ;;  %v598_v26 = vmul.f32 %v590_v24, %v2252_v35 }
  0x67   : > { %v599_v0 = vrot.slane %v591_v59, 4  ;;  %v605_v1 = vrot.slane %v592_v60, 4  ;;  %v611_v2 = vrot.slane %v593_v61, 4  ;;  %v617_v3 = vrot.slane %v594_v25, 4 }
  0x68   : > { %v623_v4 = vrot.slane %v595_v62, 4  ;;  %v629_v5 = vrot.slane %v596_v63, 4  ;;  %v635_v6 = vrot.slane %v597_v15, 4  ;;  %v641_v7 = vrot.slane %v598_v26, 4 }
  0x69   : > { %v600_v10 = vadd.f32 %v599_v0, %v591_v59  ;;  %v606_v11 = vadd.f32 %v605_v1, %v592_v60  ;;  %v612_v12 = vadd.f32 %v611_v2, %v593_v61  ;;  %v618_v13 = vadd.f32 %v617_v3, %v594_v25  ;;  %v1746_v0 = vld [vmem:[%s2208_s20 + $0x60] sm:$0xff]  ;;  %v1747_v1 = vld [vmem:[%s2208_s20 + $0x68] sm:$0xff] }
  0x6a   : > { %v624_v20 = vadd.f32 %v623_v4, %v595_v62  ;;  %v630_v21 = vadd.f32 %v629_v5, %v596_v63  ;;  %v636_v22 = vadd.f32 %v635_v6, %v597_v15  ;;  %v642_v27 = vadd.f32 %v641_v7, %v598_v26  ;;  %v1748_v6 = vld [vmem:[%s2208_s20 + $0x70] sm:$0xff]  ;;  %v1749_v7 = vld [vmem:[%s2208_s20 + $0x78] sm:$0xff] }
  0x6b   : > { %v601_v36 = vrot.slane %v600_v10, 2  ;;  %v607_v37 = vrot.slane %v606_v11, 2  ;;  %v613_v38 = vrot.slane %v612_v12, 2  ;;  %v619_v39 = vrot.slane %v618_v13, 2 }
  0x6c   : > { %v625_v48 = vrot.slane %v624_v20, 2  ;;  %v631_v49 = vrot.slane %v630_v21, 2  ;;  %v637_v8 = vrot.slane %v636_v22, 2  ;;  %v643_v17 = vrot.slane %v642_v27, 2 }
  0x6d   : > { %v602_v54 = vadd.f32 %v601_v36, %v600_v10  ;;  %v608_v55 = vadd.f32 %v607_v37, %v606_v11  ;;  %v614_v56 = vadd.f32 %v613_v38, %v612_v12  ;;  %v620_v23 = vadd.f32 %v619_v39, %v618_v13 }
  0x6e   : > { %v626_v57 = vadd.f32 %v625_v48, %v624_v20  ;;  %v632_v58 = vadd.f32 %v631_v49, %v630_v21  ;;  %v638_v14 = vadd.f32 %v637_v8, %v636_v22  ;;  %v644_v24 = vadd.f32 %v643_v17, %v642_v27 }
  0x6f   : > { %v603_v59 = vrot.slane %v602_v54, 1  ;;  %v609_v60 = vrot.slane %v608_v55, 1  ;;  %v615_v61 = vrot.slane %v614_v56, 1  ;;  %v621_v25 = vrot.slane %v620_v23, 1 }
  0x70   : > { %v627_v62 = vrot.slane %v626_v57, 1  ;;  %v633_v63 = vrot.slane %v632_v58, 1  ;;  %v639_v15 = vrot.slane %v638_v14, 1  ;;  %v645_v26 = vrot.slane %v644_v24, 1 }
  0x71   : > { %v2332_v2 = vadd.f32 %v603_v59, %v602_v54  ;;  %v2334_v3 = vadd.f32 %v609_v60, %v608_v55  ;;  %v2336_v4 = vadd.f32 %v615_v61, %v614_v56  ;;  %v2338_v5 = vadd.f32 %v621_v25, %v620_v23 }
  0x72   : > { %v2342_v10 = vadd.f32 %v627_v62, %v626_v57  ;;  %v2344_v11 = vadd.f32 %v633_v63, %v632_v58  ;;  %v2346_v12 = vadd.f32 %v639_v15, %v638_v14  ;;  %v2348_v13 = vadd.f32 %v645_v26, %v644_v24 }
  0x73   : > { %v652_v20 = vunpack.c.l.bf16 %v1746_v0  ;;  %v653_v21 = vunpack.c.h.bf16 %v1746_v0  ;;  %v654_v22 = vunpack.c.l.bf16 %v1747_v1  ;;  %v655_v27 = vunpack.c.h.bf16 %v1747_v1 }
  0x74   : > { %3479 = vst [vmem:[#allocation4_spill] sm:$0xff] %v2344_v11  ;;  %3480 = vst [vmem:[#allocation5_spill] sm:$0xff] %v2346_v12  ;;  %v656_v36 = vunpack.c.l.bf16 %v1748_v6  ;;  %v657_v37 = vunpack.c.h.bf16 %v1748_v6  ;;  %v658_v38 = vunpack.c.l.bf16 %v1749_v7  ;;  %v659_v39 = vunpack.c.h.bf16 %v1749_v7 }
  0x75   : > { %3481 = vst [vmem:[#allocation6_spill] sm:$0xff] %v2348_v13  ;;  %v660_v48 = vmul.f32 %v652_v20, %v2238_v28  ;;  %v661_v49 = vmul.f32 %v653_v21, %v2240_v29  ;;  %v662_v8 = vmul.f32 %v654_v22, %v2242_v30  ;;  %v663_v17 = vmul.f32 %v655_v27, %v2244_v31 }
  0x76   : > { %v664_v54 = vmul.f32 %v656_v36, %v2246_v32  ;;  %v665_v55 = vmul.f32 %v657_v37, %v2248_v33  ;;  %v666_v56 = vmul.f32 %v658_v38, %v2250_v34  ;;  %v667_v23 = vmul.f32 %v659_v39, %v2252_v35 }
  0x77   : > { %v668_v57 = vrot.slane %v660_v48, 4  ;;  %v674_v58 = vrot.slane %v661_v49, 4  ;;  %v680_v14 = vrot.slane %v662_v8, 4  ;;  %v686_v24 = vrot.slane %v663_v17, 4 }
  0x78   : > { %v692_v59 = vrot.slane %v664_v54, 4  ;;  %v698_v60 = vrot.slane %v665_v55, 4  ;;  %v704_v61 = vrot.slane %v666_v56, 4  ;;  %v710_v25 = vrot.slane %v667_v23, 4 }
  0x79   : > { %v669_v62 = vadd.f32 %v668_v57, %v660_v48  ;;  %v675_v63 = vadd.f32 %v674_v58, %v661_v49  ;;  %v681_v15 = vadd.f32 %v680_v14, %v662_v8  ;;  %v687_v26 = vadd.f32 %v686_v24, %v663_v17 }
  0x7a   : > { %v693_v0 = vadd.f32 %v692_v59, %v664_v54  ;;  %v699_v1 = vadd.f32 %v698_v60, %v665_v55  ;;  %v705_v6 = vadd.f32 %v704_v61, %v666_v56  ;;  %v711_v7 = vadd.f32 %v710_v25, %v667_v23  ;;  %v1750_v61 = vld [vmem:[%s2208_s20 + $0x80] sm:$0xff]  ;;  %v1751_v25 = vld [vmem:[%s2208_s20 + $0x88] sm:$0xff] }
  0x7b   : > { %v670_v20 = vrot.slane %v669_v62, 2  ;;  %v676_v21 = vrot.slane %v675_v63, 2  ;;  %v682_v22 = vrot.slane %v681_v15, 2  ;;  %v688_v27 = vrot.slane %v687_v26, 2 }
  0x7c   : > { %v694_v36 = vrot.slane %v693_v0, 2  ;;  %v700_v37 = vrot.slane %v699_v1, 2  ;;  %v706_v38 = vrot.slane %v705_v6, 2  ;;  %v712_v39 = vrot.slane %v711_v7, 2 }
  0x7d   : > { %v671_v13 = vadd.f32 %v670_v20, %v669_v62  ;;  %v677_v12 = vadd.f32 %v676_v21, %v675_v63  ;;  %v683_v48 = vadd.f32 %v682_v22, %v681_v15  ;;  %v689_v49 = vadd.f32 %v688_v27, %v687_v26 }
  0x7e   : > { %v695_v8 = vadd.f32 %v694_v36, %v693_v0  ;;  %v701_v17 = vadd.f32 %v700_v37, %v699_v1  ;;  %v707_v54 = vadd.f32 %v706_v38, %v705_v6  ;;  %v713_v55 = vadd.f32 %v712_v39, %v711_v7  ;;  %v1752_v0 = vld [vmem:[%s2208_s20 + $0x90] sm:$0xff]  ;;  %v1753_v1 = vld [vmem:[%s2208_s20 + $0x98] sm:$0xff] }
  0x7f   : > { %v672_v56 = vrot.slane %v671_v13, 1  ;;  %v678_v23 = vrot.slane %v677_v12, 1  ;;  %v684_v57 = vrot.slane %v683_v48, 1  ;;  %v690_v58 = vrot.slane %v689_v49, 1 }
  0x80   : > { %v696_v14 = vrot.slane %v695_v8, 1  ;;  %v702_v24 = vrot.slane %v701_v17, 1  ;;  %v708_v59 = vrot.slane %v707_v54, 1  ;;  %v714_v60 = vrot.slane %v713_v55, 1 }
  0x81   : > { %v2360_v62 = vadd.f32 %v672_v56, %v671_v13  ;;  %v2362_v63 = vadd.f32 %v678_v23, %v677_v12  ;;  %v2364_v15 = vadd.f32 %v684_v57, %v683_v48  ;;  %v2366_v26 = vadd.f32 %v690_v58, %v689_v49 }
  0x82   : > { %v2370_v6 = vadd.f32 %v696_v14, %v695_v8  ;;  %v2372_v7 = vadd.f32 %v702_v24, %v701_v17  ;;  %v2374_v20 = vadd.f32 %v708_v59, %v707_v54  ;;  %v2376_v21 = vadd.f32 %v714_v60, %v713_v55 }
  0x83   : > { %3482 = vst [vmem:[#allocation7_spill] sm:$0xff] %v2360_v62  ;;  %3483 = vst [vmem:[#allocation8_spill] sm:$0xff] %v2362_v63  ;;  %v721_v22 = vunpack.c.l.bf16 %v1750_v61  ;;  %v722_v27 = vunpack.c.h.bf16 %v1750_v61  ;;  %v723_v13 = vunpack.c.l.bf16 %v1751_v25  ;;  %v724_v36 = vunpack.c.h.bf16 %v1751_v25 }
  0x84   : > { %3484 = vst [vmem:[#allocation9_spill] sm:$0xff] %v2364_v15  ;;  %3485 = vst [vmem:[#allocation10_spill] sm:$0xff] %v2366_v26  ;;  %v725_v12 = vunpack.c.l.bf16 %v1752_v0  ;;  %v726_v37 = vunpack.c.h.bf16 %v1752_v0  ;;  %v727_v38 = vunpack.c.l.bf16 %v1753_v1  ;;  %v728_v39 = vunpack.c.h.bf16 %v1753_v1 }
  0x85   : > { %3486 = vst [vmem:[#allocation11_spill] sm:$0xff] %v2370_v6  ;;  %3487 = vst [vmem:[#allocation12_spill] sm:$0xff] %v2372_v7  ;;  %v729_v48 = vmul.f32 %v721_v22, %v2238_v28  ;;  %v730_v49 = vmul.f32 %v722_v27, %v2240_v29  ;;  %v731_v8 = vmul.f32 %v723_v13, %v2242_v30 }
  0x86   : > { %3488 = vst [vmem:[#allocation13_spill] sm:$0xff] %v2374_v20  ;;  %3489 = vst [vmem:[#allocation14_spill] sm:$0xff] %v2376_v21  ;;  %v732_v17 = vmul.f32 %v724_v36, %v2244_v31  ;;  %v733_v54 = vmul.f32 %v725_v12, %v2246_v32  ;;  %v734_v55 = vmul.f32 %v726_v37, %v2248_v33 }
  0x87   : > { %v735_v56 = vmul.f32 %v727_v38, %v2250_v34  ;;  %v736_v23 = vmul.f32 %v728_v39, %v2252_v35  ;;  %v737_v57 = vrot.slane %v729_v48, 4  ;;  %v743_v58 = vrot.slane %v730_v49, 4 }
  0x88   : > { %v749_v14 = vrot.slane %v731_v8, 4  ;;  %v755_v24 = vrot.slane %v732_v17, 4  ;;  %v761_v59 = vrot.slane %v733_v54, 4  ;;  %v767_v60 = vrot.slane %v734_v55, 4 }
  0x89   : > { %v773_v61 = vrot.slane %v735_v56, 4  ;;  %v779_v25 = vrot.slane %v736_v23, 4  ;;  %v738_v0 = vadd.f32 %v737_v57, %v729_v48  ;;  %v744_v1 = vadd.f32 %v743_v58, %v730_v49 }
  0x8a   : > { %v750_v22 = vadd.f32 %v749_v14, %v731_v8  ;;  %v756_v27 = vadd.f32 %v755_v24, %v732_v17  ;;  %v762_v13 = vadd.f32 %v761_v59, %v733_v54  ;;  %v768_v36 = vadd.f32 %v767_v60, %v734_v55 }
  0x8b   : > { %v774_v12 = vadd.f32 %v773_v61, %v735_v56  ;;  %v780_v37 = vadd.f32 %v779_v25, %v736_v23  ;;  %v739_v21 = vrot.slane %v738_v0, 2  ;;  %v745_v38 = vrot.slane %v744_v1, 2  ;;  %v1755_v61 = vld [vmem:[%s2208_s20 + $0xa8] sm:$0xff] }
  0x8c   : > { %v751_v20 = vrot.slane %v750_v22, 2  ;;  %v757_v39 = vrot.slane %v756_v27, 2  ;;  %v763_v7 = vrot.slane %v762_v13, 2  ;;  %v769_v6 = vrot.slane %v768_v36, 2 }
  0x8d   : > { %v775_v26 = vrot.slane %v774_v12, 2  ;;  %v781_v15 = vrot.slane %v780_v37, 2  ;;  %v740_v63 = vadd.f32 %v739_v21, %v738_v0  ;;  %v746_v62 = vadd.f32 %v745_v38, %v744_v1  ;;  %v1754_v21 = vld [vmem:[%s2208_s20 + $0xa0] sm:$0xff] }
  0x8e   : > { %v752_v48 = vadd.f32 %v751_v20, %v750_v22  ;;  %v758_v49 = vadd.f32 %v757_v39, %v756_v27  ;;  %v764_v8 = vadd.f32 %v763_v7, %v762_v13  ;;  %v770_v17 = vadd.f32 %v769_v6, %v768_v36  ;;  %v1757_v6 = vld [vmem:[%s2208_s20 + $0xb8] sm:$0xff] }
  0x8f   : > { %v776_v54 = vadd.f32 %v775_v26, %v774_v12  ;;  %v782_v55 = vadd.f32 %v781_v15, %v780_v37  ;;  %v741_v56 = vrot.slane %v740_v63, 1  ;;  %v747_v23 = vrot.slane %v746_v62, 1  ;;  %v1756_v15 = vld [vmem:[%s2208_s20 + $0xb0] sm:$0xff] }
  0x90   : > { %v753_v57 = vrot.slane %v752_v48, 1  ;;  %v759_v58 = vrot.slane %v758_v49, 1  ;;  %v765_v14 = vrot.slane %v764_v8, 1  ;;  %v771_v24 = vrot.slane %v770_v17, 1 }
  0x91   : > { %v777_v59 = vrot.slane %v776_v54, 1  ;;  %v783_v60 = vrot.slane %v782_v55, 1  ;;  %v2388_v25 = vadd.f32 %v741_v56, %v740_v63  ;;  %v2390_v20 = vadd.f32 %v747_v23, %v746_v62 }
  0x92   : > { %v2392_v7 = vadd.f32 %v753_v57, %v752_v48  ;;  %v2394_v26 = vadd.f32 %v759_v58, %v758_v49  ;;  %v2398_v0 = vadd.f32 %v765_v14, %v764_v8  ;;  %v2400_v1 = vadd.f32 %v771_v24, %v770_v17 }
  0x93   : > { %3490 = vst [vmem:[#allocation15_spill] sm:$0xff] %v2388_v25  ;;  %3491 = vst [vmem:[#allocation16_spill] sm:$0xff] %v2390_v20  ;;  %v2402_v22 = vadd.f32 %v777_v59, %v776_v54  ;;  %v2404_v27 = vadd.f32 %v783_v60, %v782_v55  ;;  %v790_v13 = vunpack.c.l.bf16 %v1754_v21  ;;  %v791_v36 = vunpack.c.h.bf16 %v1754_v21 }
  0x94   : > { %3492 = vst [vmem:[#allocation17_spill] sm:$0xff] %v2392_v7  ;;  %3493 = vst [vmem:[#allocation18_spill] sm:$0xff] %v2394_v26  ;;  %v792_v63 = vunpack.c.l.bf16 %v1755_v61  ;;  %v793_v12 = vunpack.c.h.bf16 %v1755_v61  ;;  %v794_v62 = vunpack.c.l.bf16 %v1756_v15  ;;  %v795_v37 = vunpack.c.h.bf16 %v1756_v15 }
  0x95   : > { %3494 = vst [vmem:[#allocation19_spill] sm:$0xff] %v2398_v0  ;;  %3495 = vst [vmem:[#allocation20_spill] sm:$0xff] %v2400_v1  ;;  %v796_v38 = vunpack.c.l.bf16 %v1757_v6  ;;  %v797_v39 = vunpack.c.h.bf16 %v1757_v6  ;;  %v798_v48 = vmul.f32 %v790_v13, %v2238_v28  ;;  %v799_v49 = vmul.f32 %v791_v36, %v2240_v29 }
  0x96   : > { %3496 = vst [vmem:[#allocation21_spill] sm:$0xff] %v2402_v22  ;;  %3497 = vst [vmem:[#allocation22_spill] sm:$0xff] %v2404_v27  ;;  %v800_v8 = vmul.f32 %v792_v63, %v2242_v30  ;;  %v801_v17 = vmul.f32 %v793_v12, %v2244_v31  ;;  %v802_v54 = vmul.f32 %v794_v62, %v2246_v32 }
  0x97   : > { %v803_v55 = vmul.f32 %v795_v37, %v2248_v33  ;;  %v804_v56 = vmul.f32 %v796_v38, %v2250_v34  ;;  %v805_v23 = vmul.f32 %v797_v39, %v2252_v35  ;;  %v806_v57 = vrot.slane %v798_v48, 4 }
  0x98   : > { %v812_v58 = vrot.slane %v799_v49, 4  ;;  %v818_v14 = vrot.slane %v800_v8, 4  ;;  %v824_v24 = vrot.slane %v801_v17, 4  ;;  %v830_v59 = vrot.slane %v802_v54, 4 }
  0x99   : > { %v836_v60 = vrot.slane %v803_v55, 4  ;;  %v842_v21 = vrot.slane %v804_v56, 4  ;;  %v848_v61 = vrot.slane %v805_v23, 4  ;;  %v807_v15 = vadd.f32 %v806_v57, %v798_v48 }
  0x9a   : > { %v813_v6 = vadd.f32 %v812_v58, %v799_v49  ;;  %v819_v13 = vadd.f32 %v818_v14, %v800_v8  ;;  %v825_v36 = vadd.f32 %v824_v24, %v801_v17  ;;  %v831_v63 = vadd.f32 %v830_v59, %v802_v54 }
  0x9b   : > { %v837_v12 = vadd.f32 %v836_v60, %v803_v55  ;;  %v843_v62 = vadd.f32 %v842_v21, %v804_v56  ;;  %v849_v37 = vadd.f32 %v848_v61, %v805_v23  ;;  %v808_v27 = vrot.slane %v807_v15, 2  ;;  %v1759_v21 = vld [vmem:[%s2208_s20 + $0xc8] sm:$0xff] }
  0x9c   : > { %v814_v38 = vrot.slane %v813_v6, 2  ;;  %v820_v22 = vrot.slane %v819_v13, 2  ;;  %v826_v39 = vrot.slane %v825_v36, 2  ;;  %v832_v1 = vrot.slane %v831_v63, 2 }
  0x9d   : > { %v838_v0 = vrot.slane %v837_v12, 2  ;;  %v844_v26 = vrot.slane %v843_v62, 2  ;;  %v850_v7 = vrot.slane %v849_v37, 2  ;;  %v809_v20 = vadd.f32 %v808_v27, %v807_v15  ;;  %v1758_v27 = vld [vmem:[%s2208_s20 + $0xc0] sm:$0xff] }
  0x9e   : > { %v815_v25 = vadd.f32 %v814_v38, %v813_v6  ;;  %v821_v48 = vadd.f32 %v820_v22, %v819_v13  ;;  %v827_v49 = vadd.f32 %v826_v39, %v825_v36  ;;  %v833_v8 = vadd.f32 %v832_v1, %v831_v63 }
  0x9f   : > { %v839_v17 = vadd.f32 %v838_v0, %v837_v12  ;;  %v845_v54 = vadd.f32 %v844_v26, %v843_v62  ;;  %v851_v55 = vadd.f32 %v850_v7, %v849_v37  ;;  %v810_v56 = vrot.slane %v809_v20, 1  ;;  %v1760_v7 = vld [vmem:[%s2208_s20 + $0xd0] sm:$0xff]  ;;  %v1761_v0 = vld [vmem:[%s2208_s20 + $0xd8] sm:$0xff] }
  0xa0   : > { %v816_v23 = vrot.slane %v815_v25, 1  ;;  %v822_v57 = vrot.slane %v821_v48, 1  ;;  %v828_v58 = vrot.slane %v827_v49, 1  ;;  %v834_v14 = vrot.slane %v833_v8, 1 }
  0xa1   : > { %v840_v24 = vrot.slane %v839_v17, 1  ;;  %v846_v59 = vrot.slane %v845_v54, 1  ;;  %v852_v60 = vrot.slane %v851_v55, 1  ;;  %v2416_v61 = vadd.f32 %v810_v56, %v809_v20 }
  0xa2   : > { %v2418_v22 = vadd.f32 %v816_v23, %v815_v25  ;;  %v2420_v1 = vadd.f32 %v822_v57, %v821_v48  ;;  %v2422_v26 = vadd.f32 %v828_v58, %v827_v49  ;;  %v2426_v15 = vadd.f32 %v834_v14, %v833_v8 }
  0xa3   : > { %3498 = vst [vmem:[#allocation23_spill] sm:$0xff] %v2416_v61  ;;  %v2428_v6 = vadd.f32 %v840_v24, %v839_v17  ;;  %v2430_v13 = vadd.f32 %v846_v59, %v845_v54  ;;  %v2432_v36 = vadd.f32 %v852_v60, %v851_v55  ;;  %v859_v63 = vunpack.c.l.bf16 %v1758_v27 }
  0xa4   : > { %3499 = vst [vmem:[#allocation24_spill] sm:$0xff] %v2418_v22  ;;  %3500 = vst [vmem:[#allocation25_spill] sm:$0xff] %v2420_v1  ;;  %v860_v12 = vunpack.c.h.bf16 %v1758_v27  ;;  %v861_v20 = vunpack.c.l.bf16 %v1759_v21  ;;  %v862_v62 = vunpack.c.h.bf16 %v1759_v21  ;;  %v863_v25 = vunpack.c.l.bf16 %v1760_v7 }
  0xa5   : > { %3501 = vst [vmem:[#allocation26_spill] sm:$0xff] %v2422_v26  ;;  %3502 = vst [vmem:[#allocation27_spill] sm:$0xff] %v2426_v15  ;;  %v864_v37 = vunpack.c.h.bf16 %v1760_v7  ;;  %v865_v38 = vunpack.c.l.bf16 %v1761_v0  ;;  %v866_v39 = vunpack.c.h.bf16 %v1761_v0  ;;  %v867_v48 = vmul.f32 %v859_v63, %v2238_v28 }
  0xa6   : > { %3503 = vst [vmem:[#allocation28_spill] sm:$0xff] %v2428_v6  ;;  %3504 = vst [vmem:[#allocation29_spill] sm:$0xff] %v2430_v13  ;;  %v868_v49 = vmul.f32 %v860_v12, %v2240_v29  ;;  %v869_v8 = vmul.f32 %v861_v20, %v2242_v30  ;;  %v870_v17 = vmul.f32 %v862_v62, %v2244_v31 }
  0xa7   : > { %3505 = vst [vmem:[#allocation30_spill] sm:$0xff] %v2432_v36  ;;  %v871_v54 = vmul.f32 %v863_v25, %v2246_v32  ;;  %v872_v55 = vmul.f32 %v864_v37, %v2248_v33  ;;  %v873_v56 = vmul.f32 %v865_v38, %v2250_v34  ;;  %v874_v23 = vmul.f32 %v866_v39, %v2252_v35 }
  0xa8   : > { %v875_v57 = vrot.slane %v867_v48, 4  ;;  %v881_v58 = vrot.slane %v868_v49, 4  ;;  %v887_v14 = vrot.slane %v869_v8, 4  ;;  %v893_v24 = vrot.slane %v870_v17, 4 }
  0xa9   : > { %v899_v59 = vrot.slane %v871_v54, 4  ;;  %v905_v60 = vrot.slane %v872_v55, 4  ;;  %v911_v27 = vrot.slane %v873_v56, 4  ;;  %v917_v21 = vrot.slane %v874_v23, 4 }
  0xaa   : > { %v876_v7 = vadd.f32 %v875_v57, %v867_v48  ;;  %v882_v0 = vadd.f32 %v881_v58, %v868_v49  ;;  %v888_v63 = vadd.f32 %v887_v14, %v869_v8  ;;  %v894_v12 = vadd.f32 %v893_v24, %v870_v17 }
  0xab   : > { %v900_v20 = vadd.f32 %v899_v59, %v871_v54  ;;  %v906_v62 = vadd.f32 %v905_v60, %v872_v55  ;;  %v912_v25 = vadd.f32 %v911_v27, %v873_v56  ;;  %v918_v37 = vadd.f32 %v917_v21, %v874_v23  ;;  %v1763_v27 = vld [vmem:[%s2208_s20 + $0xe8] sm:$0xff] }
  0xac   : > { %v877_v36 = vrot.slane %v876_v7, 2  ;;  %v883_v38 = vrot.slane %v882_v0, 2  ;;  %v889_v13 = vrot.slane %v888_v63, 2  ;;  %v895_v39 = vrot.slane %v894_v12, 2 }
  0xad   : > { %v901_v6 = vrot.slane %v900_v20, 2  ;;  %v907_v15 = vrot.slane %v906_v62, 2  ;;  %v913_v26 = vrot.slane %v912_v25, 2  ;;  %v919_v1 = vrot.slane %v918_v37, 2 }
  0xae   : > { %v878_v22 = vadd.f32 %v877_v36, %v876_v7  ;;  %v884_v61 = vadd.f32 %v883_v38, %v882_v0  ;;  %v890_v48 = vadd.f32 %v889_v13, %v888_v63  ;;  %v896_v49 = vadd.f32 %v895_v39, %v894_v12  ;;  %v1762_v36 = vld [vmem:[%s2208_s20 + $0xe0] sm:$0xff] }
  0xaf   : > { %v902_v8 = vadd.f32 %v901_v6, %v900_v20  ;;  %v908_v17 = vadd.f32 %v907_v15, %v906_v62  ;;  %v914_v54 = vadd.f32 %v913_v26, %v912_v25  ;;  %v920_v55 = vadd.f32 %v919_v1, %v918_v37  ;;  %v1764_v1 = vld [vmem:[%s2208_s20 + $0xf0] sm:$0xff]  ;;  %v1765_v15 = vld [vmem:[%s2208_s20 + $0xf8] sm:$0xff] }
  0xb0   : > { %v879_v56 = vrot.slane %v878_v22, 1  ;;  %v885_v23 = vrot.slane %v884_v61, 1  ;;  %v891_v57 = vrot.slane %v890_v48, 1  ;;  %v897_v58 = vrot.slane %v896_v49, 1 }
  0xb1   : > { %v903_v14 = vrot.slane %v902_v8, 1  ;;  %v909_v24 = vrot.slane %v908_v17, 1  ;;  %v915_v59 = vrot.slane %v914_v54, 1  ;;  %v921_v60 = vrot.slane %v920_v55, 1 }
  0xb2   : > { %v2444_v21 = vadd.f32 %v879_v56, %v878_v22  ;;  %v2446_v13 = vadd.f32 %v885_v23, %v884_v61  ;;  %v2448_v6 = vadd.f32 %v891_v57, %v890_v48  ;;  %v2450_v26 = vadd.f32 %v897_v58, %v896_v49 }
  0xb3   : > { %v2454_v7 = vadd.f32 %v903_v14, %v902_v8  ;;  %v2456_v0 = vadd.f32 %v909_v24, %v908_v17  ;;  %v2458_v63 = vadd.f32 %v915_v59, %v914_v54  ;;  %v2460_v12 = vadd.f32 %v921_v60, %v920_v55 }
  0xb4   : > { %v928_v20 = vunpack.c.l.bf16 %v1762_v36  ;;  %v929_v62 = vunpack.c.h.bf16 %v1762_v36  ;;  %v930_v22 = vunpack.c.l.bf16 %v1763_v27  ;;  %v931_v25 = vunpack.c.h.bf16 %v1763_v27 }
  0xb5   : > { %3506 = vst [vmem:[#allocation31_spill] sm:$0xff] %v2458_v63  ;;  %3507 = vst [vmem:[#allocation32_spill] sm:$0xff] %v2460_v12  ;;  %v932_v61 = vunpack.c.l.bf16 %v1764_v1  ;;  %v933_v37 = vunpack.c.h.bf16 %v1764_v1  ;;  %v934_v38 = vunpack.c.l.bf16 %v1765_v15  ;;  %v935_v39 = vunpack.c.h.bf16 %v1765_v15 }
  0xb6   : > { %v936_v48 = vmul.f32 %v928_v20, %v2238_v28  ;;  %v937_v49 = vmul.f32 %v929_v62, %v2240_v29  ;;  %v938_v8 = vmul.f32 %v930_v22, %v2242_v30  ;;  %v939_v17 = vmul.f32 %v931_v25, %v2244_v31 }
  0xb7   : > { %v940_v54 = vmul.f32 %v932_v61, %v2246_v32  ;;  %v941_v55 = vmul.f32 %v933_v37, %v2248_v33  ;;  %v942_v56 = vmul.f32 %v934_v38, %v2250_v34  ;;  %v943_v23 = vmul.f32 %v935_v39, %v2252_v35 }
  0xb8   : > { %v944_v57 = vrot.slane %v936_v48, 4  ;;  %v950_v58 = vrot.slane %v937_v49, 4  ;;  %v956_v14 = vrot.slane %v938_v8, 4  ;;  %v962_v24 = vrot.slane %v939_v17, 4 }
  0xb9   : > { %v968_v59 = vrot.slane %v940_v54, 4  ;;  %v974_v28 = vrot.slane %v941_v55, 4  ;;  %v980_v60 = vrot.slane %v942_v56, 4  ;;  %v986_v29 = vrot.slane %v943_v23, 4 }
  0xba   : > { %v945_v36 = vadd.f32 %v944_v57, %v936_v48  ;;  %v951_v30 = vadd.f32 %v950_v58, %v937_v49  ;;  %v957_v27 = vadd.f32 %v956_v14, %v938_v8  ;;  %v963_v31 = vadd.f32 %v962_v24, %v939_v17 }
  0xbb   : > { %v969_v1 = vadd.f32 %v968_v59, %v940_v54  ;;  %v975_v32 = vadd.f32 %v974_v28, %v941_v55  ;;  %v981_v15 = vadd.f32 %v980_v60, %v942_v56  ;;  %v987_v33 = vadd.f32 %v986_v29, %v943_v23 }
  0xbc   : > { %v946_v20 = vrot.slane %v945_v36, 2  ;;  %v952_v34 = vrot.slane %v951_v30, 2  ;;  %v958_v62 = vrot.slane %v957_v27, 2  ;;  %v964_v35 = vrot.slane %v963_v31, 2 }
  0xbd   : > { %v970_v22 = vrot.slane %v969_v1, 2  ;;  %v976_v25 = vrot.slane %v975_v32, 2  ;;  %v982_v61 = vrot.slane %v981_v15, 2  ;;  %v988_v37 = vrot.slane %v987_v33, 2 }
  0xbe   : > { %v947_v38 = vadd.f32 %v946_v20, %v945_v36  ;;  %v953_v39 = vadd.f32 %v952_v34, %v951_v30  ;;  %v959_v12 = vadd.f32 %v958_v62, %v957_v27  ;;  %v965_v63 = vadd.f32 %v964_v35, %v963_v31 }
  0xbf   : > { %v971_v48 = vadd.f32 %v970_v22, %v969_v1  ;;  %v977_v49 = vadd.f32 %v976_v25, %v975_v32  ;;  %v983_v8 = vadd.f32 %v982_v61, %v981_v15  ;;  %v989_v17 = vadd.f32 %v988_v37, %v987_v33 }
  0xc0   : > { %v948_v54 = vrot.slane %v947_v38, 1  ;;  %v954_v55 = vrot.slane %v953_v39, 1  ;;  %v960_v56 = vrot.slane %v959_v12, 1  ;;  %v966_v23 = vrot.slane %v965_v63, 1 }
  0xc1   : > { %v972_v57 = vrot.slane %v971_v48, 1  ;;  %v978_v58 = vrot.slane %v977_v49, 1  ;;  %v984_v14 = vrot.slane %v983_v8, 1  ;;  %v990_v24 = vrot.slane %v989_v17, 1 }
  0xc2   : > { %v2470_v59 = vadd.f32 %v948_v54, %v947_v38  ;;  %v2472_v28 = vadd.f32 %v954_v55, %v953_v39  ;;  %v2474_v60 = vadd.f32 %v960_v56, %v959_v12  ;;  %v2476_v29 = vadd.f32 %v966_v23, %v965_v63  ;;  %v3509_v38 = vld [vmem:[#allocation5_spill] sm:$0xff]  ;;  %v3512_v54 = vld [vmem:[#allocation8_spill] sm:$0xff] }
  0xc3   : > { %v2478_v36 = vadd.f32 %v972_v57, %v971_v48  ;;  %v2480_v30 = vadd.f32 %v978_v58, %v977_v49  ;;  %v2482_v27 = vadd.f32 %v984_v14, %v983_v8  ;;  %v2484_v31 = vadd.f32 %v990_v24, %v989_v17  ;;  %v3510_v48 = vld [vmem:[#allocation6_spill] sm:$0xff]  ;;  %v3511_v8 = vld [vmem:[#allocation7_spill] sm:$0xff]  ;;  %v3513_v56 = vld [vmem:[#allocation9_spill] sm:$0xff] }
  0xc4   : > { %v992_v1 = vmax.f32 %v2262_v40, %v2304_v50  ;;  %v993_v32 = vmax.f32 %v2264_v41, %v2306_v51  ;;  %v994_v12 = vmax.f32 %v2266_v42, %v2308_v52  ;;  %v995_v63 = vmax.f32 %v2268_v43, %v2310_v16  ;;  %v3514_v57 = vld [vmem:[#allocation10_spill] sm:$0xff]  ;;  %v3515_v14 = vld [vmem:[#allocation11_spill] sm:$0xff] }
  0xc5   : > { %3508 = vst [vmem:[#allocation33_spill] sm:$0xff] %v2484_v31  ;;  %v996_v15 = vmax.f32 %v2270_v44, %v2314_v18  ;;  %v997_v33 = vmax.f32 %v2272_v45, %v2316_v53  ;;  %v998_v20 = vmax.f32 %v2274_v46, %v2318_v9  ;;  %v999_v34 = vmax.f32 %v2276_v47, %v2320_v19 }
  0xc6   : > { %v1000_v62 = vmax.f32 %v992_v1, %v2332_v2  ;;  %v1001_v35 = vmax.f32 %v993_v32, %v2334_v3  ;;  %v1002_v22 = vmax.f32 %v994_v12, %v2336_v4  ;;  %v1003_v25 = vmax.f32 %v995_v63, %v2338_v5  ;;  %v3516_v1 = vld [vmem:[#allocation12_spill] sm:$0xff]  ;;  %v3517_v12 = vld [vmem:[#allocation13_spill] sm:$0xff] }
  0xc7   : > { %v1004_v61 = vmax.f32 %v996_v15, %v2342_v10  ;;  %v1005_v37 = vmax.f32 %v997_v33, %v2344_v11  ;;  %v1006_v39 = vmax.f32 %v998_v20, %v3509_v38  ;;  %v1007_v49 = vmax.f32 %v999_v34, %v3510_v48  ;;  %v3518_v15 = vld [vmem:[#allocation14_spill] sm:$0xff]  ;;  %v3519_v11 = vld [vmem:[#allocation15_spill] sm:$0xff]  ;;  %v3520_v38 = vld [vmem:[#allocation16_spill] sm:$0xff] }
  0xc8   : > { %v1008_v17 = vmax.f32 %v1000_v62, %v3511_v8  ;;  %v1009_v55 = vmax.f32 %v1001_v35, %v3512_v54  ;;  %v1010_v23 = vmax.f32 %v1002_v22, %v3513_v56  ;;  %v1011_v58 = vmax.f32 %v1003_v25, %v3514_v57  ;;  %v3521_v48 = vld [vmem:[#allocation17_spill] sm:$0xff]  ;;  %v3522_v8 = vld [vmem:[#allocation18_spill] sm:$0xff]  ;;  %v3523_v54 = vld [vmem:[#allocation19_spill] sm:$0xff] }
  0xc9   : > { %v1012_v24 = vmax.f32 %v1004_v61, %v3515_v14  ;;  %v1013_v32 = vmax.f32 %v1005_v37, %v3516_v1  ;;  %v1014_v63 = vmax.f32 %v1006_v39, %v3517_v12  ;;  %v1015_v33 = vmax.f32 %v1007_v49, %v3518_v15  ;;  %v3524_v56 = vld [vmem:[#allocation20_spill] sm:$0xff]  ;;  %v3525_v57 = vld [vmem:[#allocation21_spill] sm:$0xff]  ;;  %v3526_v14 = vld [vmem:[#allocation22_spill] sm:$0xff] }
  0xca   : > { %v1016_v20 = vmax.f32 %v1008_v17, %v3519_v11  ;;  %v1017_v34 = vmax.f32 %v1009_v55, %v3520_v38  ;;  %v1018_v62 = vmax.f32 %v1010_v23, %v3521_v48  ;;  %v1019_v35 = vmax.f32 %v1011_v58, %v3522_v8  ;;  %v3527_v1 = vld [vmem:[#allocation23_spill] sm:$0xff]  ;;  %v3528_v12 = vld [vmem:[#allocation24_spill] sm:$0xff]  ;;  %v3529_v15 = vld [vmem:[#allocation25_spill] sm:$0xff] }
  0xcb   : > { %v1020_v22 = vmax.f32 %v1012_v24, %v3523_v54  ;;  %v1021_v25 = vmax.f32 %v1013_v32, %v3524_v56  ;;  %v1022_v61 = vmax.f32 %v1014_v63, %v3525_v57  ;;  %v1023_v37 = vmax.f32 %v1015_v33, %v3526_v14  ;;  %v3530_v11 = vld [vmem:[#allocation26_spill] sm:$0xff]  ;;  %v3531_v38 = vld [vmem:[#allocation27_spill] sm:$0xff]  ;;  %v3532_v48 = vld [vmem:[#allocation28_spill] sm:$0xff] }
  0xcc   : > { %v1024_v39 = vmax.f32 %v1016_v20, %v3527_v1  ;;  %v1025_v49 = vmax.f32 %v1017_v34, %v3528_v12  ;;  %v1026_v17 = vmax.f32 %v1018_v62, %v3529_v15  ;;  %v1027_v55 = vmax.f32 %v1019_v35, %v3530_v11  ;;  %v3533_v8 = vld [vmem:[#allocation29_spill] sm:$0xff]  ;;  %v3534_v54 = vld [vmem:[#allocation30_spill] sm:$0xff]  ;;  %v3535_v11 = vld [vmem:[#allocation31_spill] sm:$0xff] }
  0xcd   : > { %v1028_v23 = vmax.f32 %v1020_v22, %v3531_v38  ;;  %v1029_v58 = vmax.f32 %v1021_v25, %v3532_v48  ;;  %v1030_v24 = vmax.f32 %v1022_v61, %v3533_v8  ;;  %v1031_v32 = vmax.f32 %v1023_v37, %v3534_v54  ;;  %v3536_v38 = vld [vmem:[#allocation32_spill] sm:$0xff] }
  0xce   : > { %v1032_v63 = vmax.f32 %v1024_v39, %v2444_v21  ;;  %v1033_v33 = vmax.f32 %v1025_v49, %v2446_v13  ;;  %v1034_v20 = vmax.f32 %v1026_v17, %v2448_v6  ;;  %v1035_v34 = vmax.f32 %v1027_v55, %v2450_v26 }
  0xcf   : > { %v1036_v62 = vmax.f32 %v1028_v23, %v2454_v7  ;;  %v1037_v35 = vmax.f32 %v1029_v58, %v2456_v0  ;;  %v1038_v22 = vmax.f32 %v1030_v24, %v3535_v11  ;;  %v1039_v25 = vmax.f32 %v1031_v32, %v3536_v38 }
  0xd0   : > { %v2543_v61 = vmax.f32 %v1032_v63, %v2470_v59  ;;  %v2546_v37 = vmax.f32 %v1033_v33, %v2472_v28  ;;  %v2549_v39 = vmax.f32 %v1034_v20, %v2474_v60  ;;  %v2552_v49 = vmax.f32 %v1035_v34, %v2476_v29 }
  0xd1   : > { %v2555_v17 = vmax.f32 %v1036_v62, %v2478_v36  ;;  %v2558_v55 = vmax.f32 %v1037_v35, %v2480_v30  ;;  %v2561_v23 = vmax.f32 %v1038_v22, %v2482_v27  ;;  %v2564_v58 = vmax.f32 %v1039_v25, %v2484_v31 }
  0xd2   : > { %v1048_v24 = vsub.f32 %v2262_v40, %v2543_v61  ;;  %v1049_v32 = vsub.f32 %v2264_v41, %v2546_v37  ;;  %v1050_v63 = vsub.f32 %v2266_v42, %v2549_v39  ;;  %v1051_v33 = vsub.f32 %v2268_v43, %v2552_v49 }
  0xd3   : > { %v1052_v20 = vsub.f32 %v2270_v44, %v2555_v17  ;;  %v1053_v34 = vsub.f32 %v2272_v45, %v2558_v55  ;;  %v1054_v62 = vsub.f32 %v2274_v46, %v2561_v23  ;;  %v1055_v41 = vsub.f32 %v2276_v47, %v2564_v58 }
  0xd4   : > { %v1056_v35 = vmul.f32 1.442695, %v1048_v24  ;;  %v1058_v40 = vmul.f32 1.442695, %v1049_v32  ;;  %v1060_v22 = vmul.f32 1.442695, %v1050_v63  ;;  %v1072_v43 = vsub.f32 %v2304_v50, %v2543_v61 }
  0xd5   : > { %v1062_v25 = vmul.f32 1.442695, %v1051_v33  ;;  %v1064_v42 = vmul.f32 1.442695, %v1052_v20  ;;  %v1066_v44 = vmul.f32 1.442695, %v1053_v34  ;;  %v1073_v45 = vsub.f32 %v2306_v51, %v2546_v37 }
  0xd6   : > { %1822 = vpow2.f32 %v1056_v35  ;;  %v1068_v31 = vmul.f32 1.442695, %v1054_v62  ;;  %v1074_v46 = vsub.f32 %v2308_v52, %v2549_v39  ;;  %v1070_v24 = vmul.f32 1.442695, %v1055_v41 }
  0xd7   : > { %1824 = vpow2.f32 %v1058_v40  ;;  %v1075_v47 = vsub.f32 %v2310_v16, %v2552_v49  ;;  %v1076_v32 = vsub.f32 %v2314_v18, %v2555_v17  ;;  %v1080_v50 = vmul.f32 1.442695, %v1072_v43 }
  0xd8   : > { %1826 = vpow2.f32 %v1060_v22  ;;  %v1077_v63 = vsub.f32 %v2316_v53, %v2558_v55  ;;  %v1082_v51 = vmul.f32 1.442695, %v1073_v45  ;;  %v1078_v33 = vsub.f32 %v2318_v9, %v2561_v23 }
  0xd9   : > { %1828 = vpow2.f32 %v1062_v25  ;;  %v1084_v52 = vmul.f32 1.442695, %v1074_v46  ;;  %v1079_v20 = vsub.f32 %v2320_v19, %v2564_v58  ;;  %v1086_v16 = vmul.f32 1.442695, %v1075_v47 }
  0xda   : > { %1830 = vpow2.f32 %v1064_v42  ;;  %v1088_v34 = vmul.f32 1.442695, %v1076_v32  ;;  %v1096_v18 = vsub.f32 %v2332_v2, %v2543_v61  ;;  %v1090_v62 = vmul.f32 1.442695, %v1077_v63  ;;  %v3540_v32 = vld [vmem:[#allocation7_spill] sm:$0xff] }
  0xdb   : > { %1832 = vpow2.f32 %v1066_v44  ;;  %v1097_v53 = vsub.f32 %v2334_v3, %v2546_v37  ;;  %v1098_v9 = vsub.f32 %v2336_v4, %v2549_v39  ;;  %v1094_v35 = vmul.f32 1.442695, %v1079_v20  ;;  %v3537_v3 = vld [vmem:[#allocation4_spill] sm:$0xff]  ;;  %v3538_v4 = vld [vmem:[#allocation5_spill] sm:$0xff] }
  0xdc   : > { %1834 = vpow2.f32 %v1068_v31  ;;  %v1092_v31 = vmul.f32 1.442695, %v1078_v33  ;;  %v1099_v19 = vsub.f32 %v2338_v5, %v2552_v49  ;;  %v1100_v40 = vsub.f32 %v2342_v10, %v2555_v17  ;;  %v3539_v10 = vld [vmem:[#allocation6_spill] sm:$0xff]  ;;  %v3541_v33 = vld [vmem:[#allocation8_spill] sm:$0xff] }
  0xdd   : > { %1836 = vpow2.f32 %v1070_v24  ;;  %v1104_v2 = vmul.f32 1.442695, %v1096_v18  ;;  %v1101_v41 = vsub.f32 %v3537_v3, %v2558_v55  ;;  %v1106_v25 = vmul.f32 1.442695, %v1097_v53 }
  0xde   : > { %1838 = vpow2.f32 %v1080_v50  ;;  %v1102_v43 = vsub.f32 %v3538_v4, %v2561_v23  ;;  %v1108_v44 = vmul.f32 1.442695, %v1098_v9  ;;  %v1103_v45 = vsub.f32 %v3539_v10, %v2564_v58 }
  0xdf   : > { %1840 = vpow2.f32 %v1082_v51  ;;  %v1110_v46 = vmul.f32 1.442695, %v1099_v19  ;;  %v1112_v47 = vmul.f32 1.442695, %v1100_v40  ;;  %v1120_v50 = vsub.f32 %v3540_v32, %v2543_v61  ;;  %v3546_v19 = vld [vmem:[#allocation11_spill] sm:$0xff] }
  0xe0   : > { %1842 = vpow2.f32 %v1084_v52  ;;  %v1114_v51 = vmul.f32 1.442695, %v1101_v41  ;;  %v1121_v52 = vsub.f32 %v3541_v33, %v2546_v37  ;;  %v1118_v53 = vmul.f32 1.442695, %v1103_v45  ;;  %v3547_v41 = vld [vmem:[#allocation12_spill] sm:$0xff] }
  0xe1   : > { %1844 = vpow2.f32 %v1086_v16  ;;  %v1116_v16 = vmul.f32 1.442695, %v1102_v43  ;;  %v1124_v40 = vsub.f32 %v3546_v19, %v2555_v17 }
  0xe2   : > { %1846 = vpow2.f32 %v1088_v34  ;;  %v3542_v34 = vld [vmem:[#allocation9_spill] sm:$0xff]  ;;  %v1130_v4 = vmul.f32 1.442695, %v1121_v52  ;;  %v3550_v52 = vld [vmem:[#allocation15_spill] sm:$0xff] }
  0xe3   : > { %v2608_v22 = vpop.eup %1822  ;;  %1848 = vpow2.f32 %v1090_v62  ;;  %v1122_v18 = vsub.f32 %v3542_v34, %v2549_v39  ;;  %v1144_v34 = vsub.f32 %v3550_v52, %v2543_v61 }
  0xe4   : > { %v2612_v42 = vpop.eup %1824  ;;  %1850 = vpow2.f32 %v1092_v31  ;;  %v3544_v31 = vld [vmem:[#allocation10_spill] sm:$0xff] }
  0xe5   : > { %v2616_v5 = vpop.eup %1826  ;;  %1852 = vpow2.f32 %v1094_v35  ;;  %v1123_v9 = vsub.f32 %v3544_v31, %v2552_v49  ;;  %v1132_v45 = vmul.f32 1.442695, %v1122_v18  ;;  %v3551_v18 = vld [vmem:[#allocation16_spill] sm:$0xff] }
  0xe6   : > { %v2620_v24 = vpop.eup %1828  ;;  %1854 = vpow2.f32 %v1104_v2  ;;  %v1128_v2 = vmul.f32 1.442695, %v1120_v50  ;;  %v1145_v19 = vsub.f32 %v3551_v18, %v2546_v37  ;;  %v1152_v18 = vmul.f32 1.442695, %v1144_v34 }
  0xe7   : > { %v2624_v63 = vpop.eup %1830  ;;  %1856 = vpow2.f32 %v1106_v25  ;;  %v1125_v25 = vsub.f32 %v3547_v41, %v2558_v55  ;;  %v1134_v50 = vmul.f32 1.442695, %v1123_v9  ;;  %v3552_v9 = vld [vmem:[#allocation17_spill] sm:$0xff] }
  0xe8   : > { %v2628_v20 = vpop.eup %1832  ;;  %1858 = vpow2.f32 %v1108_v44  ;;  %v3548_v44 = vld [vmem:[#allocation13_spill] sm:$0xff] }
  0xe9   : > { %v2632_v62 = vpop.eup %1834  ;;  %1860 = vpow2.f32 %v1110_v46  ;;  %v1126_v10 = vsub.f32 %v3548_v44, %v2561_v23  ;;  %v1146_v44 = vsub.f32 %v3552_v9, %v2549_v39 }
  0xea   : > { %3543 = vst [vmem:[#allocation20_spill] sm:$0xff] %v2632_v62  ;;  %v2636_v35 = vpop.eup %1836  ;;  %1862 = vpow2.f32 %v1112_v47  ;;  %v3549_v47 = vld [vmem:[#allocation14_spill] sm:$0xff] }
  0xeb   : > { %3545 = vst [vmem:[#allocation21_spill] sm:$0xff] %v2636_v35  ;;  %v2640_v3 = vpop.eup %1838  ;;  %1864 = vpow2.f32 %v1114_v51  ;;  %v1127_v32 = vsub.f32 %v3549_v47, %v2564_v58  ;;  %v1136_v51 = vmul.f32 1.442695, %v1124_v40 }
  0xec   : > { %v2644_v43 = vpop.eup %1840  ;;  %1866 = vpow2.f32 %v1116_v16  ;;  %v1138_v16 = vmul.f32 1.442695, %v1125_v25  ;;  %v3555_v25 = vld [vmem:[#allocation19_spill] sm:$0xff] }
  0xed   : > { %v2648_v46 = vpop.eup %1842  ;;  %1868 = vpow2.f32 %v1118_v53  ;;  %v1140_v53 = vmul.f32 1.442695, %v1126_v10  ;;  %v1142_v40 = vmul.f32 1.442695, %v1127_v32  ;;  %v1149_v10 = vsub.f32 %v3524_v56, %v2558_v55 }
  0xee   : > { %v2652_v33 = vpop.eup %1844  ;;  %1870 = vpow2.f32 %v1128_v2  ;;  %v3553_v2 = vld [vmem:[#allocation18_spill] sm:$0xff]  ;;  %v1150_v32 = vsub.f32 %v3525_v57, %v2561_v23  ;;  %v1168_v56 = vsub.f32 %v3527_v1, %v2543_v61  ;;  %v1169_v57 = vsub.f32 %v3528_v12, %v2546_v37 }
  0xef   : > { %v2656_v31 = vpop.eup %1846  ;;  %1872 = vpow2.f32 %v1130_v4  ;;  %v1147_v52 = vsub.f32 %v3553_v2, %v2552_v49  ;;  %v1148_v4 = vsub.f32 %v3555_v25, %v2555_v17  ;;  %v1173_v12 = vsub.f32 %v3532_v48, %v2558_v55 }
  0xf0   : > { %v2660_v41 = vpop.eup %1848  ;;  %1874 = vpow2.f32 %v1132_v45  ;;  %v1154_v45 = vmul.f32 1.442695, %v1145_v19  ;;  %v1192_v48 = vsub.f32 %v2444_v21, %v2543_v61  ;;  %v1197_v21 = vsub.f32 %v2456_v0, %v2558_v55 }
  0xf1   : > { %v2664_v47 = vpop.eup %1850  ;;  %1876 = vpow2.f32 %v1134_v50  ;;  %v1156_v50 = vmul.f32 1.442695, %v1146_v44  ;;  %v1158_v34 = vmul.f32 1.442695, %v1147_v52  ;;  %v1170_v44 = vsub.f32 %v3529_v15, %v2549_v39  ;;  %v3560_v52 = vld [vmem:[#allocation26_spill] sm:$0xff] }
  0xf2   : > { %v2668_v35 = vpop.eup %1852  ;;  %1878 = vpow2.f32 %v1136_v51  ;;  %v1151_v51 = vsub.f32 %v3526_v14, %v2564_v58  ;;  %v1164_v14 = vmul.f32 1.442695, %v1150_v32  ;;  %v1174_v15 = vsub.f32 %v3533_v8, %v2561_v23 }
  0xf3   : > { %3554 = vst [vmem:[#allocation22_spill] sm:$0xff] %v2668_v35  ;;  %v2672_v62 = vpop.eup %1854  ;;  %1880 = vpow2.f32 %v1138_v16  ;;  %v1160_v16 = vmul.f32 1.442695, %v1148_v4  ;;  %v1171_v4 = vsub.f32 %v3560_v52, %v2552_v49  ;;  %v1176_v32 = vmul.f32 1.442695, %v1168_v56 }
  0xf4   : > { %v2676_v9 = vpop.eup %1856  ;;  %1882 = vpow2.f32 %v1140_v53  ;;  %v1162_v53 = vmul.f32 1.442695, %v1149_v10  ;;  %v1166_v10 = vmul.f32 1.442695, %v1151_v51  ;;  %v1175_v52 = vsub.f32 %v3534_v54, %v2564_v58 }
  0xf5   : > { %v2680_v2 = vpop.eup %1858  ;;  %1884 = vpow2.f32 %v1142_v40  ;;  %v1182_v51 = vmul.f32 1.442695, %v1171_v4  ;;  %v1193_v8 = vsub.f32 %v2446_v13, %v2546_v37  ;;  %v1194_v56 = vsub.f32 %v2448_v6, %v2549_v39 }
  0xf6   : > { %3556 = vst [vmem:[#allocation23_spill] sm:$0xff] %v2680_v2  ;;  %v2684_v25 = vpop.eup %1860  ;;  %1886 = vpow2.f32 %v1152_v18  ;;  %v3561_v18 = vld [vmem:[#allocation27_spill] sm:$0xff]  ;;  %v1195_v54 = vsub.f32 %v2450_v26, %v2552_v49  ;;  %v1186_v13 = vmul.f32 1.442695, %v1173_v12  ;;  %v1199_v6 = vsub.f32 %v3536_v38, %v2564_v58 }
  0xf7   : > { %3557 = vst [vmem:[#allocation24_spill] sm:$0xff] %v2684_v25  ;;  %v2688_v19 = vpop.eup %1862  ;;  %1888 = vpow2.f32 %v1154_v45  ;;  %v1172_v1 = vsub.f32 %v3561_v18, %v2555_v17  ;;  %v1178_v18 = vmul.f32 1.442695, %v1169_v57  ;;  %v1196_v57 = vsub.f32 %v2454_v7, %v2555_v17 }
  0xf8   : > { %3558 = vst [vmem:[#allocation25_spill] sm:$0xff] %v2688_v19  ;;  %v2694_v40 = vpop.eup %1864  ;;  %1890 = vpow2.f32 %v1156_v50  ;;  %v1188_v4 = vmul.f32 1.442695, %v1174_v15  ;;  %v1202_v0 = vmul.f32 1.442695, %v1193_v8  ;;  %v1217_v15 = vsub.f32 %v2472_v28, %v2546_v37 }
  0xf9   : > { %3559 = vst [vmem:[#allocation28_spill] sm:$0xff] %v2694_v40  ;;  %v2700_v25 = vpop.eup %1866  ;;  %1892 = vpow2.f32 %v1158_v34  ;;  %v1210_v12 = vmul.f32 1.442695, %v1197_v21  ;;  %v1214_v38 = vmul.f32 1.442695, %v1199_v6  ;;  %v1221_v28 = vsub.f32 %v2480_v30, %v2558_v55 }
  0xfa   : > { %3562 = vst [vmem:[#allocation29_spill] sm:$0xff] %v2700_v25  ;;  %v2702_v45 = vpop.eup %1868  ;;  %1894 = vpow2.f32 %v1160_v16  ;;  %v1180_v25 = vmul.f32 1.442695, %v1170_v44  ;;  %v1184_v16 = vmul.f32 1.442695, %v1172_v1  ;;  %v1198_v44 = vsub.f32 %v3535_v11, %v2561_v23 }
  0xfb   : > { %3563 = vst [vmem:[#allocation30_spill] sm:$0xff] %v2702_v45  ;;  %v2708_v50 = vpop.eup %1870  ;;  %1896 = vpow2.f32 %v1162_v53  ;;  %v1190_v1 = vmul.f32 1.442695, %v1175_v52  ;;  %v1244_v30 = vadd.f32 %v2656_v31, %v2624_v63 }
  0xfc   : > { %v2712_v34 = vpop.eup %1872  ;;  %1898 = vpow2.f32 %v1164_v14 }
  0xfd   : > { %v2716_v45 = vpop.eup %1874  ;;  %1900 = vpow2.f32 %v1166_v10  ;;  %v1200_v10 = vmul.f32 1.442695, %v1192_v48  ;;  %v1240_v48 = vadd.f32 %v2640_v3, %v2608_v22 }
  0xfe   : > { %3564 = vst [vmem:[#allocation31_spill] sm:$0xff] %v2716_v45  ;;  %v2724_v53 = vpop.eup %1876  ;;  %1902 = vpow2.f32 %v1176_v32  ;;  %v1204_v32 = vmul.f32 1.442695, %v1194_v56 }
  0xff   : > { %3565 = vst [vmem:[#allocation32_spill] sm:$0xff] %v2724_v53  ;;  %v2732_v14 = vpop.eup %1878  ;;  %1904 = vpow2.f32 %v1178_v18  ;;  %v1206_v53 = vmul.f32 1.442695, %v1195_v54  ;;  %v1208_v18 = vmul.f32 1.442695, %v1196_v57  ;;  %v1248_v57 = vadd.f32 %v2672_v62, %v1240_v48 }
 0x100   : > { %3566 = vst [vmem:[#allocation4_spill] sm:$0xff] %v2732_v14  ;;  %v2736_v26 = vpop.eup %1880  ;;  %1906 = vpow2.f32 %v1180_v25  ;;  %v1212_v14 = vmul.f32 1.442695, %v1198_v44  ;;  %v1216_v25 = vsub.f32 %v2470_v59, %v2543_v61  ;;  %v1220_v59 = vsub.f32 %v2478_v36, %v2555_v17 }
 0x101   : > { %3567 = vst [vmem:[#allocation5_spill] sm:$0xff] %v2736_v26  ;;  %v2738_v7 = vpop.eup %1882  ;;  %1908 = vpow2.f32 %v1182_v51  ;;  %v1218_v51 = vsub.f32 %v2474_v60, %v2549_v39  ;;  %v1241_v61 = vadd.f32 %v2644_v43, %v2612_v42  ;;  %v1222_v60 = vsub.f32 %v2482_v27, %v2561_v23  ;;  %v3575_v27 = vld [vmem:[#allocation20_spill] sm:$0xff] }
 0x102   : > { %v2740_v11 = vpop.eup %1884  ;;  %1910 = vpow2.f32 %v1184_v16  ;;  %v1219_v16 = vsub.f32 %v2476_v29, %v2552_v49  ;;  %v3572_v29 = vld [vmem:[#allocation33_spill] sm:$0xff]  ;;  %v1242_v49 = vadd.f32 %v2648_v46, %v2616_v5  ;;  %v1243_v36 = vadd.f32 %v2652_v33, %v2620_v24 }
 0x103   : > { %v2742_v45 = vpop.eup %1886  ;;  %1912 = vpow2.f32 %v1186_v13  ;;  %v1223_v39 = vsub.f32 %v3572_v29, %v2564_v58  ;;  %v1245_v17 = vadd.f32 %v2660_v41, %v2628_v20  ;;  %v1246_v23 = vadd.f32 %v2664_v47, %v3575_v27  ;;  %v3576_v58 = vld [vmem:[#allocation21_spill] sm:$0xff]  ;;  %v3580_v29 = vld [vmem:[#allocation24_spill] sm:$0xff] }
 0x104   : > { %3568 = vst [vmem:[#allocation6_spill] sm:$0xff] %v2742_v45  ;;  %v2748_v52 = vpop.eup %1888  ;;  %1914 = vpow2.f32 %v1188_v4  ;;  %v1247_v54 = vadd.f32 %v2668_v35, %v3576_v58  ;;  %v1224_v44 = vmul.f32 1.442695, %v1216_v25  ;;  %v1226_v13 = vmul.f32 1.442695, %v1217_v15  ;;  %v3582_v15 = vld [vmem:[#allocation29_spill] sm:$0xff] }
 0x105   : > { %3569 = vst [vmem:[#allocation7_spill] sm:$0xff] %v2748_v52  ;;  %v2756_v8 = vpop.eup %1890  ;;  %1916 = vpow2.f32 %v1190_v1  ;;  %v1249_v6 = vadd.f32 %v2676_v9, %v1241_v61  ;;  %v1228_v1 = vmul.f32 1.442695, %v1218_v51  ;;  %v1251_v35 = vadd.f32 %v3580_v29, %v1243_v36 }
 0x106   : > { %3570 = vst [vmem:[#allocation8_spill] sm:$0xff] %v2756_v8  ;;  %v2764_v37 = vpop.eup %1892  ;;  %1918 = vpow2.f32 %v1200_v10  ;;  %v1230_v10 = vmul.f32 1.442695, %v1219_v16  ;;  %v1252_v48 = vadd.f32 %v2688_v19, %v1244_v30  ;;  %v1254_v61 = vadd.f32 %v3582_v15, %v1246_v23  ;;  %v3586_v19 = vld [vmem:[#allocation31_spill] sm:$0xff]  ;;  %v2813_v23 = vld [vmem:[%s2810_s23] sm:$0xff] }
 0x107   : > { %3571 = vst [vmem:[#allocation9_spill] sm:$0xff] %v2764_v37  ;;  %v2772_v56 = vpop.eup %1894  ;;  %1920 = vpow2.f32 %v1202_v0  ;;  %v1250_v0 = vadd.f32 %v2680_v2, %v1242_v49  ;;  %v1256_v16 = vadd.f32 %v2708_v50, %v1248_v57  ;;  %v1234_v2 = vmul.f32 1.442695, %v1221_v28 }
 0x108   : > { %3573 = vst [vmem:[#allocation10_spill] sm:$0xff] %v2772_v56  ;;  %v2780_v55 = vpop.eup %1896  ;;  %1922 = vpow2.f32 %v1204_v32  ;;  %v1257_v36 = vadd.f32 %v2712_v34, %v1249_v6  ;;  %v1262_v6 = vadd.f32 %v2738_v7, %v1254_v61 }
 0x109   : > { %3574 = vst [vmem:[#allocation11_spill] sm:$0xff] %v2780_v55  ;;  %v2787_v21 = vpop.eup %1898  ;;  %1924 = vpow2.f32 %v1206_v53  ;;  %v1253_v53 = vadd.f32 %v2694_v40, %v1245_v17  ;;  %v1236_v17 = vmul.f32 1.442695, %v1222_v60  ;;  %v1238_v40 = vmul.f32 1.442695, %v1223_v39  ;;  %v2821_v39 = vld [vmem:[%s2810_s23 + $0x8] sm:$0xff] }
 0x10a   : > { %3577 = vst [vmem:[#allocation12_spill] sm:$0xff] %v2787_v21  ;;  %v2790_v4 = vpop.eup %1900  ;;  %1926 = vpow2.f32 %v1208_v18  ;;  %v3583_v18 = vld [vmem:[#allocation30_spill] sm:$0xff] }
 0x10b   : > { %3578 = vst [vmem:[#allocation13_spill] sm:$0xff] %v2790_v4  ;;  %v2793_v32 = vpop.eup %1902  ;;  %1928 = vpow2.f32 %v1210_v12  ;;  %v1255_v51 = vadd.f32 %v3583_v18, %v1247_v54  ;;  %v1232_v12 = vmul.f32 1.442695, %v1220_v59  ;;  %v3588_v59 = vld [vmem:[#allocation32_spill] sm:$0xff]  ;;  %v1261_v60 = vadd.f32 %v2736_v26, %v1253_v53  ;;  %v2829_v18 = vld [vmem:[%s2810_s23 + $0x10] sm:$0xff] }
 0x10c   : > { %3579 = vst [vmem:[#allocation14_spill] sm:$0xff] %v2793_v32  ;;  %v2798_v25 = vpop.eup %1904  ;;  %1930 = vpow2.f32 %v1212_v14  ;;  %v1258_v14 = vadd.f32 %v3586_v19, %v1250_v0  ;;  %v1259_v28 = vadd.f32 %v3588_v59, %v1251_v35  ;;  %v3589_v54 = vld [vmem:[#allocation4_spill] sm:$0xff]  ;;  %v1264_v19 = vadd.f32 %v2742_v45, %v1256_v16 }
 0x10d   : > { %3581 = vst [vmem:[#allocation15_spill] sm:$0xff] %v2798_v25  ;;  %v2803_v49 = vpop.eup %1906  ;;  %1932 = vpow2.f32 %v1214_v38  ;;  %v1260_v57 = vadd.f32 %v3589_v54, %v1252_v48  ;;  %v1263_v0 = vadd.f32 %v2740_v11, %v1255_v51  ;;  %v1265_v35 = vadd.f32 %v2748_v52, %v1257_v36  ;;  %v2835_v48 = vld [vmem:[%s2810_s23 + $0x18] sm:$0xff]  ;;  %v2850_v53 = vld [vmem:[%s2810_s23 + $0x20] sm:$0xff] }
 0x10e   : > { %3584 = vst [vmem:[#allocation16_spill] sm:$0xff] %v2803_v49  ;;  %v2806_v30 = vpop.eup %1908  ;;  %1934 = vpow2.f32 %v1224_v44  ;;  %v1266_v61 = vadd.f32 %v2756_v8, %v1258_v14  ;;  %v1272_v16 = vadd.f32 %v2793_v32, %v1264_v19  ;;  %v1270_v19 = vadd.f32 %v2787_v21, %v1262_v6  ;;  %v2873_v51 = vld [vmem:[%s2810_s23 + $0x38] sm:$0xff]  ;;  %v2884_v21 = vld [vmem:[%s2810_s23 + $0x40] sm:$0xff] }
 0x10f   : > { %3585 = vst [vmem:[#allocation17_spill] sm:$0xff] %v2806_v30  ;;  %v2815_v38 = vpop.eup %1910  ;;  %1936 = vpow2.f32 %v1226_v13  ;;  %v1268_v14 = vadd.f32 %v2772_v56, %v1260_v57  ;;  %v1311_v56 = vld [vmem:[%s3047_s27 + $0x38] sm:$0xff] }
 0x110   : > { %3587 = vst [vmem:[#allocation18_spill] sm:$0xff] %v2815_v38  ;;  %v2823_v44 = vpop.eup %1912  ;;  %1938 = vpow2.f32 %v1228_v1  ;;  %v1273_v1 = vadd.f32 %v2798_v25, %v1265_v35  ;;  %v1274_v57 = vadd.f32 %v2803_v49, %v1266_v61  ;;  %v1271_v35 = vadd.f32 %v2790_v4, %v1263_v0  ;;  %v2893_v4 = vld [vmem:[%s2810_s23 + $0x48] sm:$0xff] }
 0x111   : > { %3590 = vst [vmem:[#allocation19_spill] sm:$0xff] %v2823_v44  ;;  %v2831_v13 = vpop.eup %1914  ;;  %1940 = vpow2.f32 %v1230_v10  ;;  %v1267_v10 = vadd.f32 %v2764_v37, %v1259_v28  ;;  %v1269_v28 = vadd.f32 %v2780_v55, %v1261_v60  ;;  %v2866_v37 = vld [vmem:[%s2810_s23 + $0x30] sm:$0xff] }
 0x112   : > { %3591 = vst [vmem:[#allocation26_spill] sm:$0xff] %v2831_v13  ;;  %v2839_v26 = vpop.eup %1916  ;;  %1942 = vpow2.f32 %v1232_v12  ;;  %v1278_v49 = vadd.f32 %v2831_v13, %v1270_v19  ;;  %v2920_v19 = vld [vmem:[%s2810_s23 + $0x60] sm:$0xff] }
 0x113   : > { %3592 = vst [vmem:[#allocation27_spill] sm:$0xff] %v2839_v26  ;;  %v2844_v45 = vpop.eup %1918  ;;  %1944 = vpow2.f32 %v1234_v2  ;;  %v2858_v2 = vld [vmem:[%s2810_s23 + $0x28] sm:$0xff]  ;;  %v1275_v36 = vadd.f32 %v2806_v30, %v1267_v10  ;;  %v1277_v25 = vadd.f32 %v2823_v44, %v1269_v28  ;;  %v2950_v30 = vld [vmem:[%s2810_s23 + $0x78] sm:$0xff] }
 0x114   : > { %3593 = vst [vmem:[#allocation33_spill] sm:$0xff] %v2844_v45  ;;  %v2852_v12 = vpop.eup %1920  ;;  %1946 = vpow2.f32 %v1236_v17  ;;  %v1280_v32 = vadd.f32 %v2844_v45, %v1272_v16  ;;  %v2909_v45 = vld [vmem:[%s2810_s23 + $0x58] sm:$0xff] }
 0x115   : > { %3594 = vst [vmem:[#allocation20_spill] sm:$0xff] %v2852_v12  ;;  %v2860_v8 = vpop.eup %1922  ;;  %1948 = vpow2.f32 %v1238_v40  ;;  %v1276_v40 = vadd.f32 %v2815_v38, %v1268_v14  ;;  %v1281_v6 = vadd.f32 %v2852_v12, %v1273_v1  ;;  %v2902_v14 = vld [vmem:[%s2810_s23 + $0x50] sm:$0xff]  ;;  %v1279_v1 = vadd.f32 %v2839_v26, %v1271_v35  ;;  %v2935_v26 = vld [vmem:[%s2810_s23 + $0x68] sm:$0xff] }
 0x116   : > { %3595 = vst [vmem:[#allocation21_spill] sm:$0xff] %v2860_v8  ;;  %v2868_v17 = vpop.eup %1924  ;;  %v1282_v0 = vadd.f32 %v2860_v8, %v1274_v57  ;;  %v2942_v8 = vld [vmem:[%s2810_s23 + $0x70] sm:$0xff] }
 0x117   : > { %3596 = vst [vmem:[#allocation24_spill] sm:$0xff] %v2868_v17  ;;  %v2877_v60 = vpop.eup %1926  ;;  %v1283_v55 = vadd.f32 %v2868_v17, %v1275_v36 }
 0x118   : > { %3597 = vst [vmem:[#allocation29_spill] sm:$0xff] %v2877_v60  ;;  %v2886_v61 = vpop.eup %1928  ;;  %v1284_v38 = vadd.f32 %v2877_v60, %v1276_v40 }
 0x119   : > { %3598 = vst [vmem:[#allocation32_spill] sm:$0xff] %v2886_v61  ;;  %v2895_v10 = vpop.eup %1930  ;;  %v1285_v36 = vadd.f32 %v2886_v61, %v1277_v25 }
 0x11a   : > { %3599 = vst [vmem:[#allocation4_spill] sm:$0xff] %v2895_v10  ;;  %v2904_v16 = vpop.eup %1932 }
 0x11b   : > { %3600 = vst [vmem:[#allocation34_spill] sm:$0xff] %v2904_v16  ;;  %v2913_v44 = vpop.eup %1934 }
 0x11c   : > { %3601 = vst [vmem:[#allocation35_spill] sm:$0xff] %v2913_v44  ;;  %v2922_v57 = vpop.eup %1936  ;;  %v1288_v28 = vadd.f32 %v2913_v44, %v1280_v32  ;;  %v1286_v32 = vadd.f32 %v2895_v10, %v1278_v49  ;;  %v3015_v49 = vld [vmem:[%s2810_s23 + $0xd8] sm:$0xff]  ;;  %v3023_v10 = vld [vmem:[%s2810_s23 + $0xe0] sm:$0xff] }
 0x11d   : > { %3602 = vst [vmem:[#allocation36_spill] sm:$0xff] %v2922_v57  ;;  %v2928_v35 = vpop.eup %1938  ;;  %v1289_v12 = vadd.f32 %v2922_v57, %v1281_v6  ;;  %v1287_v6 = vadd.f32 %v2904_v16, %v1279_v1  ;;  %v2959_v1 = vld [vmem:[%s2810_s23 + $0x80] sm:$0xff]  ;;  %3620 = vst [vmem:[#allocation54_spill] sm:$0xff] %v3015_v49 }
 0x11e   : > { %3603 = vst [vmem:[#allocation37_spill] sm:$0xff] %v2928_v35  ;;  %v2937_v40 = vpop.eup %1940  ;;  %v1290_v13 = vadd.f32 %v2928_v35, %v1282_v0  ;;  %1950 = vrcp.f32 %v1288_v28  ;;  %3607 = vst [vmem:[#allocation41_spill] sm:$0xff] %v2959_v1  ;;  %v1304_v49 = vld [vmem:[%s3047_s27] sm:$0xff]  ;;  %v1310_v1 = vld [vmem:[%s3047_s27 + $0x30] sm:$0xff] }
 0x11f   : > { %3604 = vst [vmem:[#allocation38_spill] sm:$0xff] %v2937_v40  ;;  %v2945_v44 = vpop.eup %1942  ;;  %v1291_v17 = vadd.f32 %v2937_v40, %v1283_v55  ;;  %1952 = vrcp.f32 %v1289_v12  ;;  %v2984_v40 = vld [vmem:[%s2810_s23 + $0xa0] sm:$0xff]  ;;  %3621 = vst [vmem:[#allocation55_spill] sm:$0xff] %v3023_v10 }
 0x120   : > { %3605 = vst [vmem:[#allocation39_spill] sm:$0xff] %v2945_v44  ;;  %v2953_v57 = vpop.eup %1944  ;;  %v1292_v0 = vadd.f32 %v2945_v44, %v1284_v38  ;;  %1954 = vrcp.f32 %v1290_v13  ;;  %v2967_v38 = vld [vmem:[%s2810_s23 + $0x88] sm:$0xff]  ;;  %v2970_v13 = vld [vmem:[%s2810_s23 + $0x90] sm:$0xff]  ;;  %3613 = vst [vmem:[#allocation47_spill] sm:$0xff] %v2984_v40 }
 0x121   : > { %3606 = vst [vmem:[#allocation40_spill] sm:$0xff] %v2953_v57  ;;  %v2961_v35 = vpop.eup %1946  ;;  %v1293_v55 = vadd.f32 %v2953_v57, %v1285_v36  ;;  %1956 = vrcp.f32 %v1291_v17  ;;  %3609 = vst [vmem:[#allocation43_spill] sm:$0xff] %v2967_v38  ;;  %v2978_v57 = vld [vmem:[%s2810_s23 + $0x98] sm:$0xff]  ;;  %v3012_v44 = vld [vmem:[%s2810_s23 + $0xd0] sm:$0xff] }
 0x122   : > { %3608 = vst [vmem:[#allocation42_spill] sm:$0xff] %v2961_v35  ;;  %3610 = vst [vmem:[#allocation44_spill] sm:$0xff] %v2970_v13  ;;  %v2972_v28 = vpop.eup %1948  ;;  %v1294_v25 = vadd.f32 %v2961_v35, %v1286_v32  ;;  %1958 = vrcp.f32 %v1292_v0  ;;  %v2987_v32 = vld [vmem:[%s2810_s23 + $0xa8] sm:$0xff]  ;;  %v2996_v36 = vld [vmem:[%s2810_s23 + $0xb8] sm:$0xff] }
 0x123   : > { %3611 = vst [vmem:[#allocation45_spill] sm:$0xff] %v2972_v28  ;;  %3612 = vst [vmem:[#allocation46_spill] sm:$0xff] %v2978_v57  ;;  %v1295_v12 = vadd.f32 %v2972_v28, %v1287_v6  ;;  %1960 = vrcp.f32 %v1293_v55  ;;  %v2993_v55 = vld [vmem:[%s2810_s23 + $0xb0] sm:$0xff]  ;;  %v3002_v0 = vld [vmem:[%s2810_s23 + $0xc0] sm:$0xff] }
 0x124   : > { %3614 = vst [vmem:[#allocation48_spill] sm:$0xff] %v2987_v32  ;;  %1962 = vrcp.f32 %v1294_v25  ;;  %3615 = vst [vmem:[#allocation49_spill] sm:$0xff] %v2993_v55  ;;  %v3005_v28 = vld [vmem:[%s2810_s23 + $0xc8] sm:$0xff]  ;;  %v3033_v25 = vld [vmem:[%s2810_s23 + $0xf0] sm:$0xff] }
 0x125   : > { %3616 = vst [vmem:[#allocation50_spill] sm:$0xff] %v2996_v36  ;;  %1964 = vrcp.f32 %v1295_v12  ;;  %3617 = vst [vmem:[#allocation51_spill] sm:$0xff] %v3002_v0  ;;  %v3026_v35 = vld [vmem:[%s2810_s23 + $0xe8] sm:$0xff]  ;;  %v3036_v40 = vld [vmem:[%s2810_s23 + $0xf8] sm:$0xff]  ;;  %v3628_v0 = vunpack.c.h.bf16 %v2813_v23 }
 0x126   : > { %3618 = vst [vmem:[#allocation52_spill] sm:$0xff] %v3005_v28  ;;  %3619 = vst [vmem:[#allocation53_spill] sm:$0xff] %v3012_v44  ;;  %v1305_v32 = vld [vmem:[%s3047_s27 + $0x8] sm:$0xff]  ;;  %v1307_v57 = vld [vmem:[%s3047_s27 + $0x18] sm:$0xff] }
 0x127   : > { %3622 = vst [vmem:[#allocation56_spill] sm:$0xff] %v3026_v35  ;;  %3623 = vst [vmem:[#allocation57_spill] sm:$0xff] %v3033_v25 }
 0x128   : > { %3624 = vst [vmem:[#allocation58_spill] sm:$0xff] %v3036_v40 }
 0x12b   : > { %v3053_v6 = vpop.eup %1950 }
 0x12c   : > { %v3059_v44 = vpop.eup %1952  ;;  %v1312_v60 = vmul.f32 %v3053_v6, %v2608_v22  ;;  %v1348_v61 = vmul.f32 %v3053_v6, %v2640_v3  ;;  %v3067_v17 = vmul.f32 %v3053_v6, %v2672_v62  ;;  %v3071_v36 = vmul.f32 %v3053_v6, %v2708_v50 }
 0x12d   : > { %3625 = vst [vmem:[#allocation59_spill] sm:$0xff] %v3059_v44  ;;  %v3073_v12 = vpop.eup %1954  ;;  %v1313_v16 = vmul.f32 %v3059_v44, %v2612_v42  ;;  %v1349_v22 = vmul.f32 %v3059_v44, %v2644_v43  ;;  %v3082_v3 = vmul.f32 %v3059_v44, %v2676_v9  ;;  %v3086_v62 = vmul.f32 %v3059_v44, %v2712_v34  ;;  %v1306_v34 = vld [vmem:[%s3047_s27 + $0x10] sm:$0xff] }
 0x12e   : > { %v3088_v50 = vpop.eup %1956  ;;  %v1314_v40 = vmul.f32 %v3073_v12, %v2616_v5  ;;  %v3626_v42 = vunpack.c.l.bf16 %v2813_v23  ;;  %v1350_v43 = vmul.f32 %v3073_v12, %v2648_v46  ;;  %v3627_v9 = vunpack.c.l.bf16 %v2850_v53 }
 0x12f   : > { %v3099_v10 = vpop.eup %1958  ;;  %v1315_v28 = vmul.f32 %v3088_v50, %v2620_v24  ;;  %v1333_v55 = vmul.f32 %v3628_v0, %v1313_v16  ;;  %v1351_v5 = vmul.f32 %v3088_v50, %v2652_v33  ;;  %v1308_v33 = vld [vmem:[%s3047_s27 + $0x20] sm:$0xff]  ;;  %v3631_v0 = vunpack.c.h.bf16 %v2821_v39 }
 0x130   : > { %v1332_v25 = vmul.f32 %v3626_v42, %v1312_v60  ;;  %v1369_v35 = vmul.f32 %v3627_v9, %v1348_v61  ;;  %v3629_v60 = vunpack.c.h.bf16 %v2850_v53  ;;  %v3110_v46 = vpop.eup %1960  ;;  %v1316_v61 = vmul.f32 %v3099_v10, %v2624_v63 }
 0x131   : > { %v3630_v9 = vunpack.c.l.bf16 %v2821_v39  ;;  %v1352_v23 = vmul.f32 %v3099_v10, %v2656_v31  ;;  %v3119_v16 = vpop.eup %1962  ;;  %v1317_v53 = vmul.f32 %v3110_v46, %v2628_v20  ;;  %v1353_v63 = vmul.f32 %v3110_v46, %v2660_v41 }
 0x132   : > { %v1370_v42 = vmul.f32 %v3629_v60, %v1349_v22  ;;  %v1340_v13 = vadd.f32 %v1332_v25, %v1304_v49  ;;  %v1335_v22 = vmul.f32 %v3631_v0, %v1315_v28  ;;  %v1341_v60 = vadd.f32 %v1333_v55, %v1305_v32  ;;  %v3128_v38 = vpop.eup %1964  ;;  %v3634_v55 = vld [vmem:[#allocation22_spill] sm:$0xff] }
 0x133   : > { %v1334_v24 = vmul.f32 %v3630_v9, %v1314_v40  ;;  %v1309_v40 = vld [vmem:[%s3047_s27 + $0x28] sm:$0xff]  ;;  %v1318_v31 = vmul.f32 %v3119_v16, %v3575_v27  ;;  %v3632_v49 = vunpack.c.l.bf16 %v2829_v18  ;;  %v1354_v20 = vmul.f32 %v3119_v16, %v2664_v47 }
 0x134   : > { %v1319_v39 = vmul.f32 %v3128_v38, %v3576_v58  ;;  %v3633_v28 = vunpack.c.h.bf16 %v2829_v18  ;;  %v1343_v32 = vadd.f32 %v1335_v22, %v1307_v57  ;;  %v1355_v0 = vmul.f32 %v3128_v38, %v3634_v55 }
 0x135   : > { %v1336_v25 = vmul.f32 %v3632_v49, %v1316_v61  ;;  %v1342_v9 = vadd.f32 %v1334_v24, %v1306_v34  ;;  %v3635_v27 = vunpack.c.l.bf16 %v2835_v48  ;;  %v3636_v34 = vunpack.c.l.bf16 %v2858_v2 }
 0x136   : > { %v1337_v41 = vmul.f32 %v3633_v28, %v1317_v53  ;;  %v3637_v47 = vunpack.c.h.bf16 %v2858_v2  ;;  %v3638_v58 = vunpack.c.h.bf16 %v2835_v48  ;;  %v3639_v57 = vunpack.c.l.bf16 %v2866_v37 }
 0x137   : > { %v1338_v44 = vmul.f32 %v3635_v27, %v1318_v31  ;;  %v1344_v61 = vadd.f32 %v1336_v25, %v1308_v33  ;;  %v1371_v24 = vmul.f32 %v3636_v34, %v1350_v43  ;;  %v3640_v22 = vunpack.c.h.bf16 %v2866_v37 }
 0x138   : > { %v1372_v49 = vmul.f32 %v3637_v47, %v1351_v5  ;;  %v1339_v52 = vmul.f32 %v3638_v58, %v1319_v39  ;;  %v1345_v18 = vadd.f32 %v1337_v41, %v1309_v40  ;;  %v1373_v53 = vmul.f32 %v3639_v57, %v1352_v23  ;;  %v3643_v47 = vld [vmem:[#allocation23_spill] sm:$0xff] }
 0x139   : > { %v1374_v28 = vmul.f32 %v3640_v22, %v1353_v63  ;;  %v1346_v55 = vadd.f32 %v1338_v44, %v1310_v1  ;;  %v3641_v31 = vunpack.c.l.bf16 %v2873_v51  ;;  %v3642_v25 = vunpack.c.h.bf16 %v2873_v51  ;;  %v3644_v1 = vld [vmem:[#allocation25_spill] sm:$0xff]  ;;  %v3645_v51 = vld [vmem:[#allocation28_spill] sm:$0xff] }
 0x13a   : > { %v1377_v27 = vadd.f32 %v1369_v35, %v1340_v13  ;;  %v1347_v2 = vadd.f32 %v1339_v52, %v1311_v56  ;;  %v1378_v5 = vadd.f32 %v1370_v42, %v1341_v60  ;;  %v1379_v34 = vadd.f32 %v1371_v24, %v1342_v9  ;;  %v3646_v56 = vld [vmem:[#allocation30_spill] sm:$0xff] }
 0x13b   : > { %v1375_v33 = vmul.f32 %v3641_v31, %v1354_v20  ;;  %v1376_v43 = vmul.f32 %v3642_v25, %v1355_v0  ;;  %v1380_v48 = vadd.f32 %v1372_v49, %v1343_v32  ;;  %v1381_v39 = vadd.f32 %v1373_v53, %v1344_v61  ;;  %v3655_v25 = vld [vmem:[#allocation31_spill] sm:$0xff] }
 0x13c   : > { %v1382_v40 = vadd.f32 %v1374_v28, %v1345_v18  ;;  %v1387_v23 = vmul.f32 %v3073_v12, %v3643_v47  ;;  %v1388_v44 = vmul.f32 %v3088_v50, %v3580_v29  ;;  %v1389_v63 = vmul.f32 %v3099_v10, %v3644_v1  ;;  %v3656_v47 = vld [vmem:[#allocation5_spill] sm:$0xff] }
 0x13d   : > { %v1383_v41 = vadd.f32 %v1375_v33, %v1346_v55  ;;  %v1384_v37 = vadd.f32 %v1376_v43, %v1347_v2  ;;  %v1390_v35 = vmul.f32 %v3110_v46, %v3645_v51  ;;  %v1391_v52 = vmul.f32 %v3119_v16, %v3582_v15 }
 0x13e   : > { %v1392_v13 = vmul.f32 %v3128_v38, %v3646_v56  ;;  %v3647_v42 = vunpack.c.l.bf16 %v2884_v21  ;;  %v3648_v9 = vunpack.c.h.bf16 %v2884_v21  ;;  %v3649_v20 = vunpack.c.l.bf16 %v2893_v4 }
 0x13f   : > { %v3650_v0 = vunpack.c.h.bf16 %v2893_v4  ;;  %v3651_v24 = vunpack.c.l.bf16 %v2902_v14  ;;  %v3652_v49 = vunpack.c.h.bf16 %v2902_v14  ;;  %v3653_v18 = vunpack.c.l.bf16 %v2909_v45 }
 0x140   : > { %v1406_v60 = vmul.f32 %v3647_v42, %v3067_v17  ;;  %v1407_v29 = vmul.f32 %v3648_v9, %v3082_v3  ;;  %v1408_v32 = vmul.f32 %v3649_v20, %v1387_v23  ;;  %v3654_v17 = vunpack.c.h.bf16 %v2909_v45 }
 0x141   : > { %v1409_v61 = vmul.f32 %v3650_v0, %v1388_v44  ;;  %v1410_v15 = vmul.f32 %v3651_v24, %v1389_v63  ;;  %v1411_v58 = vmul.f32 %v3652_v49, %v1390_v35  ;;  %v1412_v57 = vmul.f32 %v3653_v18, %v1391_v52  ;;  %v3670_v24 = vld [vmem:[#allocation10_spill] sm:$0xff]  ;;  %v3671_v49 = vld [vmem:[#allocation11_spill] sm:$0xff]  ;;  %v3672_v18 = vld [vmem:[#allocation12_spill] sm:$0xff] }
 0x142   : > { %v1413_v53 = vmul.f32 %v3654_v17, %v1392_v13  ;;  %v1414_v21 = vadd.f32 %v1406_v60, %v1377_v27  ;;  %v1415_v3 = vadd.f32 %v1407_v29, %v1378_v5  ;;  %v1416_v22 = vadd.f32 %v1408_v32, %v1379_v34  ;;  %v3665_v60 = vld [vmem:[#allocation6_spill] sm:$0xff]  ;;  %v3666_v29 = vld [vmem:[#allocation7_spill] sm:$0xff]  ;;  %v3668_v32 = vld [vmem:[#allocation8_spill] sm:$0xff] }
 0x143   : > { %v1417_v28 = vadd.f32 %v1409_v61, %v1380_v48  ;;  %v1418_v55 = vadd.f32 %v1410_v15, %v1381_v39  ;;  %v1419_v31 = vadd.f32 %v1411_v58, %v1382_v40  ;;  %v1420_v4 = vadd.f32 %v1412_v57, %v1383_v41  ;;  %v3669_v61 = vld [vmem:[#allocation9_spill] sm:$0xff] }
 0x144   : > { %v1421_v33 = vadd.f32 %v1413_v53, %v1384_v37  ;;  %v1424_v43 = vmul.f32 %v3073_v12, %v3655_v25  ;;  %v1425_v14 = vmul.f32 %v3088_v50, %v3588_v59  ;;  %v1426_v2 = vmul.f32 %v3099_v10, %v3589_v54  ;;  %v3673_v17 = vld [vmem:[#allocation13_spill] sm:$0xff] }
 0x145   : > { %v1427_v45 = vmul.f32 %v3110_v46, %v3656_v47  ;;  %v1428_v27 = vmul.f32 %v3119_v16, %v2738_v7  ;;  %v1429_v5 = vmul.f32 %v3128_v38, %v2740_v11  ;;  %v3657_v34 = vunpack.c.l.bf16 %v2920_v19 }
 0x146   : > { %v3658_v39 = vunpack.c.h.bf16 %v2920_v19  ;;  %v3659_v40 = vunpack.c.l.bf16 %v2935_v26  ;;  %v3660_v41 = vunpack.c.h.bf16 %v2935_v26  ;;  %v3661_v37 = vunpack.c.l.bf16 %v2942_v8 }
 0x147   : > { %v1443_v48 = vmul.f32 %v3657_v34, %v3071_v36  ;;  %v3662_v44 = vunpack.c.h.bf16 %v2942_v8  ;;  %v3663_v1 = vunpack.c.l.bf16 %v2950_v30  ;;  %v3664_v36 = vunpack.c.h.bf16 %v2950_v30  ;;  %v3667_v8 = vld [vmem:[#allocation59_spill] sm:$0xff] }
 0x148   : > { %v1444_v59 = vmul.f32 %v3658_v39, %v3086_v62  ;;  %v1445_v54 = vmul.f32 %v3659_v40, %v1424_v43  ;;  %v1446_v23 = vmul.f32 %v3660_v41, %v1425_v14  ;;  %v1447_v7 = vmul.f32 %v3661_v37, %v1426_v2  ;;  %v3680_v14 = vld [vmem:[#allocation44_spill] sm:$0xff] }
 0x149   : > { %v1448_v11 = vmul.f32 %v3662_v44, %v1427_v45  ;;  %v1449_v63 = vmul.f32 %v3663_v1, %v1428_v27  ;;  %v1450_v51 = vmul.f32 %v3664_v36, %v1429_v5  ;;  %v1451_v19 = vadd.f32 %v1443_v48, %v1414_v21  ;;  %v3674_v21 = vld [vmem:[#allocation41_spill] sm:$0xff]  ;;  %v3683_v5 = vld [vmem:[#allocation46_spill] sm:$0xff]  ;;  %v3687_v36 = vld [vmem:[#allocation15_spill] sm:$0xff] }
 0x14a   : > { %v1452_v62 = vadd.f32 %v1444_v59, %v1415_v3  ;;  %v1453_v35 = vadd.f32 %v1445_v54, %v1416_v22  ;;  %v1454_v52 = vadd.f32 %v1446_v23, %v1417_v28  ;;  %v1455_v56 = vadd.f32 %v1447_v7, %v1418_v55  ;;  %v3686_v1 = vld [vmem:[#allocation14_spill] sm:$0xff] }
 0x14b   : > { %v1456_v13 = vadd.f32 %v1448_v11, %v1419_v31  ;;  %v1457_v26 = vadd.f32 %v1449_v63, %v1420_v4  ;;  %v1458_v42 = vadd.f32 %v1450_v51, %v1421_v33  ;;  %v1459_v9 = vmul.f32 %v3053_v6, %v3665_v60  ;;  %v3677_v31 = vld [vmem:[#allocation43_spill] sm:$0xff]  ;;  %v3688_v60 = vld [vmem:[#allocation16_spill] sm:$0xff] }
 0x14c   : > { %v1460_v20 = vmul.f32 %v3667_v8, %v3666_v29  ;;  %v1461_v0 = vmul.f32 %v3073_v12, %v3668_v32  ;;  %v1462_v30 = vmul.f32 %v3088_v50, %v3669_v61  ;;  %v1463_v15 = vmul.f32 %v3099_v10, %v3670_v24  ;;  %v3689_v29 = vld [vmem:[#allocation17_spill] sm:$0xff]  ;;  %v3694_v32 = vld [vmem:[#allocation47_spill] sm:$0xff] }
 0x14d   : > { %v1464_v58 = vmul.f32 %v3110_v46, %v3671_v49  ;;  %v1465_v57 = vmul.f32 %v3119_v16, %v3672_v18  ;;  %v1466_v53 = vmul.f32 %v3128_v38, %v3673_v17  ;;  %v3675_v3 = vunpack.c.l.bf16 %v3674_v21  ;;  %v3700_v17 = vld [vmem:[#allocation49_spill] sm:$0xff] }
 0x14e   : > { %v3676_v28 = vunpack.c.h.bf16 %v3674_v21  ;;  %v3678_v4 = vunpack.c.l.bf16 %v3677_v31  ;;  %v3679_v25 = vunpack.c.h.bf16 %v3677_v31  ;;  %v3681_v2 = vunpack.c.l.bf16 %v3680_v14 }
 0x14f   : > { %v1480_v22 = vmul.f32 %v3675_v3, %v1459_v9  ;;  %v3682_v45 = vunpack.c.h.bf16 %v3680_v14  ;;  %v3684_v34 = vunpack.c.l.bf16 %v3683_v5  ;;  %v3685_v39 = vunpack.c.h.bf16 %v3683_v5 }
 0x150   : > { %v1481_v55 = vmul.f32 %v3676_v28, %v1460_v20  ;;  %v1482_v33 = vmul.f32 %v3678_v4, %v1461_v0  ;;  %v1483_v43 = vmul.f32 %v3679_v25, %v1462_v30  ;;  %v1484_v47 = vmul.f32 %v3681_v2, %v1463_v15  ;;  %v3697_v15 = vld [vmem:[#allocation48_spill] sm:$0xff]  ;;  %v3703_v28 = vld [vmem:[#allocation50_spill] sm:$0xff] }
 0x151   : > { %v1485_v27 = vmul.f32 %v3682_v45, %v1464_v58  ;;  %v1486_v48 = vmul.f32 %v3684_v34, %v1465_v57  ;;  %v1487_v59 = vmul.f32 %v3685_v39, %v1466_v53  ;;  %v1488_v40 = vadd.f32 %v1480_v22, %v1451_v19  ;;  %v3690_v19 = vld [vmem:[#allocation18_spill] sm:$0xff]  ;;  %v3706_v34 = vld [vmem:[#allocation33_spill] sm:$0xff]  ;;  %v3707_v39 = vld [vmem:[#allocation20_spill] sm:$0xff] }
 0x152   : > { %v1489_v54 = vadd.f32 %v1481_v55, %v1452_v62  ;;  %v1490_v41 = vadd.f32 %v1482_v33, %v1453_v35  ;;  %v1491_v23 = vadd.f32 %v1483_v43, %v1454_v52  ;;  %v1492_v37 = vadd.f32 %v1484_v47, %v1455_v56  ;;  %v3691_v35 = vld [vmem:[#allocation19_spill] sm:$0xff]  ;;  %v3692_v56 = vld [vmem:[#allocation26_spill] sm:$0xff] }
 0x153   : > { %v1493_v7 = vadd.f32 %v1485_v27, %v1456_v13  ;;  %v1494_v44 = vadd.f32 %v1486_v48, %v1457_v26  ;;  %v1495_v11 = vadd.f32 %v1487_v59, %v1458_v42  ;;  %v1496_v63 = vmul.f32 %v3053_v6, %v3686_v1  ;;  %v3693_v26 = vld [vmem:[#allocation27_spill] sm:$0xff]  ;;  %v3708_v1 = vld [vmem:[#allocation21_spill] sm:$0xff] }
 0x154   : > { %v1497_v51 = vmul.f32 %v3667_v8, %v3687_v36  ;;  %v1498_v9 = vmul.f32 %v3073_v12, %v3688_v60  ;;  %v1499_v20 = vmul.f32 %v3088_v50, %v3689_v29  ;;  %v1500_v62 = vmul.f32 %v3099_v10, %v3690_v19  ;;  %v3709_v36 = vld [vmem:[#allocation24_spill] sm:$0xff]  ;;  %v3714_v60 = vld [vmem:[#allocation51_spill] sm:$0xff] }
 0x155   : > { %v1501_v52 = vmul.f32 %v3110_v46, %v3691_v35  ;;  %v1502_v13 = vmul.f32 %v3119_v16, %v3692_v56  ;;  %v1503_v42 = vmul.f32 %v3128_v38, %v3693_v26  ;;  %v3695_v0 = vunpack.c.l.bf16 %v3694_v32  ;;  %v3720_v26 = vld [vmem:[#allocation53_spill] sm:$0xff] }
 0x156   : > { %v3696_v30 = vunpack.c.h.bf16 %v3694_v32  ;;  %v3698_v49 = vunpack.c.l.bf16 %v3697_v15  ;;  %v3699_v18 = vunpack.c.h.bf16 %v3697_v15  ;;  %v3701_v53 = vunpack.c.l.bf16 %v3700_v17 }
 0x157   : > { %v1517_v61 = vmul.f32 %v3695_v0, %v1496_v63  ;;  %v3702_v3 = vunpack.c.h.bf16 %v3700_v17  ;;  %v3704_v55 = vunpack.c.l.bf16 %v3703_v28  ;;  %v3705_v4 = vunpack.c.h.bf16 %v3703_v28 }
 0x158   : > { %v1518_v24 = vmul.f32 %v3696_v30, %v1497_v51  ;;  %v1519_v58 = vmul.f32 %v3698_v49, %v1498_v9  ;;  %v1520_v57 = vmul.f32 %v3699_v18, %v1499_v20  ;;  %v1521_v21 = vmul.f32 %v3701_v53, %v1500_v62  ;;  %v3717_v62 = vld [vmem:[#allocation52_spill] sm:$0xff]  ;;  %v3723_v30 = vld [vmem:[#allocation54_spill] sm:$0xff] }
 0x159   : > { %v1522_v22 = vmul.f32 %v3702_v3, %v1501_v52  ;;  %v1523_v31 = vmul.f32 %v3704_v55, %v1502_v13  ;;  %v1524_v33 = vmul.f32 %v3705_v4, %v1503_v42  ;;  %v1525_v25 = vadd.f32 %v1517_v61, %v1488_v40  ;;  %v3710_v40 = vld [vmem:[#allocation29_spill] sm:$0xff]  ;;  %v3726_v55 = vld [vmem:[#allocation35_spill] sm:$0xff]  ;;  %v3727_v4 = vld [vmem:[#allocation36_spill] sm:$0xff] }
 0x15a   : > { %v1526_v43 = vadd.f32 %v1518_v24, %v1489_v54  ;;  %v1527_v14 = vadd.f32 %v1519_v58, %v1490_v41  ;;  %v1528_v2 = vadd.f32 %v1520_v57, %v1491_v23  ;;  %v1529_v47 = vadd.f32 %v1521_v21, %v1492_v37  ;;  %v3711_v41 = vld [vmem:[#allocation32_spill] sm:$0xff] }
 0x15b   : > { %v1530_v45 = vadd.f32 %v1522_v22, %v1493_v7  ;;  %v1531_v27 = vadd.f32 %v1523_v31, %v1494_v44  ;;  %v1532_v5 = vadd.f32 %v1524_v33, %v1495_v11  ;;  %v1533_v48 = vmul.f32 %v3053_v6, %v3706_v34  ;;  %v3712_v37 = vld [vmem:[#allocation4_spill] sm:$0xff]  ;;  %v3713_v44 = vld [vmem:[#allocation34_spill] sm:$0xff]  ;;  %v3728_v34 = vld [vmem:[#allocation37_spill] sm:$0xff] }
 0x15c   : > { %v1534_v59 = vmul.f32 %v3667_v8, %v3707_v39  ;;  %v1535_v63 = vmul.f32 %v3073_v12, %v3708_v1  ;;  %v1536_v51 = vmul.f32 %v3088_v50, %v3709_v36  ;;  %v1537_v54 = vmul.f32 %v3099_v10, %v3710_v40  ;;  %v3729_v39 = vld [vmem:[#allocation38_spill] sm:$0xff]  ;;  %v3737_v36 = vld [vmem:[#allocation56_spill] sm:$0xff] }
 0x15d   : > { %v1538_v23 = vmul.f32 %v3110_v46, %v3711_v41  ;;  %v1539_v7 = vmul.f32 %v3119_v16, %v3712_v37  ;;  %v1540_v11 = vmul.f32 %v3128_v38, %v3713_v44  ;;  %v3715_v9 = vunpack.c.l.bf16 %v3714_v60 }
 0x15e   : > { %v3716_v20 = vunpack.c.h.bf16 %v3714_v60  ;;  %v3718_v35 = vunpack.c.l.bf16 %v3717_v62  ;;  %v3719_v56 = vunpack.c.h.bf16 %v3717_v62  ;;  %v3721_v42 = vunpack.c.l.bf16 %v3720_v26 }
 0x15f   : > { %v1554_v29 = vmul.f32 %v3715_v9, %v1533_v48  ;;  %v3722_v0 = vunpack.c.h.bf16 %v3720_v26  ;;  %v3724_v24 = vunpack.c.l.bf16 %v3723_v30  ;;  %v3725_v49 = vunpack.c.h.bf16 %v3723_v30 }
 0x160   : > { %v1555_v19 = vmul.f32 %v3716_v20, %v1534_v59  ;;  %v1556_v52 = vmul.f32 %v3718_v35, %v1535_v63  ;;  %v1557_v13 = vmul.f32 %v3719_v56, %v1536_v51  ;;  %v1558_v32 = vmul.f32 %v3721_v42, %v1537_v54  ;;  %v3734_v59 = vld [vmem:[#allocation55_spill] sm:$0xff] }
 0x161   : > { %v1559_v61 = vmul.f32 %v3722_v0, %v1538_v23  ;;  %v1560_v15 = vmul.f32 %v3724_v24, %v1539_v7  ;;  %v1561_v58 = vmul.f32 %v3725_v49, %v1540_v11  ;;  %v1562_v18 = vadd.f32 %v1554_v29, %v1525_v25  ;;  %v3743_v23 = vld [vmem:[#allocation58_spill] sm:$0xff] }
 0x162   : > { %v1563_v57 = vadd.f32 %v1555_v19, %v1526_v43  ;;  %v1564_v17 = vadd.f32 %v1556_v52, %v1527_v14  ;;  %v1565_v53 = vadd.f32 %v1557_v13, %v1528_v2  ;;  %v1566_v21 = vadd.f32 %v1558_v32, %v1529_v47  ;;  %v3730_v43 = vld [vmem:[#allocation39_spill] sm:$0xff]  ;;  %v3731_v2 = vld [vmem:[#allocation40_spill] sm:$0xff] }
 0x163   : > { %v1567_v3 = vadd.f32 %v1559_v61, %v1530_v45  ;;  %v1568_v22 = vadd.f32 %v1560_v15, %v1531_v27  ;;  %v1569_v28 = vadd.f32 %v1561_v58, %v1532_v5  ;;  %v1570_v31 = vmul.f32 %v3053_v6, %v3726_v55  ;;  %v3732_v45 = vld [vmem:[#allocation42_spill] sm:$0xff]  ;;  %v3733_v5 = vld [vmem:[#allocation45_spill] sm:$0xff] }
 0x164   : > { %v1571_v33 = vmul.f32 %v3667_v8, %v3727_v4  ;;  %v1572_v48 = vmul.f32 %v3073_v12, %v3728_v34  ;;  %v1573_v25 = vmul.f32 %v3088_v50, %v3729_v39  ;;  %v1574_v14 = vmul.f32 %v3099_v10, %v3730_v43 }
 0x165   : > { %v1575_v47 = vmul.f32 %v3110_v46, %v3731_v2  ;;  %v1576_v27 = vmul.f32 %v3119_v16, %v3732_v45  ;;  %v1577_v6 = vmul.f32 %v3128_v38, %v3733_v5  ;;  %v3735_v8 = vunpack.c.l.bf16 %v3734_v59  ;;  %v3740_v46 = vld [vmem:[#allocation57_spill] sm:$0xff] }
 0x166   : > { %v3736_v12 = vunpack.c.h.bf16 %v3734_v59  ;;  %v3738_v50 = vunpack.c.l.bf16 %v3737_v36  ;;  %v3739_v10 = vunpack.c.h.bf16 %v3737_v36  ;;  %v3741_v16 = vunpack.c.l.bf16 %v3740_v46 }
 0x167   : > { %v1591_v1 = vmul.f32 %v3735_v8, %v1570_v31  ;;  %v3742_v54 = vunpack.c.h.bf16 %v3740_v46  ;;  %v3744_v37 = vunpack.c.l.bf16 %v3743_v23  ;;  %v3745_v44 = vunpack.c.h.bf16 %v3743_v23 }
 0x168   : > { %v1592_v63 = vmul.f32 %v3736_v12, %v1571_v33  ;;  %v1593_v51 = vmul.f32 %v3738_v50, %v1572_v48  ;;  %v1594_v40 = vmul.f32 %v3739_v10, %v1573_v25  ;;  %v1595_v38 = vmul.f32 %v3741_v16, %v1574_v14 }
 0x169   : > { %v1596_v41 = vmul.f32 %v3742_v54, %v1575_v47  ;;  %v1597_v7 = vmul.f32 %v3744_v37, %v1576_v27  ;;  %v1598_v11 = vmul.f32 %v3745_v44, %v1577_v6  ;;  %v1599_v60 = vadd.f32 %v1591_v1, %v1562_v18 }
 0x16a   : > { %v1600_v9 = vadd.f32 %v1592_v63, %v1563_v57  ;;  %v1601_v29 = vadd.f32 %v1593_v51, %v1564_v17  ;;  %v1602_v20 = vadd.f32 %v1594_v40, %v1565_v53  ;;  %v1603_v19 = vadd.f32 %v1595_v38, %v1566_v21 }
 0x16b   : > { %v1604_v62 = vadd.f32 %v1596_v41, %v1567_v3  ;;  %v1605_v35 = vadd.f32 %v1597_v7, %v1568_v22  ;;  %v1606_v52 = vadd.f32 %v1598_v11, %v1569_v28  ;;  %1607 = vst [vmem:[%s427_s30] sm:$0xff] %v1599_v60 }
 0x16c   : > { %1608 = vst [vmem:[%s427_s30 + $0x8] sm:$0xff] %v1600_v9  ;;  %1609 = vst [vmem:[%s427_s30 + $0x10] sm:$0xff] %v1601_v29 }
 0x16d   : > { %1610 = vst [vmem:[%s427_s30 + $0x18] sm:$0xff] %v1602_v20  ;;  %1611 = vst [vmem:[%s427_s30 + $0x20] sm:$0xff] %v1603_v19 }
 0x16e   : > { %1612 = vst [vmem:[%s427_s30 + $0x28] sm:$0xff] %v1604_v62  ;;  %1613 = vst [vmem:[%s427_s30 + $0x30] sm:$0xff] %v1605_v35 }
 0x16f   : > { %1614 = vst [vmem:[%s427_s30 + $0x38] sm:$0xff] %v1606_v52 }
 0x170 PF: > { %p11_p9 = scmp.ge.s32.totalorder %s2032_s19, 4   ;;  %s3746_s15 = smov %s1984_s16 }
 0x171   : > { %s3747_s16 = smov %s2041_s22  ;;  %s3748_s17 = smov %s2032_s19 }
 0x172   :  { %13 = sbr.rel (!%p11_p9) target bundleno = 2 (0x2), region = 145 }

</bundles_post_ra>
